<compile_context>
chip_gen: v7x
topology: tpu7x:2x2x1
jax: 0.10.0
libtpu: 0.0.40
codegen_flags: <defaults>
</compile_context>

<pallas_src>
import functools

import jax
import jax.numpy as jnp
from jax.experimental import pallas as pl
from jax.experimental.pallas import tpu as pltpu


# ----------------------------------------------------------------------------
# Fused kernel: all four conv layers for one batch element, in VMEM.
# ----------------------------------------------------------------------------
def _pcfe_kernel(x_ref, w1_ref, b1_ref, w2_ref, b2_ref, w3_ref, b3_ref,
                 w4_ref, b4_ref, o_ref, *, H, W, Cin, Cmid, Cout):
    del Cmid, Cout  # implied by the weight shapes

    def conv3x3(act2d, w_ref, b_ref, C, relu):
        # act2d : (H, W*C) lane-dense activation slab (element [h, w*C+c]).
        # w_ref : (9*W*C, W*Co) block-diagonal im2col weight (BN scale pre-folded).
        # b_ref : (1, W*Co) lane-dense bias.
        zc = jnp.zeros((H, C), jnp.float32)              # left/right zero border
        zr = jnp.zeros((1, (W + 2) * C), jnp.float32)    # top/bottom zero border
        xp = jnp.concatenate([zc, act2d, zc], axis=1)    # (H, (W+2)*C)
        xp = jnp.concatenate([zr, xp, zr], axis=0)       # (H+2, (W+2)*C)
        # im2col: 9 shifted taps concatenated along lanes -> one K=9*W*C matmul.
        patches = jnp.concatenate(
            [xp[dy:dy + H, dx * C: dx * C + W * C]
             for dy in range(3) for dx in range(3)], axis=1)   # (H, 9*W*C)
        y = jnp.dot(patches, w_ref[...], preferred_element_type=jnp.float32)
        y = y + b_ref[...]                               # per-channel bias (lane-dense)
        if relu:
            y = jnp.maximum(y, 0.0)
        return y                                          # (H, W*Co)

    x2d = x_ref[0].astype(jnp.float32)                    # (H, W*Cin)
    h1 = conv3x3(x2d, w1_ref, b1_ref, Cin, True)          # reduce_conv
    h2 = conv3x3(h1, w2_ref, b2_ref, h1.shape[1] // W, True)   # conv[0]
    h3 = conv3x3(h2, w3_ref, b3_ref, h2.shape[1] // W, True) + h1  # conv[1] + skip
    out = conv3x3(h3, w4_ref, b4_ref, h3.shape[1] // W, False)     # out_conv (+bias)
    o_ref[0] = out.astype(o_ref.dtype)


# ----------------------------------------------------------------------------
# Parameter folding: BN scale -> weights, block-diagonal lane-dense im2col weights.
# ----------------------------------------------------------------------------
def _lane_dense_weight(w_hwio, scale, width):
    """(3,3,C,Co) HWIO weight * per-Co scale -> (9*width*C, width*Co) block-diag."""
    C, Co = w_hwio.shape[2], w_hwio.shape[3]
    wf = (w_hwio * scale[None, None, None, :]).astype(jnp.float32)
    taps = wf.reshape(9, C, Co)                              # t = dy*3 + dx
    eye = jnp.eye(width, dtype=jnp.float32)
    big = jnp.einsum("wv,tco->twcvo", eye, taps)             # (9, W, C, W, Co)
    return big.reshape(9 * width * C, width * Co)


def _lane_dense_bias(bias, width):
    co = bias.shape[0]
    return jnp.tile(bias.astype(jnp.float32), width).reshape(1, width * co)


# ----------------------------------------------------------------------------
# Wrapper: one fused pallas_call for the whole PCFE forward.
# ----------------------------------------------------------------------------
def pcfe_forward(x_nhwc, p):
    N, H, W, Cin = x_nhwc.shape
    Cmid = p["w1"].shape[-1]
    Cout = p["w4"].shape[-1]

    # Fold BN + build lane-dense weights once (trace-time; outside the kernel).
    w1 = _lane_dense_weight(p["w1"], p["s1"], W); b1 = _lane_dense_bias(p["b1"], W)
    w2 = _lane_dense_weight(p["w2"], p["s2"], W); b2 = _lane_dense_bias(p["b2"], W)
    w3 = _lane_dense_weight(p["w3"], p["s3"], W); b3 = _lane_dense_bias(p["b3"], W)
    w4 = _lane_dense_weight(p["w4"], p["s4"], W); b4 = _lane_dense_bias(p["b4"], W)

    # Lane-dense input slab: (N, H, W*Cin); element [n, h, w*Cin + c].
    x2d = x_nhwc.reshape(N, H, W * Cin)

    kernel = functools.partial(_pcfe_kernel, H=H, W=W, Cin=Cin, Cmid=Cmid, Cout=Cout)

    itemsize = 4
    flops = 2 * N * H * W * 9 * (Cin * Cmid + 2 * Cmid * Cmid + Cmid * Cout)
    bytes_accessed = itemsize * (
        x2d.size + N * H * W * Cout
        + w1.size + b1.size + w2.size + b2.size
        + w3.size + b3.size + w4.size + b4.size)

    out2d = pl.pallas_call(
        kernel,
        out_shape=jax.ShapeDtypeStruct((N, H, W * Cout), x_nhwc.dtype),
        grid_spec=pltpu.PrefetchScalarGridSpec(
            num_scalar_prefetch=0,
            grid=(N,),
            in_specs=[
                pl.BlockSpec((1, H, W * Cin), lambda n: (n, 0, 0)),
                pl.BlockSpec(w1.shape, lambda n: (0, 0)),
                pl.BlockSpec(b1.shape, lambda n: (0, 0)),
                pl.BlockSpec(w2.shape, lambda n: (0, 0)),
                pl.BlockSpec(b2.shape, lambda n: (0, 0)),
                pl.BlockSpec(w3.shape, lambda n: (0, 0)),
                pl.BlockSpec(b3.shape, lambda n: (0, 0)),
                pl.BlockSpec(w4.shape, lambda n: (0, 0)),
                pl.BlockSpec(b4.shape, lambda n: (0, 0)),
            ],
            out_specs=pl.BlockSpec((1, H, W * Cout), lambda n: (n, 0, 0)),
        ),
        compiler_params=pltpu.CompilerParams(
            dimension_semantics=("parallel",),
            vmem_limit_bytes=32 * 1024 * 1024,
        ),
        cost_estimate=pl.CostEstimate(
            flops=int(flops), transcendentals=0, bytes_accessed=int(bytes_accessed)),
    )(x2d, w1, b1, w2, b2, w3, b3, w4, b4)

    return out2d.reshape(N, H, W, Cout)


# ----------------------------------------------------------------------------
# Parameters (eval-mode BN folded into per-channel scale/bias).
# ----------------------------------------------------------------------------
def _fold_bn(gamma, beta, mean, var, eps=1e-5):
    scale = gamma / jnp.sqrt(var + eps)
    bias = beta - mean * scale
    return scale, bias


def init_pcfe_params(key, in_channels, mid_channels, out_channels):
    # 4 conv weights + 3 BN blocks (4 keys each) + 1 conv bias = 17 keys needed.
    keys = jax.random.split(key, 24)
    k = iter(keys)

    def conv_w(ci, co):
        return 0.1 * jax.random.normal(next(k), (3, 3, ci, co), jnp.float32)  # HWIO

    def bn(c):
        gamma = 1.0 + 0.1 * jax.random.normal(next(k), (c,), jnp.float32)
        beta = 0.1 * jax.random.normal(next(k), (c,), jnp.float32)
        mean = 0.1 * jax.random.normal(next(k), (c,), jnp.float32)
        var = jnp.abs(jax.random.normal(next(k), (c,), jnp.float32)) + 0.5
        return _fold_bn(gamma, beta, mean, var)

    p = {}
    # reduce_conv: conv(in->mid, no bias) + BN + ReLU
    p["w1"] = conv_w(in_channels, mid_channels)
    p["s1"], p["b1"] = bn(mid_channels)
    # conv: [conv(mid->mid, no bias) + BN + ReLU] x 2
    p["w2"] = conv_w(mid_channels, mid_channels)
    p["s2"], p["b2"] = bn(mid_channels)
    p["w3"] = conv_w(mid_channels, mid_channels)
    p["s3"], p["b3"] = bn(mid_channels)
    # out_conv: conv(mid->out) with bias, no BN/ReLU
    p["w4"] = conv_w(mid_channels, out_channels)
    p["s4"] = jnp.ones((out_channels,), jnp.float32)
    p["b4"] = 0.1 * jax.random.normal(next(k), (out_channels,), jnp.float32)
    return p


# ----------------------------------------------------------------------------
# Plain-JAX reference (for correctness check)
# ----------------------------------------------------------------------------
def _ref_conv(x, w, s, b, relu, residual=None):
    y = jax.lax.conv_general_dilated(
        x, w, window_strides=(1, 1), padding=((1, 1), (1, 1)),
        dimension_numbers=("NHWC", "HWIO", "NHWC"))
    y = y * s[None, None, None, :] + b[None, None, None, :]
    if relu:
        y = jnp.maximum(y, 0.0)
    if residual is not None:
        y = y + residual
    return y


def pcfe_ref(x, p):
    h1 = _ref_conv(x, p["w1"], p["s1"], p["b1"], True)
    h2 = _ref_conv(h1, p["w2"], p["s2"], p["b2"], True)
    h3 = _ref_conv(h2, p["w3"], p["s3"], p["b3"], True, residual=h1)
    return _ref_conv(h3, p["w4"], p["s4"], p["b4"], False)


# ----------------------------------------------------------------------------
if __name__ == "__main__":
    N, H, W = 2, 16, 16
    in_channels, mid_channels, out_channels = 4, 8, 8

    key = jax.random.PRNGKey(0)
    kx, kp = jax.random.split(key)
    # PyTorch-style NCHW input -> NHWC for the kernel / reference.
    x_nchw = jax.random.normal(kx, (N, in_channels, H, W), jnp.float32)
    x_nhwc = jnp.transpose(x_nchw, (0, 2, 3, 1))

    params = init_pcfe_params(kp, in_channels, mid_channels, out_channels)

    out = pcfe_forward(x_nhwc, params)
    out = jax.block_until_ready(out)

    ref = pcfe_ref(x_nhwc, params)
    assert out.shape == (N, H, W, out_channels)
    assert jnp.allclose(out, ref, rtol=1e-4, atol=1e-4), "mismatch vs JAX reference"

    print("KERNEL_OK")
</pallas_src>

<mosaic_0001>
module attributes {stable_mosaic.version = 11 : i64} {
  func.func @_pcfe_kernel(%arg0: i32, %arg1: memref<1x16x64xf32, #tpu.memory_space<vmem>>, %arg2: memref<576x128xf32, #tpu.memory_space<vmem>>, %arg3: memref<1x128xf32, #tpu.memory_space<vmem>>, %arg4: memref<1152x128xf32, #tpu.memory_space<vmem>>, %arg5: memref<1x128xf32, #tpu.memory_space<vmem>>, %arg6: memref<1152x128xf32, #tpu.memory_space<vmem>>, %arg7: memref<1x128xf32, #tpu.memory_space<vmem>>, %arg8: memref<1152x128xf32, #tpu.memory_space<vmem>>, %arg9: memref<1x128xf32, #tpu.memory_space<vmem>>, %arg10: memref<1x16x128xf32, #tpu.memory_space<vmem>>) attributes {dimension_semantics = [#tpu.dimension_semantics<parallel>], iteration_bounds = array<i64: 2>, scalar_prefetch = 0 : i64, scratch_operands = 0 : i64, tpu.core_type = #tpu.core_type<tc>, window_params = [{transform_indices = @transform_0, window_bounds = array<i64: 1, 16, 64>}, {pipeline_mode = #tpu.pipeline_mode<synchronous>, transform_indices = @transform_1, window_bounds = array<i64: 576, 128>}, {pipeline_mode = #tpu.pipeline_mode<synchronous>, transform_indices = @transform_2, window_bounds = array<i64: 1, 128>}, {pipeline_mode = #tpu.pipeline_mode<synchronous>, transform_indices = @transform_3, window_bounds = array<i64: 1152, 128>}, {pipeline_mode = #tpu.pipeline_mode<synchronous>, transform_indices = @transform_4, window_bounds = array<i64: 1, 128>}, {pipeline_mode = #tpu.pipeline_mode<synchronous>, transform_indices = @transform_5, window_bounds = array<i64: 1152, 128>}, {pipeline_mode = #tpu.pipeline_mode<synchronous>, transform_indices = @transform_6, window_bounds = array<i64: 1, 128>}, {pipeline_mode = #tpu.pipeline_mode<synchronous>, transform_indices = @transform_7, window_bounds = array<i64: 1152, 128>}, {pipeline_mode = #tpu.pipeline_mode<synchronous>, transform_indices = @transform_8, window_bounds = array<i64: 1, 128>}, {transform_indices = @transform_9, window_bounds = array<i64: 1, 16, 128>}]} {
    %c0 = arith.constant 0 : index
    %c0_0 = arith.constant 0 : index
    %c0_1 = arith.constant 0 : index
    %0 = vector.load %arg1[%c0, %c0_0, %c0_1] : memref<1x16x64xf32, #tpu.memory_space<vmem>>, vector<1x16x64xf32>
    %1 = vector.shape_cast %0 : vector<1x16x64xf32> to vector<16x64xf32>
    %cst = arith.constant 0.000000e+00 : f32
    %2 = vector.broadcast %cst : f32 to vector<16x4xf32>
    %cst_2 = arith.constant 0.000000e+00 : f32
    %3 = vector.broadcast %cst_2 : f32 to vector<1x72xf32>
    %4 = tpu.concatenate %2, %1, %2 in 1 : vector<16x4xf32>, vector<16x64xf32>, vector<16x4xf32> -> vector<16x72xf32>
    %5 = tpu.concatenate %3, %4, %3 in 0 : vector<1x72xf32>, vector<16x72xf32>, vector<1x72xf32> -> vector<18x72xf32>
    %6 = vector.extract_strided_slice %5 {offsets = [0, 0], sizes = [16, 64], strides = [1, 1]} : vector<18x72xf32> to vector<16x64xf32>
    %7 = vector.extract_strided_slice %5 {offsets = [0, 4], sizes = [16, 64], strides = [1, 1]} : vector<18x72xf32> to vector<16x64xf32>
    %8 = vector.extract_strided_slice %5 {offsets = [0, 8], sizes = [16, 64], strides = [1, 1]} : vector<18x72xf32> to vector<16x64xf32>
    %9 = vector.extract_strided_slice %5 {offsets = [1, 0], sizes = [16, 64], strides = [1, 1]} : vector<18x72xf32> to vector<16x64xf32>
    %10 = vector.extract_strided_slice %5 {offsets = [1, 4], sizes = [16, 64], strides = [1, 1]} : vector<18x72xf32> to vector<16x64xf32>
    %11 = vector.extract_strided_slice %5 {offsets = [1, 8], sizes = [16, 64], strides = [1, 1]} : vector<18x72xf32> to vector<16x64xf32>
    %12 = vector.extract_strided_slice %5 {offsets = [2, 0], sizes = [16, 64], strides = [1, 1]} : vector<18x72xf32> to vector<16x64xf32>
    %13 = vector.extract_strided_slice %5 {offsets = [2, 4], sizes = [16, 64], strides = [1, 1]} : vector<18x72xf32> to vector<16x64xf32>
    %14 = vector.extract_strided_slice %5 {offsets = [2, 8], sizes = [16, 64], strides = [1, 1]} : vector<18x72xf32> to vector<16x64xf32>
    %15 = tpu.concatenate %6, %7, %8, %9, %10, %11, %12, %13, %14 in 1 : vector<16x64xf32>, vector<16x64xf32>, vector<16x64xf32>, vector<16x64xf32>, vector<16x64xf32>, vector<16x64xf32>, vector<16x64xf32>, vector<16x64xf32>, vector<16x64xf32> -> vector<16x576xf32>
    %c0_3 = arith.constant 0 : index
    %c0_4 = arith.constant 0 : index
    %16 = vector.load %arg2[%c0_3, %c0_4] : memref<576x128xf32, #tpu.memory_space<vmem>>, vector<576x128xf32>
    %cst_5 = arith.constant dense<0.000000e+00> : vector<16x128xf32>
    %17 = tpu.matmul %15, %16, %cst_5 {dimension_numbers = #tpu.dot_dimension_numbers<[1], [0], [0], [1], [0, 0, 1, 1], [], []>} : vector<16x576xf32>, vector<576x128xf32>, vector<16x128xf32> -> vector<16x128xf32>
    %c0_6 = arith.constant 0 : index
    %c0_7 = arith.constant 0 : index
    %18 = vector.load %arg3[%c0_6, %c0_7] : memref<1x128xf32, #tpu.memory_space<vmem>>, vector<1x128xf32>
    %19 = vector.broadcast %18 : vector<1x128xf32> to vector<16x128xf32>
    %20 = arith.addf %17, %19 : vector<16x128xf32>
    %cst_8 = arith.constant 0.000000e+00 : f32
    %21 = vector.broadcast %cst_8 : f32 to vector<16x128xf32>
    %22 = arith.maximumf %20, %21 : vector<16x128xf32>
    %cst_9 = arith.constant 0.000000e+00 : f32
    %23 = vector.broadcast %cst_9 : f32 to vector<16x8xf32>
    %cst_10 = arith.constant 0.000000e+00 : f32
    %24 = vector.broadcast %cst_10 : f32 to vector<1x144xf32>
    %25 = tpu.concatenate %23, %22, %23 in 1 : vector<16x8xf32>, vector<16x128xf32>, vector<16x8xf32> -> vector<16x144xf32>
    %26 = tpu.concatenate %24, %25, %24 in 0 : vector<1x144xf32>, vector<16x144xf32>, vector<1x144xf32> -> vector<18x144xf32>
    %27 = vector.extract_strided_slice %26 {offsets = [0, 0], sizes = [16, 128], strides = [1, 1]} : vector<18x144xf32> to vector<16x128xf32>
    %28 = vector.extract_strided_slice %26 {offsets = [0, 8], sizes = [16, 128], strides = [1, 1]} : vector<18x144xf32> to vector<16x128xf32>
    %29 = vector.extract_strided_slice %26 {offsets = [0, 16], sizes = [16, 128], strides = [1, 1]} : vector<18x144xf32> to vector<16x128xf32>
    %30 = vector.extract_strided_slice %26 {offsets = [1, 0], sizes = [16, 128], strides = [1, 1]} : vector<18x144xf32> to vector<16x128xf32>
    %31 = vector.extract_strided_slice %26 {offsets = [1, 8], sizes = [16, 128], strides = [1, 1]} : vector<18x144xf32> to vector<16x128xf32>
    %32 = vector.extract_strided_slice %26 {offsets = [1, 16], sizes = [16, 128], strides = [1, 1]} : vector<18x144xf32> to vector<16x128xf32>
    %33 = vector.extract_strided_slice %26 {offsets = [2, 0], sizes = [16, 128], strides = [1, 1]} : vector<18x144xf32> to vector<16x128xf32>
    %34 = vector.extract_strided_slice %26 {offsets = [2, 8], sizes = [16, 128], strides = [1, 1]} : vector<18x144xf32> to vector<16x128xf32>
    %35 = vector.extract_strided_slice %26 {offsets = [2, 16], sizes = [16, 128], strides = [1, 1]} : vector<18x144xf32> to vector<16x128xf32>
    %36 = tpu.concatenate %27, %28, %29, %30, %31, %32, %33, %34, %35 in 1 : vector<16x128xf32>, vector<16x128xf32>, vector<16x128xf32>, vector<16x128xf32>, vector<16x128xf32>, vector<16x128xf32>, vector<16x128xf32>, vector<16x128xf32>, vector<16x128xf32> -> vector<16x1152xf32>
    %c0_11 = arith.constant 0 : index
    %c0_12 = arith.constant 0 : index
    %37 = vector.load %arg4[%c0_11, %c0_12] : memref<1152x128xf32, #tpu.memory_space<vmem>>, vector<1152x128xf32>
    %cst_13 = arith.constant dense<0.000000e+00> : vector<16x128xf32>
    %38 = tpu.matmul %36, %37, %cst_13 {dimension_numbers = #tpu.dot_dimension_numbers<[1], [0], [0], [1], [0, 0, 1, 1], [], []>} : vector<16x1152xf32>, vector<1152x128xf32>, vector<16x128xf32> -> vector<16x128xf32>
    %c0_14 = arith.constant 0 : index
    %c0_15 = arith.constant 0 : index
    %39 = vector.load %arg5[%c0_14, %c0_15] : memref<1x128xf32, #tpu.memory_space<vmem>>, vector<1x128xf32>
    %40 = vector.broadcast %39 : vector<1x128xf32> to vector<16x128xf32>
    %41 = arith.addf %38, %40 : vector<16x128xf32>
    %cst_16 = arith.constant 0.000000e+00 : f32
    %42 = vector.broadcast %cst_16 : f32 to vector<16x128xf32>
    %43 = arith.maximumf %41, %42 : vector<16x128xf32>
    %cst_17 = arith.constant 0.000000e+00 : f32
    %44 = vector.broadcast %cst_17 : f32 to vector<16x8xf32>
    %cst_18 = arith.constant 0.000000e+00 : f32
    %45 = vector.broadcast %cst_18 : f32 to vector<1x144xf32>
    %46 = tpu.concatenate %44, %43, %44 in 1 : vector<16x8xf32>, vector<16x128xf32>, vector<16x8xf32> -> vector<16x144xf32>
    %47 = tpu.concatenate %45, %46, %45 in 0 : vector<1x144xf32>, vector<16x144xf32>, vector<1x144xf32> -> vector<18x144xf32>
    %48 = vector.extract_strided_slice %47 {offsets = [0, 0], sizes = [16, 128], strides = [1, 1]} : vector<18x144xf32> to vector<16x128xf32>
    %49 = vector.extract_strided_slice %47 {offsets = [0, 8], sizes = [16, 128], strides = [1, 1]} : vector<18x144xf32> to vector<16x128xf32>
    %50 = vector.extract_strided_slice %47 {offsets = [0, 16], sizes = [16, 128], strides = [1, 1]} : vector<18x144xf32> to vector<16x128xf32>
    %51 = vector.extract_strided_slice %47 {offsets = [1, 0], sizes = [16, 128], strides = [1, 1]} : vector<18x144xf32> to vector<16x128xf32>
    %52 = vector.extract_strided_slice %47 {offsets = [1, 8], sizes = [16, 128], strides = [1, 1]} : vector<18x144xf32> to vector<16x128xf32>
    %53 = vector.extract_strided_slice %47 {offsets = [1, 16], sizes = [16, 128], strides = [1, 1]} : vector<18x144xf32> to vector<16x128xf32>
    %54 = vector.extract_strided_slice %47 {offsets = [2, 0], sizes = [16, 128], strides = [1, 1]} : vector<18x144xf32> to vector<16x128xf32>
    %55 = vector.extract_strided_slice %47 {offsets = [2, 8], sizes = [16, 128], strides = [1, 1]} : vector<18x144xf32> to vector<16x128xf32>
    %56 = vector.extract_strided_slice %47 {offsets = [2, 16], sizes = [16, 128], strides = [1, 1]} : vector<18x144xf32> to vector<16x128xf32>
    %57 = tpu.concatenate %48, %49, %50, %51, %52, %53, %54, %55, %56 in 1 : vector<16x128xf32>, vector<16x128xf32>, vector<16x128xf32>, vector<16x128xf32>, vector<16x128xf32>, vector<16x128xf32>, vector<16x128xf32>, vector<16x128xf32>, vector<16x128xf32> -> vector<16x1152xf32>
    %c0_19 = arith.constant 0 : index
    %c0_20 = arith.constant 0 : index
    %58 = vector.load %arg6[%c0_19, %c0_20] : memref<1152x128xf32, #tpu.memory_space<vmem>>, vector<1152x128xf32>
    %cst_21 = arith.constant dense<0.000000e+00> : vector<16x128xf32>
    %59 = tpu.matmul %57, %58, %cst_21 {dimension_numbers = #tpu.dot_dimension_numbers<[1], [0], [0], [1], [0, 0, 1, 1], [], []>} : vector<16x1152xf32>, vector<1152x128xf32>, vector<16x128xf32> -> vector<16x128xf32>
    %c0_22 = arith.constant 0 : index
    %c0_23 = arith.constant 0 : index
    %60 = vector.load %arg7[%c0_22, %c0_23] : memref<1x128xf32, #tpu.memory_space<vmem>>, vector<1x128xf32>
    %61 = vector.broadcast %60 : vector<1x128xf32> to vector<16x128xf32>
    %62 = arith.addf %59, %61 : vector<16x128xf32>
    %cst_24 = arith.constant 0.000000e+00 : f32
    %63 = vector.broadcast %cst_24 : f32 to vector<16x128xf32>
    %64 = arith.maximumf %62, %63 : vector<16x128xf32>
    %65 = arith.addf %64, %22 : vector<16x128xf32>
    %cst_25 = arith.constant 0.000000e+00 : f32
    %66 = vector.broadcast %cst_25 : f32 to vector<16x8xf32>
    %cst_26 = arith.constant 0.000000e+00 : f32
    %67 = vector.broadcast %cst_26 : f32 to vector<1x144xf32>
    %68 = tpu.concatenate %66, %65, %66 in 1 : vector<16x8xf32>, vector<16x128xf32>, vector<16x8xf32> -> vector<16x144xf32>
    %69 = tpu.concatenate %67, %68, %67 in 0 : vector<1x144xf32>, vector<16x144xf32>, vector<1x144xf32> -> vector<18x144xf32>
    %70 = vector.extract_strided_slice %69 {offsets = [0, 0], sizes = [16, 128], strides = [1, 1]} : vector<18x144xf32> to vector<16x128xf32>
    %71 = vector.extract_strided_slice %69 {offsets = [0, 8], sizes = [16, 128], strides = [1, 1]} : vector<18x144xf32> to vector<16x128xf32>
    %72 = vector.extract_strided_slice %69 {offsets = [0, 16], sizes = [16, 128], strides = [1, 1]} : vector<18x144xf32> to vector<16x128xf32>
    %73 = vector.extract_strided_slice %69 {offsets = [1, 0], sizes = [16, 128], strides = [1, 1]} : vector<18x144xf32> to vector<16x128xf32>
    %74 = vector.extract_strided_slice %69 {offsets = [1, 8], sizes = [16, 128], strides = [1, 1]} : vector<18x144xf32> to vector<16x128xf32>
    %75 = vector.extract_strided_slice %69 {offsets = [1, 16], sizes = [16, 128], strides = [1, 1]} : vector<18x144xf32> to vector<16x128xf32>
    %76 = vector.extract_strided_slice %69 {offsets = [2, 0], sizes = [16, 128], strides = [1, 1]} : vector<18x144xf32> to vector<16x128xf32>
    %77 = vector.extract_strided_slice %69 {offsets = [2, 8], sizes = [16, 128], strides = [1, 1]} : vector<18x144xf32> to vector<16x128xf32>
    %78 = vector.extract_strided_slice %69 {offsets = [2, 16], sizes = [16, 128], strides = [1, 1]} : vector<18x144xf32> to vector<16x128xf32>
    %79 = tpu.concatenate %70, %71, %72, %73, %74, %75, %76, %77, %78 in 1 : vector<16x128xf32>, vector<16x128xf32>, vector<16x128xf32>, vector<16x128xf32>, vector<16x128xf32>, vector<16x128xf32>, vector<16x128xf32>, vector<16x128xf32>, vector<16x128xf32> -> vector<16x1152xf32>
    %c0_27 = arith.constant 0 : index
    %c0_28 = arith.constant 0 : index
    %80 = vector.load %arg8[%c0_27, %c0_28] : memref<1152x128xf32, #tpu.memory_space<vmem>>, vector<1152x128xf32>
    %cst_29 = arith.constant dense<0.000000e+00> : vector<16x128xf32>
    %81 = tpu.matmul %79, %80, %cst_29 {dimension_numbers = #tpu.dot_dimension_numbers<[1], [0], [0], [1], [0, 0, 1, 1], [], []>} : vector<16x1152xf32>, vector<1152x128xf32>, vector<16x128xf32> -> vector<16x128xf32>
    %c0_30 = arith.constant 0 : index
    %c0_31 = arith.constant 0 : index
    %82 = vector.load %arg9[%c0_30, %c0_31] : memref<1x128xf32, #tpu.memory_space<vmem>>, vector<1x128xf32>
    %83 = vector.broadcast %82 : vector<1x128xf32> to vector<16x128xf32>
    %84 = arith.addf %81, %83 : vector<16x128xf32>
    %c0_32 = arith.constant 0 : index
    %c0_33 = arith.constant 0 : index
    %c0_34 = arith.constant 0 : index
    %85 = vector.load %arg10[%c0_32, %c0_33, %c0_34] : memref<1x16x128xf32, #tpu.memory_space<vmem>>, vector<1x16x128xf32>
    %86 = vector.shape_cast %85 : vector<1x16x128xf32> to vector<16x128xf32>
    %87 = vector.shape_cast %84 : vector<16x128xf32> to vector<1x16x128xf32>
    tpu.vector_store %arg10[%c0_32, %c0_33, %c0_34], %87 {strides = array<i32>} : memref<1x16x128xf32, #tpu.memory_space<vmem>>, vector<1x16x128xf32>,
    return
  }
  func.func @transform_0(%arg0: i32) -> (i32, i32, i32) {
    %c0_i32 = arith.constant 0 : i32
    %c0_i32_0 = arith.constant 0 : i32
    %c0_i32_1 = arith.constant 0 : i32
    return %arg0, %c0_i32, %c0_i32_0 : i32, i32, i32
  }
  func.func @transform_1(%arg0: i32) -> (i32, i32) {
    %c0_i32 = arith.constant 0 : i32
    %c0_i32_0 = arith.constant 0 : i32
    %c0_i32_1 = arith.constant 0 : i32
    return %c0_i32, %c0_i32_0 : i32, i32
  }
  func.func @transform_2(%arg0: i32) -> (i32, i32) {
    %c0_i32 = arith.constant 0 : i32
    %c0_i32_0 = arith.constant 0 : i32
    %c0_i32_1 = arith.constant 0 : i32
    return %c0_i32, %c0_i32_0 : i32, i32
  }
  func.func @transform_3(%arg0: i32) -> (i32, i32) {
    %c0_i32 = arith.constant 0 : i32
    %c0_i32_0 = arith.constant 0 : i32
    %c0_i32_1 = arith.constant 0 : i32
    return %c0_i32, %c0_i32_0 : i32, i32
  }
  func.func @transform_4(%arg0: i32) -> (i32, i32) {
    %c0_i32 = arith.constant 0 : i32
    %c0_i32_0 = arith.constant 0 : i32
    %c0_i32_1 = arith.constant 0 : i32
    return %c0_i32, %c0_i32_0 : i32, i32
  }
  func.func @transform_5(%arg0: i32) -> (i32, i32) {
    %c0_i32 = arith.constant 0 : i32
    %c0_i32_0 = arith.constant 0 : i32
    %c0_i32_1 = arith.constant 0 : i32
    return %c0_i32, %c0_i32_0 : i32, i32
  }
  func.func @transform_6(%arg0: i32) -> (i32, i32) {
    %c0_i32 = arith.constant 0 : i32
    %c0_i32_0 = arith.constant 0 : i32
    %c0_i32_1 = arith.constant 0 : i32
    return %c0_i32, %c0_i32_0 : i32, i32
  }
  func.func @transform_7(%arg0: i32) -> (i32, i32) {
    %c0_i32 = arith.constant 0 : i32
    %c0_i32_0 = arith.constant 0 : i32
    %c0_i32_1 = arith.constant 0 : i32
    return %c0_i32, %c0_i32_0 : i32, i32
  }
  func.func @transform_8(%arg0: i32) -> (i32, i32) {
    %c0_i32 = arith.constant 0 : i32
    %c0_i32_0 = arith.constant 0 : i32
    %c0_i32_1 = arith.constant 0 : i32
    return %c0_i32, %c0_i32_0 : i32, i32
  }
  func.func @transform_9(%arg0: i32) -> (i32, i32, i32) {
    %c0_i32 = arith.constant 0 : i32
    %c0_i32_0 = arith.constant 0 : i32
    %c0_i32_1 = arith.constant 0 : i32
    return %arg0, %c0_i32, %c0_i32_0 : i32, i32, i32
  }
}

</mosaic_0001>

<bundles_post_ra>
// kernel: tpu_custom_call.1
= control target key start
LH: loop header
LB: loop body
LE: loop exit
PB: predicated region body
PF: predicated region fallthrough
CT: control target
= control target key end

     0   :  { %s5384_s0 = inlined_call_operand.hbm [shape: f32[2,16,64], index: 0, kind: input, shape index: {}]   ;;  %s5385_s1 = inlined_call_operand.hbm [shape: f32[576,128], index: 1, kind: input, shape index: {}]   ;;  %s5386_s2 = inlined_call_operand.vmem [shape: f32[1,128], index: 2, kind: input, shape index: {}]   ;;  %s5387_s3 = inlined_call_operand.hbm [shape: f32[1152,128], index: 3, kind: input, shape index: {}]   ;;  %s5388_s4 = inlined_call_operand.vmem [shape: f32[1,128], index: 4, kind: input, shape index: {}]   ;;  %s5389_s5 = inlined_call_operand.hbm [shape: f32[1152,128], index: 5, kind: input, shape index: {}]   ;;  %s5390_s6 = inlined_call_operand.vmem [shape: f32[1,128], index: 6, kind: input, shape index: {}]   ;;  %s5391_s7 = inlined_call_operand.hbm [shape: f32[1152,128], index: 7, kind: input, shape index: {}]   ;;  %s5392_s8 = inlined_call_operand.vmem [shape: f32[1,128], index: 8, kind: input, shape index: {}]   ;;  %s5393_s9 = inlined_call_operand.hbm [shape: f32[2,16,128], index: 9, kind: output, shape index: {}]  }
   0x1   :  { %5400 = sst [smem:[#allocation18_spill]] %s5393_s9 }
   0x2   :  { %14 = vsyncpa [#allocation3], 0 }
   0x3   :  { %16 = vsyncpa [#allocation3 + $0x1], 0 }
   0x4   :  { %17 = vsyncpa [#allocation6], 0 }
   0x5   :  { %18 = vsyncpa [#allocation9], 0 }
   0x6   :  { %19 = vsyncpa [#allocation4], 0 }
   0x7   :  { %21 = vsyncpa [#allocation4 + $0x1], 0  ;;  %s4802_s30 = smov 0   ;;  %s4804_s10 = smov 0  }
   0x8   :  { %s4806_s11 = smov 0   ;;  %s4808_s12 = smov 0  }
   0x9 LB: > { %5401 = sst [smem:[#allocation16_spill]] %s4721_s30  ;;  %s4823_s13 = sadd.s32 4294967295, %s4733_s12   ;;  %s4733_s12 = sphi %s4808_s12, %s5427_s12   ;;  %s4729_s11 = sphi %s4806_s11, %s5426_s11   ;;  %s4725_s10 = sphi %s4804_s10, %s5425_s10   ;;  %s4721_s30 = sphi %s4802_s30, %s5424_s30  }
   0xa   : > { %s2918_s14 = sadd.s32 4294967294, %s4733_s12   ;;  %p47_p0 = scmp.ne.s32.totalorder %s4725_s10, %s4721_s30 }
   0xb   : > { %p5394_p1 = scmp.eq.s32.totalorder %s4823_s13, 0  ;;  %p245_p3 = scmp.eq.s32.totalorder %s2918_s14, 1 }
   0xc   : > { %p2919_p5 = scmp.ge.s32.totalorder %s4733_s12, 1  ;;  %p252_p7 = scmp.lt.s32.totalorder %s4733_s12, 3 }
   0xd   : > { %p4832_p4 = por %p5394_p1, %p47_p0  ;;  %p4837_p6 = por %p245_p3, %p47_p0 }
   0xe   : > { %p4842_p8 = pnand %p2919_p5, %p252_p7  ;;  %s4735_s18 = smov [#allocation5]  }
   0xf   : > { %s5402_s15 = scalar_select %p4832_p4, 1, 0 }
  0x10   : > { %s5403_s16 = scalar_select %p4837_p6, 1, 0 }
  0x11   : > { %s5405_s17 = scalar_select %p4842_p8, 1, 0 }
  0x12   : > { %5404 = sst [smem:[#allocation17_spill]] %s5403_s16  ;;  %s264_s19 = sshll.u32 %s4735_s18, 4  ;;  %s4846_s19 = int_to_ptr.vmem [resolvable:$true] %s264_s19 }
  0x13   : > { %p4254_p9 = pneg %p4842_p8  ;;  %s4736_s21 = smov [#allocation8]  }
  0x14   : > { %s296_s22 = sshll.u32 %s4736_s21, 4  ;;  %s4737_s23 = smov [#allocation7]   ;;  %s4857_s22 = int_to_ptr.vmem [resolvable:$true] %s296_s22 }
  0x15   : > { %p4853_p11 = pnand %p4254_p9, %p5394_p1  ;;  %s4859_s24 = sshll.u32 %s4737_s23, 4  ;;  %s281_s24 = int_to_ptr.vmem [resolvable:$true] %s4859_s24 }
  0x16   : > { %s4517_s27 = scalar_lea.hbm %s5385_s1, 9216 }
  0x17   : > { %p4518_p12 = scmp.ne.s32.totalorder %s5385_s1, %s4517_s27  ;;  %p4869_p13 = pneg %p4853_p11 }
  0x18   : > { %p4524_p5 = scmp.lt.u32.totalorder %s4517_s27, %s5385_s1 }
  0x19   : > { %p4520_p0 = pnand %p4869_p13, %p4518_p12 }
  0x1b   : > { %p4521_p3 = pneg %p4520_p0 }
  0x1d   : > { %p4526_p7 = pnand %p4524_p5, %p4521_p3 }
  0x1f   : > { %4529 = shalt.err (!%p4526_p7)
}
  0x20   : > { %s4530_s23 = scalar_lea.vmem %s4846_s19, 9216  ;;  %p4538_p2 = scmp.lt.s32.totalorder %s4846_s19, %s4846_s19 }
  0x21   : > { %p4531_p9 = scmp.ne.s32.totalorder %s4846_s19, %s4530_s23  ;;  %p4539_p6 = scmp.lt.s32.totalorder %s4530_s23, %s4530_s23 }
  0x23   : > { %p4533_p10 = pnand %p4531_p9, %p4869_p13  ;;  %p4540_p12 = por %p4539_p6, %p4538_p2 }
  0x25   : > { %p4534_p1 = pneg %p4533_p10 }
  0x27   : > { %p4541_p0 = pnand %p4540_p12, %p4534_p1 }
  0x29   : > { %4544 = shalt.err (!%p4541_p0)
}
  0x2a   : > { %s4738_s25 = smov 128   ;;  %s4739_s26 = smov 8  }
  0x2b   : > { %4257 = dma.hbm_to_vmem [thread:$0]  (!%p4853_p11), %s5385_s1, 9216, %s4846_s19, [#allocation6], %s4738_s25, %s4738_s25, %s4739_s26  }
  0x2c   : > { %s4545_s21 = scalar_lea.hbm %s5389_s5, 18432 }
  0x2d   : > { %p4546_p1 = scmp.ne.s32.totalorder %s5389_s5, %s4545_s21  ;;  %p4552_p10 = scmp.lt.u32.totalorder %s4545_s21, %s5389_s5 }
  0x2f   : > { %p4548_p2 = pnand %p4546_p1, %p4869_p13 }
  0x31   : > { %p4549_p6 = pneg %p4548_p2 }
  0x33   : > { %p4554_p3 = pnand %p4552_p10, %p4549_p6 }
  0x35   : > { %4557 = shalt.err (!%p4554_p3)
}
  0x36   : > { %s4558_s19 = scalar_lea.vmem %s4857_s22, 18432  ;;  %p4566_p12 = scmp.lt.s32.totalorder %s4857_s22, %s4857_s22 }
  0x37   : > { %p4559_p5 = scmp.ne.s32.totalorder %s4857_s22, %s4558_s19  ;;  %p4567_p0 = scmp.lt.s32.totalorder %s4558_s19, %s4558_s19 }
  0x39   : > { %p4561_p7 = pnand %p4559_p5, %p4869_p13  ;;  %p4568_p1 = por %p4567_p0, %p4566_p12 }
  0x3b   : > { %p4562_p9 = pneg %p4561_p7 }
  0x3d   : > { %p4569_p2 = pnand %p4568_p1, %p4562_p9 }
  0x3f   : > { %4572 = shalt.err (!%p4569_p2)
}
  0x40   : > { %4263 = dma.hbm_to_vmem [thread:$0]  (!%p4853_p11), %s5389_s5, 18432, %s4857_s22, [#allocation9], %s4738_s25, %s4738_s25, %s4739_s26  }
  0x41   : > { %s4573_s28 = scalar_lea.hbm %s5387_s3, 18432 }
  0x42   : > { %p4574_p6 = scmp.ne.s32.totalorder %s5387_s3, %s4573_s28  ;;  %p4580_p5 = scmp.lt.u32.totalorder %s4573_s28, %s5387_s3 }
  0x44   : > { %p4576_p10 = pnand %p4574_p6, %p4869_p13 }
  0x46   : > { %p4577_p3 = pneg %p4576_p10 }
  0x48   : > { %p4582_p7 = pnand %p4580_p5, %p4577_p3 }
  0x4a   : > { %4585 = shalt.err (!%p4582_p7)
}
  0x4b   : > { %s4586_s19 = scalar_lea.vmem %s281_s24, 18432  ;;  %p4594_p1 = scmp.lt.s32.totalorder %s281_s24, %s281_s24 }
  0x4c   : > { %p4587_p9 = scmp.ne.s32.totalorder %s281_s24, %s4586_s19  ;;  %p4595_p2 = scmp.lt.s32.totalorder %s4586_s19, %s4586_s19 }
  0x4e   : > { %p4589_p12 = pnand %p4587_p9, %p4869_p13  ;;  %p4596_p4 = por %p4595_p2, %p4594_p1 }
  0x50   : > { %p4590_p0 = pneg %p4589_p12 }
  0x52   : > { %p4597_p8 = pnand %p4596_p4, %p4590_p0 }
  0x54   : > { %4600 = shalt.err (!%p4597_p8)
}
  0x55   : > { %4260 = dma.hbm_to_vmem [thread:$0]  (!%p4853_p11), %s5387_s3, 18432, %s281_s24, [#allocation6], %s4738_s25, %s4738_s25, %s4739_s26  }
  0x56   : > { %s4740_s30 = smov [#allocation10]   ;;  %s4601_s29 = scalar_lea.hbm %s5391_s7, 18432 }
  0x57   : > { %s312_s16 = sshll.u32 %s4740_s30, 4  ;;  %p4602_p4 = scmp.ne.s32.totalorder %s5391_s7, %s4601_s29  ;;  %s313_s16 = int_to_ptr.vmem [resolvable:$true] %s312_s16 }
  0x58   : > { %p4608_p10 = scmp.lt.u32.totalorder %s4601_s29, %s5391_s7 }
  0x59   : > { %p4604_p8 = pnand %p4602_p4, %p4869_p13 }
  0x5b   : > { %p4605_p6 = pneg %p4604_p8 }
  0x5d   : > { %p4610_p3 = pnand %p4608_p10, %p4605_p6 }
  0x5f   : > { %4613 = shalt.err (!%p4610_p3)
}
  0x60   : > { %s4614_s24 = scalar_lea.vmem %s313_s16, 18432  ;;  %p4622_p12 = scmp.lt.s32.totalorder %s313_s16, %s313_s16 }
  0x61   : > { %p4615_p5 = scmp.ne.s32.totalorder %s313_s16, %s4614_s24  ;;  %p4623_p0 = scmp.lt.s32.totalorder %s4614_s24, %s4614_s24 }
  0x63   : > { %p4617_p7 = pnand %p4615_p5, %p4869_p13  ;;  %p4624_p1 = por %p4623_p0, %p4622_p12 }
  0x65   : > { %p4618_p9 = pneg %p4617_p7 }
  0x67   : > { %p4625_p2 = pnand %p4624_p1, %p4618_p9 }
  0x69   : > { %4628 = shalt.err (!%p4625_p2)
}
  0x6a   : > { %4266 = dma.hbm_to_vmem [thread:$0]  (!%p4853_p11), %s5391_s7, 18432, %s313_s16, [#allocation9], %s4738_s25, %s4738_s25, %s4739_s26  }
  0x6b   : > { %s4963_s14 = sadd.s32 1, %s4733_s12   ;;  %s34_s20 = sadd.s32 1, %s4729_s11 }
  0x6c   : > { %s31_s30 = ssub.s32 %s4733_s12, %s4963_s14  ;;  %p41_p13 = scmp.ne.s32.totalorder %s4729_s11, %s4725_s10 }
  0x6d   : > { %p32_p4 = scmp.eq.s32.totalorder %s31_s30, 0  ;;  %p42_p8 = scmp.eq.s32.totalorder %s4733_s12, 0 }
  0x6e   : > { %p5408_p6 = scmp.eq.s32.totalorder %s4823_s13, 1  ;;  %p4279_p3 = scmp.lt.s32.totalorder %s4733_s12, 2 }
  0x6f   : > { %s4979_s28 = scalar_select %p32_p4, %s4729_s11, %s34_s20  }
  0x70   : > { %p4973_p10 = por %p5408_p6, %p41_p13  ;;  %p43_p5 = por %p42_p8, %p41_p13 }
  0x71   : > { %s329_s29 = sand.u32 1, %s4729_s11   ;;  %s2952_s16 = sshll.u32 %s4733_s12, 8 }
  0x72   : > { %s2925_s18 = sshll.u32 %s329_s29, 4  ;;  %s4986_s19 = scalar_lea.hbm %s5384_s0, %s2952_s16 }
  0x73   : > { %s333_s24 = scalar_lea.vmem [#allocation2], %s2925_s18  ;;  %p4990_p11 = pnand %p4279_p3, %p43_p5 }
  0x74   : > { %s340_s22 = sshll.u32 %s333_s24, 4  ;;  %s4994_s20 = scalar_lea.sflag [#allocation3], %s329_s29  ;;  %s4988_s22 = int_to_ptr.vmem [resolvable:$true] %s340_s22 }
  0x75   : > { %s4629_s30 = scalar_lea.hbm %s4986_s19, 256  ;;  %p4631_p9 = pneg %p4990_p11 }
  0x76   : > { %p4630_p7 = scmp.ne.s32.totalorder %s4986_s19, %s4629_s30  ;;  %s4634_s21 = scalar_lea.hbm %s5384_s0, 512 }
  0x77   : > { %p4635_p1 = scmp.lt.u32.totalorder %s4986_s19, %s5384_s0  ;;  %p4636_p2 = scmp.lt.u32.totalorder %s4634_s21, %s4629_s30 }
  0x78   : > { %p4632_p12 = pnand %p4631_p9, %p4630_p7  ;;  %p4638_p4 = scmp.lt.u32.totalorder %s4629_s30, %s4986_s19 }
  0x79   : > { %p4637_p13 = por %p4636_p2, %p4635_p1 }
  0x7a   : > { %p4633_p0 = pneg %p4632_p12 }
  0x7b   : > { %p4639_p8 = por %p4638_p4, %p4637_p13 }
  0x7d   : > { %p4640_p6 = pnand %p4639_p8, %p4633_p0 }
  0x7f   : > { %4643 = shalt.err (!%p4640_p6)
}
  0x80   : > { %s4644_s29 = scalar_lea.vmem %s4988_s22, 256  ;;  %s4741_s18 = smov [#allocation2]  }
  0x81   : > { %p4645_p3 = scmp.ne.s32.totalorder %s4988_s22, %s4644_s29  ;;  %s4649_s16 = sshll.u32 %s4741_s18, 4  ;;  %s4650_s16 = int_to_ptr.vmem [resolvable:$false] %s4649_s16 }
  0x82   : > { %s4651_s23 = scalar_lea.vmem %s4650_s16, 512  ;;  %p4652_p12 = scmp.lt.s32.totalorder %s4988_s22, %s4650_s16 }
  0x83   : > { %p4647_p5 = pnand %p4645_p3, %p4631_p9  ;;  %p4653_p1 = scmp.lt.s32.totalorder %s4651_s23, %s4644_s29 }
  0x85   : > { %p4648_p7 = pneg %p4647_p5  ;;  %p4654_p2 = por %p4653_p1, %p4652_p12 }
  0x87   : > { %p4655_p13 = pnand %p4654_p2, %p4648_p7 }
  0x89   : > { %4658 = shalt.err (!%p4655_p13)
}
  0x8a   : > { %4270 = dma.hbm_to_vmem [thread:$0]  (!%p4990_p11), %s4986_s19, 256, %s4988_s22, %s4994_s20, %s4738_s25, %s4738_s25, %s4739_s26  }
  0x8b   : > { %p5411_p9 = scmp.ne.s32.totalorder %s5405_s17, 0 }
  0x8c   : > { %s5028_s30 = sand.u32 (!%p5411_p9), 1, %s4725_s10   ;;  %p5412_p0 = scmp.ne.s32.totalorder (!%p5411_p9), %s5402_s15, 0 }
  0x8d   : > { %352 = sbr.rel (%p5411_p9) target bundleno = 2212 (0x8a4), region = 56  ;;  %s2929_s21 = sshll.u32 (!%p5411_p9), %s5028_s30, 4 }
  0x8e   : > { %s355_s24 = scalar_lea.sflag (!%p5411_p9), [#allocation3], %s5028_s30  ;;  %s358_s9 = scalar_lea.vmem (!%p5411_p9), [#allocation2], %s2929_s21 }
  0x94   : > { %4704 = dma.done.wait (%p5412_p0), %s355_s24, 256  }
  0x95   : > { %4706 = vsyncadd (%p5412_p0), %s355_s24, 4294967040  ;;  %p5413_p11 = scmp.eq.s32.totalorder %s4823_s13, 0 }
  0x97   : > { %4708 = dma.done.wait (%p5413_p11), [#allocation6], 27648   ;;  %p5414_p4 = pmov %p5413_p11 }
  0x99   : > { %4710 = vsyncadd (%p5414_p4), [#allocation6], 4294939648  ;;  %p5415_p8 = pmov %p5414_p4 }
  0x9a   : > { %p5416_p6 = pmov %p5414_p4 }
  0x9b   : > { %4712 = dma.done.wait (%p5415_p8), [#allocation9], 36864  }
  0x9c   : > { %4714 = vsyncadd (%p5416_p6), [#allocation9], 4294930432  ;;  %v409_v0 = vld [vmem:[%s358_s9] sm:$0xff]  ;;  %s4742_s17 = smov 4   ;;  %v410_v1 = vld [vmem:[%s358_s9 + $0x8] sm:$0xff]  ;;  %vm419_vm0 = vcmask 31744  }
  0x9d   : > { %413 = vrot.lane.b32.xlu0 %v409_v0, %s4742_s17  ;;  %v517_v2 = vld [vmem:[#allocation5 + $0x80] sm:$0xff]  ;;  %v518_v3 = vld [vmem:[#allocation5 + $0x88] sm:$0xff]  ;;  %v519_v7 = vld [vmem:[#allocation5 + $0x90] sm:$0xff]  ;;  %vm422_vm1 = vcmask 556032   ;;  %vm427_vm2 = vcmask 1040384   ;;  %s4743_s15 = smov 60  }
  0x9e   : > { %v501_v4 = vld [vmem:[#allocation5] sm:$0xff]  ;;  %v3674_v5 = vpack.c.bf16 %v518_v3, %v517_v2  ;;  %v502_v6 = vld [vmem:[#allocation5 + $0x8] sm:$0xff]  ;;  %v520_v8 = vld [vmem:[#allocation5 + $0x98] sm:$0xff]  ;;  %s4744_s25 = smov 120   ;;  %vm450_vm3 = vcmask 1046528   ;;  %s4745_s26 = smov 64  }
  0x9f   : > { %v3676_v9 = vpack.c.bf16 %v502_v6, %v501_v4  ;;  %v3678_v10 = vpack.c.bf16 %v520_v8, %v519_v7  ;;  %v503_v11 = vld [vmem:[#allocation5 + $0x10] sm:$0xff]  ;;  %v504_v12 = vld [vmem:[#allocation5 + $0x18] sm:$0xff]  ;;  %v521_v13 = vld [vmem:[#allocation5 + $0xa0] sm:$0xff]  ;;  %vm474_vm4 = vcmask 1045504   ;;  %s4746_s19 = smov 124   ;;  %s4747_s22 = smov 56  }
  0xa0   : > { %3675 = vmatprep.subr.bf16.mxu0 %v3674_v5  ;;  %v522_v14 = vld [vmem:[#allocation5 + $0xa8] sm:$0xff]  ;;  %v3680_v15 = vpack.c.bf16 %v504_v12, %v503_v11  ;;  %v505_v16 = vld [vmem:[#allocation5 + $0x20] sm:$0xff]  ;;  %v523_v20 = vld [vmem:[#allocation5 + $0xb0] sm:$0xff]  ;;  %vm492_vm5 = vcmask 523264   ;;  %s4748_s18 = smov 8   ;;  %vm819_vm6 = vcmask 64512  }
  0xa1   : > { %415 = vrot.lane.b32.xlu0 %v410_v1, %s4742_s17  ;;  %3677 = vmatpush3.bf16.msra.mxu0 %v3676_v9  ;;  %v549_v17 = vld [vmem:[#allocation5 + $0x180] sm:$0xff]  ;;  %v3682_v18 = vpack.c.bf16 %v522_v14, %v521_v13  ;;  %v506_v19 = vld [vmem:[#allocation5 + $0x28] sm:$0xff]  ;;  %v524_v22 = vld [vmem:[#allocation5 + $0xb8] sm:$0xff]  ;;  %s4749_s16 = smov 112   ;;  %vm853_vm7 = vcmask 982016   ;;  %vm866_vm9 = vcmask 916480  }
  0xa2   : > { %3679 = vmatprep.subr.bf16.mxu0 %v3678_v10  ;;  %v550_v21 = vld [vmem:[#allocation5 + $0x188] sm:$0xff]  ;;  %v533_v24 = vld [vmem:[#allocation5 + $0x100] sm:$0xff]  ;;  %v551_v27 = vld [vmem:[#allocation5 + $0x190] sm:$0xff]  ;;  %v3684_v29 = vpack.c.bf16 %v506_v19, %v505_v16  ;;  %v3686_v33 = vpack.c.bf16 %v524_v22, %v523_v20  ;;  %s2794_s24 = scalar_lea.sflag [#allocation4], %s5028_s30 }
  0xa3   : > { %v3706_v23 = vpack.c.bf16 %v550_v21, %v549_v17  ;;  %v534_v25 = vld [vmem:[#allocation5 + $0x108] sm:$0xff]  ;;  %v552_v28 = vld [vmem:[#allocation5 + $0x198] sm:$0xff]  ;;  %v507_v30 = vld [vmem:[#allocation5 + $0x30] sm:$0xff] }
  0xa4   : > { %v3708_v26 = vpack.c.bf16 %v534_v25, %v533_v24  ;;  %v3710_v31 = vpack.c.bf16 %v552_v28, %v551_v27  ;;  %v535_v32 = vld [vmem:[#allocation5 + $0x110] sm:$0xff]  ;;  %v508_v34 = vld [vmem:[#allocation5 + $0x38] sm:$0xff]  ;;  %v525_v35 = vld [vmem:[#allocation5 + $0xc0] sm:$0xff] }
  0xa5   : > { %3681 = vmatpush3.bf16.msra.mxu0 %v3680_v15  ;;  %3707 = vmatprep.subr.bf16.mxu1 %v3706_v23  ;;  %v536_v36 = vld [vmem:[#allocation5 + $0x118] sm:$0xff]  ;;  %v526_v37 = vld [vmem:[#allocation5 + $0xc8] sm:$0xff]  ;;  %v553_v39 = vld [vmem:[#allocation5 + $0x1a0] sm:$0xff]  ;;  %v3688_v44 = vpack.c.bf16 %v508_v34, %v507_v30 }
  0xa6   : > { %3683 = vmatprep.subr.bf16.mxu0 %v3682_v18  ;;  %3709 = vmatpush3.bf16.msra.mxu1 %v3708_v26  ;;  %v3712_v38 = vpack.c.bf16 %v536_v36, %v535_v32  ;;  %v554_v40 = vld [vmem:[#allocation5 + $0x1a8] sm:$0xff]  ;;  %v537_v42 = vld [vmem:[#allocation5 + $0x120] sm:$0xff]  ;;  %v3690_v45 = vpack.c.bf16 %v526_v37, %v525_v35  ;;  %v527_v49 = vld [vmem:[#allocation5 + $0xd0] sm:$0xff] }
  0xa7   : > { %3711 = vmatprep.subr.bf16.mxu1 %v3710_v31  ;;  %v3714_v41 = vpack.c.bf16 %v554_v40, %v553_v39  ;;  %v538_v43 = vld [vmem:[#allocation5 + $0x128] sm:$0xff]  ;;  %v509_v46 = vld [vmem:[#allocation5 + $0x40] sm:$0xff]  ;;  %v528_v50 = vld [vmem:[#allocation5 + $0xd8] sm:$0xff] }
  0xa8   : > { %v510_v47 = vld [vmem:[#allocation5 + $0x48] sm:$0xff]  ;;  %v3716_v48 = vpack.c.bf16 %v538_v43, %v537_v42  ;;  %v3694_v52 = vpack.c.bf16 %v528_v50, %v527_v49  ;;  %v511_v53 = vld [vmem:[#allocation5 + $0x50] sm:$0xff]  ;;  %v512_v54 = vld [vmem:[#allocation5 + $0x58] sm:$0xff] }
  0xa9   : > { %3685 = vmatpush3.bf16.msra.mxu0 %v3684_v29  ;;  %v3692_v51 = vpack.c.bf16 %v510_v47, %v509_v46  ;;  %v3696_v55 = vpack.c.bf16 %v512_v54, %v511_v53  ;;  %v529_v56 = vld [vmem:[#allocation5 + $0xe0] sm:$0xff]  ;;  %v530_v57 = vld [vmem:[#allocation5 + $0xe8] sm:$0xff]  ;;  %v555_v58 = vld [vmem:[#allocation5 + $0x1b0] sm:$0xff] }
  0xaa   : > { %3687 = vmatprep.subr.bf16.mxu0 %v3686_v33  ;;  %3713 = vmatpush3.bf16.msra.mxu1 %v3712_v38  ;;  %v3698_v59 = vpack.c.bf16 %v530_v57, %v529_v56  ;;  %v556_v60 = vld [vmem:[#allocation5 + $0x1b8] sm:$0xff]  ;;  %v513_v61 = vld [vmem:[#allocation5 + $0x60] sm:$0xff]  ;;  %v514_v62 = vld [vmem:[#allocation5 + $0x68] sm:$0xff] }
  0xab   : > { %3715 = vmatprep.subr.bf16.mxu1 %v3714_v41  ;;  %v3718_v63 = vpack.c.bf16 %v556_v60, %v555_v58  ;;  %v3700_v0 = vpack.c.bf16 %v514_v62, %v513_v61  ;;  %v539_v1 = vld [vmem:[#allocation5 + $0x130] sm:$0xff]  ;;  %v540_v2 = vld [vmem:[#allocation5 + $0x138] sm:$0xff]  ;;  %v557_v6 = vld [vmem:[#allocation5 + $0x1c0] sm:$0xff] }
  0xac   : > { %v531_v3 = vld [vmem:[#allocation5 + $0xf0] sm:$0xff]  ;;  %v3720_v4 = vpack.c.bf16 %v540_v2, %v539_v1  ;;  %v532_v5 = vld [vmem:[#allocation5 + $0xf8] sm:$0xff]  ;;  %v558_v7 = vld [vmem:[#allocation5 + $0x1c8] sm:$0xff] }
  0xad   : > { %3689 = vmatpush3.bf16.msra.mxu0 %v3688_v44  ;;  %v3702_v8 = vpack.c.bf16 %v532_v5, %v531_v3  ;;  %v3722_v9 = vpack.c.bf16 %v558_v7, %v557_v6  ;;  %v515_v10 = vld [vmem:[#allocation5 + $0x70] sm:$0xff]  ;;  %v516_v11 = vld [vmem:[#allocation5 + $0x78] sm:$0xff]  ;;  %v541_v12 = vld [vmem:[#allocation5 + $0x140] sm:$0xff] }
  0xae   : > { %3691 = vmatprep.subr.bf16.mxu0 %v3690_v45  ;;  %3717 = vmatpush3.bf16.msra.mxu1 %v3716_v48  ;;  %v3704_v13 = vpack.c.bf16 %v516_v11, %v515_v10  ;;  %v542_v14 = vld [vmem:[#allocation5 + $0x148] sm:$0xff]  ;;  %v559_v16 = vld [vmem:[#allocation5 + $0x1d0] sm:$0xff]  ;;  %v560_v17 = vld [vmem:[#allocation5 + $0x1d8] sm:$0xff] }
  0xaf   : > { %3719 = vmatprep.subr.bf16.mxu1 %v3718_v63  ;;  %v3724_v15 = vpack.c.bf16 %v542_v14, %v541_v12  ;;  %v565_v18 = vld [vmem:[#allocation5 + $0x200] sm:$0xff]  ;;  %v3726_v19 = vpack.c.bf16 %v560_v17, %v559_v16  ;;  %v566_v20 = vld [vmem:[#allocation5 + $0x208] sm:$0xff]  ;;  %v543_v21 = vld [vmem:[#allocation5 + $0x150] sm:$0xff] }
  0xb0   : > { %v544_v22 = vld [vmem:[#allocation5 + $0x158] sm:$0xff]  ;;  %v5046_v24 = vpack.c.bf16 %v566_v20, %v565_v18  ;;  %v561_v29 = vld [vmem:[#allocation5 + $0x1e0] sm:$0xff]  ;;  %v562_v30 = vld [vmem:[#allocation5 + $0x1e8] sm:$0xff] }
  0xb1   : > { %3693 = vmatpush3.bf16.msra.mxu0 %v3692_v51  ;;  %v3728_v25 = vpack.c.bf16 %v544_v22, %v543_v21  ;;  %v3730_v32 = vpack.c.bf16 %v562_v30, %v561_v29  ;;  %v545_v33 = vld [vmem:[#allocation5 + $0x160] sm:$0xff]  ;;  %v546_v34 = vld [vmem:[#allocation5 + $0x168] sm:$0xff]  ;;  %v563_v40 = vld [vmem:[#allocation5 + $0x1f0] sm:$0xff] }
  0xb2   : > { %3695 = vmatprep.subr.bf16.mxu0 %v3694_v52  ;;  %3721 = vmatpush3.bf16.msra.mxu1 %v3720_v4  ;;  %v3732_v37 = vpack.c.bf16 %v546_v34, %v545_v33  ;;  %v564_v41 = vld [vmem:[#allocation5 + $0x1f8] sm:$0xff]  ;;  %v547_v43 = vld [vmem:[#allocation5 + $0x170] sm:$0xff]  ;;  %v569_v4 = vld [vmem:[#allocation5 + $0x220] sm:$0xff] }
  0xb3   : > { %3723 = vmatprep.subr.bf16.mxu1 %v3722_v9  ;;  %v3734_v42 = vpack.c.bf16 %v564_v41, %v563_v40  ;;  %v548_v44 = vld [vmem:[#allocation5 + $0x178] sm:$0xff]  ;;  %v567_v61 = vld [vmem:[#allocation5 + $0x210] sm:$0xff]  ;;  %v570_v5 = vld [vmem:[#allocation5 + $0x228] sm:$0xff] }
  0xb4   : > { %v3736_v47 = vpack.c.bf16 %v548_v44, %v547_v43  ;;  %v568_v62 = vld [vmem:[#allocation5 + $0x218] sm:$0xff]  ;;  %v3746_v9 = vpack.c.bf16 %v570_v5, %v569_v4  ;;  %v571_v10 = vld [vmem:[#allocation5 + $0x230] sm:$0xff]  ;;  %v2935_v30 = vld [vmem:[%s5386_s2] ss:$0 sm:$0xff] }
  0xb5   : > { %3697 = vmatpush3.bf16.msra.mxu0 %v3696_v55  ;;  %v3742_v2 = vpack.c.bf16 %v568_v62, %v567_v61  ;;  %v572_v11 = vld [vmem:[#allocation5 + $0x238] sm:$0xff]  ;;  %v977_v61 = vld [vmem:[#allocation7 + $0x100] sm:$0xff]  ;;  %v995_v4 = vld [vmem:[#allocation7 + $0x190] sm:$0xff] }
  0xb6   : > { %3699 = vmatprep.subr.bf16.mxu0 %v3698_v59  ;;  %3725 = vmatpush3.bf16.msra.mxu1 %v3724_v15  ;;  %v3750_v16 = vpack.c.bf16 %v572_v11, %v571_v10  ;;  %v996_v5 = vld [vmem:[#allocation7 + $0x198] sm:$0xff]  ;;  %vm5149_vm8 = vmneg %vm427_vm2 }
  0xb7   : > { %3727 = vmatprep.subr.bf16.mxu1 %v3726_v19  ;;  %v980_v10 = vld [vmem:[#allocation7 + $0x118] sm:$0xff] }
  0xb9   : > { %3701 = vmatpush3.bf16.msra.mxu0 %v3700_v0 }
  0xba   : > { %3703 = vmatprep.subr.bf16.mxu0 %v3702_v8  ;;  %3729 = vmatpush3.bf16.msra.mxu1 %v3728_v25 }
  0xbb   : > { %3731 = vmatprep.subr.bf16.mxu1 %v3730_v32 }
  0xbd   : > { %3705 = vmatpush3.bf16.msra.mxu0 %v3704_v13 }
  0xbe   : > { %3739 = vmatprep.subr.bf16.mxu0 %v5046_v24  ;;  %3733 = vmatpush3.bf16.msra.mxu1 %v3732_v37 }
  0xbf   : > { %3735 = vmatprep.subr.bf16.mxu1 %v3734_v42 }
  0xc2   : > { %3737 = vmatpush3.bf16.msra.mxu1 %v3736_v47 }
 0x10f   : > { %v414_v23 = vpop.permute.xlu0 %413 }
 0x110   : > { %v420_v26 = vsel %vm419_vm0, 0.0, %v414_v23 }
 0x111   : > { %v423_v27 = vsel %vm422_vm1, %v420_v26, 0.0 }
 0x112   : > { %v428_v28 = vrot.slane %v423_v27, 7 }
 0x113   : > { %v416_v31 = vpop.permute.xlu0 %415 }
 0x114   : > { %v434_v35 = vsel %vm427_vm2, 0.0, %v428_v28  ;;  %v421_v36 = vsel %vm419_vm0, 0.0, %v416_v31 }
 0x115   : > { %v424_v38 = vsel %vm422_vm1, %v421_v36, 0.0  ;;  %437 = vrot.lane.b32.xlu0 %v434_v35, %s4743_s15  ;;  %443 = vrot.lane.b32.xlu1 %v434_v35, %s4744_s25  ;;  %v451_v50 = vrot.slane %v434_v35, 1  ;;  %v475_v54 = vrot.slane %v434_v35, 2 }
 0x116   : > { %v429_v39 = vrot.slane %v424_v38, 7 }
 0x118   : > { %v5057_v45 = vsel %vm427_vm2, %v428_v28, %v429_v39  ;;  %v435_v46 = vsel %vm427_vm2, %v429_v39, 0.0 }
 0x119   : > { %v454_v48 = vrot.slane %v435_v46, 1  ;;  %v452_v49 = vrot.slane %v5057_v45, 1  ;;  %v476_v53 = vrot.slane %v5057_v45, 2  ;;  %v478_v57 = vrot.slane %v435_v46, 2 }
 0x11b   : > { %v455_v51 = vsel %vm450_vm3, %v452_v49, %v454_v48  ;;  %v453_v52 = vsel %vm450_vm3, %v451_v50, %v452_v49  ;;  %v477_v55 = vsel %vm474_vm4, %v475_v54, %v476_v53  ;;  %v479_v58 = vsel %vm474_vm4, %v476_v53, %v478_v57  ;;  %v961_v50 = vld [vmem:[#allocation7 + $0x80] sm:$0xff]  ;;  %v946_v54 = vld [vmem:[#allocation7 + $0x8] sm:$0xff] }
 0x11c   : > { %458 = vrot.lane.b32.xlu0 %v455_v51, %s4745_s26  ;;  %456 = vrot.lane.b32.xlu1 %v453_v52, %s4745_s26  ;;  %v4332_v56 = vpack.i.bf16 %v5057_v45, %v477_v55  ;;  %s408_s26 = scalar_lea.vmem [#allocation11], %s2929_s21 }
 0x120   : > { %462 = vrot.lane.b32.xlu0 %v453_v52, %s4746_s19  ;;  %445 = vrot.lane.b32.xlu1 %v5057_v45, %s4744_s25 }
 0x124   : > { %488 = vrot.lane.b32.xlu0 %v477_v55, %s4744_s25  ;;  %4333 = vrot.lane.b32.xlu1 %v4332_v56, %s4743_s15  ;;  %v994_v56 = vld [vmem:[#allocation7 + $0x188] sm:$0xff] }
 0x128   : > { %484 = vrot.lane.b32.xlu0 %v479_v58, %s4743_s15  ;;  %468 = vrot.lane.b32.xlu1 %v453_v52, %s4747_s22  ;;  %v945_v52 = vld [vmem:[#allocation7] sm:$0xff] }
 0x129   : > { %v3756_v57 = vpack.c.bf16 %v946_v54, %v945_v52  ;;  %v1004_v52 = vld [vmem:[#allocation7 + $0x1d8] sm:$0xff]  ;;  %v955_v54 = vld [vmem:[#allocation7 + $0x50] sm:$0xff] }
 0x12c   : > { %470 = vrot.lane.b32.xlu0 %v455_v51, %s4747_s22  ;;  %490 = vrot.lane.b32.xlu1 %v479_v58, %s4744_s25  ;;  %s2953_s22 = sshll.u32 %s4823_s13, 8  ;;  %s4750_s13 = smov [#allocation11]  }
 0x12d   : > { %s4663_s9 = sshll.u32 %s4750_s13, 4  ;;  %s4664_s9 = int_to_ptr.vmem [resolvable:$false] %s4663_s9 }
 0x12e   : > { %s4665_s17 = scalar_lea.vmem %s4664_s9, 512 }
 0x130   : > { %464 = vrot.lane.b32.xlu1 %v455_v51, %s4746_s19  ;;  %v962_v51 = vld [vmem:[#allocation7 + $0x88] sm:$0xff]  ;;  %s2807_s19 = sshll.u32 %s408_s26, 4  ;;  %s5334_s19 = int_to_ptr.vmem [resolvable:$true] %s2807_s19 }
 0x131   : > { %v3754_v53 = vpack.c.bf16 %v962_v51, %v961_v50  ;;  %v1003_v51 = vld [vmem:[#allocation7 + $0x1d0] sm:$0xff]  ;;  %s4659_s21 = scalar_lea.vmem %s5334_s19, 256  ;;  %p4666_p12 = scmp.lt.s32.totalorder %s5334_s19, %s4664_s9 }
 0x132   : > { %p4660_p3 = scmp.ne.s32.totalorder %s5334_s19, %s4659_s21  ;;  %p4667_p1 = scmp.lt.s32.totalorder %s4665_s17, %s4659_s21 }
 0x133   : > { %3755 = vmatprep.subr.bf16.mxu1 %v3754_v53 }
 0x134   : > { %p4661_p5 = pnand %p4660_p3, %p4973_p10  ;;  %p4668_p2 = por %p4667_p1, %p4666_p12 }
 0x136   : > { %p4662_p7 = pneg %p4661_p5 }
 0x138   : > { %p4669_p13 = pnand %p4668_p2, %p4662_p7 }
 0x187   : > { %v444_v59 = vpop.permute.xlu1 %443  ;;  %v438_v60 = vpop.permute.xlu0 %437 }
 0x188   : > { %v493_v3 = vsel %vm492_vm5, %v434_v35, %v438_v60  ;;  %v964_v60 = vld [vmem:[#allocation7 + $0x98] sm:$0xff] }
 0x18e   : > { %v457_v63 = vpop.permute.xlu1 %456  ;;  %v459_v0 = vpop.permute.xlu0 %458 }
 0x18f   : > { %v495_v1 = vsel %vm492_vm5, %v444_v59, %v457_v63  ;;  %v963_v59 = vld [vmem:[#allocation7 + $0x90] sm:$0xff]  ;;  %v978_v63 = vld [vmem:[#allocation7 + $0x108] sm:$0xff] }
 0x190   : > { %648 = vmatprep.mubr.f32.mxu0 %v495_v1  ;;  %v3758_v62 = vpack.c.bf16 %v964_v60, %v963_v59  ;;  %v948_v1 = vld [vmem:[#allocation7 + $0x18] sm:$0xff]  ;;  %v3806_v59 = vpack.c.bf16 %v1004_v52, %v1003_v51  ;;  %v987_v60 = vld [vmem:[#allocation7 + $0x150] sm:$0xff] }
 0x191   : > { %649 = vmatmul.mubr.f32.vlgmr.msra.gmra.mrb[0].mxu0 %v493_v3 }
 0x192   : > { %3741 = vmatpush3.bf16.msra.mxu0 %v5046_v24  ;;  %v446_v6 = vpop.permute.xlu1 %445  ;;  %v463_v7 = vpop.permute.xlu0 %462 }
 0x193   : > { %v496_v8 = vsel %vm492_vm5, %v446_v6, %v459_v0  ;;  %3743 = vmatprep.subr.bf16.mxu0 %v3742_v2  ;;  %v947_v0 = vld [vmem:[#allocation7 + $0x10] sm:$0xff]  ;;  %v965_v6 = vld [vmem:[#allocation7 + $0xa0] sm:$0xff] }
 0x194   : > { %653 = vmatprep.mubr.f32.mxu0 %v496_v8  ;;  %v3760_v3 = vpack.c.bf16 %v948_v1, %v947_v0  ;;  %v966_v8 = vld [vmem:[#allocation7 + $0xa8] sm:$0xff] }
 0x195   : > { %v3762_v11 = vpack.c.bf16 %v966_v8, %v965_v6  ;;  %v1006_v0 = vld [vmem:[#allocation7 + $0x1e8] sm:$0xff]  ;;  %v976_v6 = vld [vmem:[#allocation7 + $0xf8] sm:$0xff]  ;;  %v989_v8 = vld [vmem:[#allocation7 + $0x160] sm:$0xff] }
 0x196   : > { %3745 = vmatpush3.bf16.msra.mxu0 %v3742_v2  ;;  %v4334_v12 = vpop.permute.xlu1 %4333  ;;  %v489_v13 = vpop.permute.xlu0 %488  ;;  %v3788_v2 = vpack.c.bf16 %v978_v63, %v977_v61  ;;  %v988_v61 = vld [vmem:[#allocation7 + $0x158] sm:$0xff]  ;;  %v1005_v63 = vld [vmem:[#allocation7 + $0x1e0] sm:$0xff] }
 0x197   : > { %v4336_v14 = vunpack.i.h.bf16 %v4334_v12  ;;  %v4335_v15 = vunpack.i.l.bf16 %v4334_v12  ;;  %3747 = vmatprep.subr.bf16.mxu0 %v3746_v9 }
 0x199   : > { %v494_v17 = vsel %vm492_vm5, %v5057_v45, %v4336_v14  ;;  %v499_v18 = vsel %vm492_vm5, %v477_v55, %v4335_v15  ;;  %v993_v55 = vld [vmem:[#allocation7 + $0x180] sm:$0xff]  ;;  %v950_v14 = vld [vmem:[#allocation7 + $0x28] sm:$0xff] }
 0x19a   : > { %3749 = vmatpush3.bf16.msra.mxu0 %v3746_v9  ;;  %v469_v19 = vpop.permute.xlu1 %468  ;;  %723 = vmatprep.mubr.f32.mxu1 %v499_v18  ;;  %v485_v20 = vpop.permute.xlu0 %484  ;;  %v979_v9 = vld [vmem:[#allocation7 + $0x110] sm:$0xff]  ;;  %v997_v15 = vld [vmem:[#allocation7 + $0x1a0] sm:$0xff]  ;;  %v968_v18 = vld [vmem:[#allocation7 + $0xb8] sm:$0xff] }
 0x19b   : > { %654 = vmatmul.mubr.f32.gmra.mrb[2].mxu0 %v494_v17  ;;  %v497_v21 = vsel %vm492_vm5, %v463_v7, %v469_v19  ;;  %3751 = vmatprep.subr.bf16.mxu0 %v3750_v16  ;;  %v500_v22 = vsel %vm492_vm5, %v479_v58, %v485_v20  ;;  %v3786_v58 = vpack.c.bf16 %v994_v56, %v993_v55  ;;  %v967_v17 = vld [vmem:[#allocation7 + $0xb0] sm:$0xff]  ;;  %v956_v55 = vld [vmem:[#allocation7 + $0x58] sm:$0xff] }
 0x19c   : > { %3566 = vmatprep.mubr.msk.f32.mxu0 %vm492_vm5, %v489_v13  ;;  %724 = vmatmul.mubr.f32.vlgmr.msra.gmra.mrb[0].mxu1 %v497_v21  ;;  %v3790_v7 = vpack.c.bf16 %v996_v5, %v995_v4  ;;  %v3792_v12 = vpack.c.bf16 %v980_v10, %v979_v9  ;;  %v949_v13 = vld [vmem:[#allocation7 + $0x20] sm:$0xff]  ;;  %v3808_v4 = vpack.c.bf16 %v988_v61, %v987_v60  ;;  %v975_v5 = vld [vmem:[#allocation7 + $0xf0] sm:$0xff]  ;;  %v990_v9 = vld [vmem:[#allocation7 + $0x168] sm:$0xff] }
 0x19d   : > { %728 = vmatprep.mubr.f32.mxu1 %v500_v22  ;;  %3757 = vmatpush3.bf16.msra.mxu1 %v3756_v57  ;;  %v3764_v19 = vpack.c.bf16 %v950_v14, %v949_v13  ;;  %v981_v21 = vld [vmem:[#allocation7 + $0x120] sm:$0xff]  ;;  %v982_v22 = vld [vmem:[#allocation7 + $0x128] sm:$0xff]  ;;  %v959_v13 = vld [vmem:[#allocation7 + $0x70] sm:$0xff] }
 0x19e   : > { %3753 = vmatpush3.bf16.msra.mxu0 %v3750_v16  ;;  %v491_v23 = vpop.permute.xlu1 %490  ;;  %v471_v24 = vpop.permute.xlu0 %470  ;;  %3759 = vmatprep.subr.bf16.mxu1 %v3758_v62  ;;  %v998_v16 = vld [vmem:[#allocation7 + $0x1a8] sm:$0xff]  ;;  %v973_v57 = vld [vmem:[#allocation7 + $0xe0] sm:$0xff]  ;;  %v3776_v62 = vpack.c.bf16 %v956_v55, %v955_v54  ;;  %v960_v14 = vld [vmem:[#allocation7 + $0x78] sm:$0xff] }
 0x19f   : > { %3787 = vmatprep.subr.bf16.mxu0 %v3786_v58  ;;  %v3794_v20 = vpack.c.bf16 %v998_v16, %v997_v15  ;;  %v974_v58 = vld [vmem:[#allocation7 + $0xe8] sm:$0xff]  ;;  %v3784_v15 = vpack.c.bf16 %v960_v14, %v959_v13  ;;  %v1007_v16 = vld [vmem:[#allocation7 + $0x1f0] sm:$0xff]  ;;  %v1028_v14 = vld [vmem:[#allocation7 + $0x298] sm:$0xff] }
 0x1a0   : > { %v3778_v1 = vpack.c.bf16 %v974_v58, %v973_v57  ;;  %v1027_v13 = vld [vmem:[#allocation7 + $0x290] sm:$0xff] }
 0x1a1   : > { %3567 = vmatmul.mubr.msk.f32.vlgmr.msra.gmra.mrb[4].mxu0 %vm492_vm5, %v491_v23  ;;  %3761 = vmatpush3.bf16.msra.mxu1 %v3760_v3  ;;  %v951_v23 = vld [vmem:[#allocation7 + $0x30] sm:$0xff]  ;;  %v958_v3 = vld [vmem:[#allocation7 + $0x68] sm:$0xff] }
 0x1a2   : > { %v465_v25 = vpop.permute.xlu1 %464  ;;  %3789 = vmatpush3.bf16.msra.mxu0 %v3788_v2  ;;  %3763 = vmatprep.subr.bf16.mxu1 %v3762_v11  ;;  %v957_v2 = vld [vmem:[#allocation7 + $0x60] sm:$0xff]  ;;  %v3782_v11 = vpack.c.bf16 %v976_v6, %v975_v5 }
 0x1a3   : > { %v498_v26 = vsel %vm492_vm5, %v465_v25, %v471_v24  ;;  %3791 = vmatprep.subr.bf16.mxu0 %v3790_v7  ;;  %v3766_v24 = vpack.c.bf16 %v968_v18, %v967_v17  ;;  %v952_v25 = vld [vmem:[#allocation7 + $0x38] sm:$0xff]  ;;  %v3810_v7 = vpack.c.bf16 %v1006_v0, %v1005_v63  ;;  %v3780_v10 = vpack.c.bf16 %v958_v3, %v957_v2  ;;  %v991_v18 = vld [vmem:[#allocation7 + $0x170] sm:$0xff] }
 0x1a4   : > { %729 = vmatmul.mubr.f32.gmra.mrb[2].mxu1 %v498_v26  ;;  %v999_v26 = vld [vmem:[#allocation7 + $0x1b0] sm:$0xff]  ;;  %v1008_v17 = vld [vmem:[#allocation7 + $0x1f8] sm:$0xff] }
 0x1a5   : > { %3765 = vmatpush3.bf16.msra.mxu1 %v3764_v19  ;;  %v3814_v19 = vpack.c.bf16 %v1008_v17, %v1007_v16  ;;  %v2351_v17 = vld [vmem:[#allocation10 + $0x2b0] sm:$0xff] }
 0x1a6   : > { %3793 = vmatpush3.bf16.msra.mxu0 %v3792_v12  ;;  %3767 = vmatprep.subr.bf16.mxu1 %v3766_v24  ;;  %v3812_v12 = vpack.c.bf16 %v990_v9, %v989_v8 }
 0x1a7   : > { %3795 = vmatprep.subr.bf16.mxu0 %v3794_v20  ;;  %v992_v20 = vld [vmem:[#allocation7 + $0x178] sm:$0xff] }
 0x264   : > { %v2986_v27 = vpop.f32.mrb[0].mxu0 }
 0x265   : > { %v2987_v28 = vpop.f32.mrb[1].mxu0 }
 0x266   : > { %v2988_v29 = vadd.f32 %v2987_v28, %v2986_v27  ;;  %v1000_v27 = vld [vmem:[#allocation7 + $0x1b8] sm:$0xff]  ;;  %v3796_v28 = vpack.c.bf16 %v982_v22, %v981_v21  ;;  %v1025_v21 = vld [vmem:[#allocation7 + $0x280] sm:$0xff]  ;;  %v1026_v22 = vld [vmem:[#allocation7 + $0x288] sm:$0xff] }
 0x267   : > { %v3818_v24 = vpack.c.bf16 %v1026_v22, %v1025_v21  ;;  %v1011_v21 = vld [vmem:[#allocation7 + $0x210] sm:$0xff] }
 0x268   : > { %v651_v36 = vadd.f32 %v2988_v29, %v2935_v30  ;;  %v969_v29 = vld [vmem:[#allocation7 + $0xc0] sm:$0xff]  ;;  %3797 = vmatpush3.bf16.msra.mxu0 %v3796_v28 }
 0x26e   : > { %v2989_v31 = vpop.f32.mrb[2].mxu0 }
 0x26f   : > { %v2990_v32 = vpop.f32.mrb[3].mxu0  ;;  %v3024_v33 = vpop.f32.mrb[0].mxu1 }
 0x270   : > { %v2991_v34 = vadd.f32 %v2990_v32, %v2989_v31  ;;  %v3025_v35 = vpop.f32.mrb[1].mxu1  ;;  %v3798_v31 = vpack.c.bf16 %v1000_v27, %v999_v26  ;;  %v983_v32 = vld [vmem:[#allocation7 + $0x130] sm:$0xff]  ;;  %v1058_v26 = vld [vmem:[#allocation7 + $0x388] sm:$0xff] }
 0x271   : > { %v3026_v37 = vadd.f32 %v3025_v35, %v3024_v33  ;;  %v984_v33 = vld [vmem:[#allocation7 + $0x138] sm:$0xff]  ;;  %v1001_v35 = vld [vmem:[#allocation7 + $0x1c0] sm:$0xff] }
 0x272   : > { %v656_v45 = vadd.f32 %v2991_v34, %v2935_v30  ;;  %v970_v30 = vld [vmem:[#allocation7 + $0xc8] sm:$0xff]  ;;  %v3768_v34 = vpack.c.bf16 %v952_v25, %v951_v23  ;;  %3799 = vmatprep.subr.bf16.mxu0 %v3798_v31  ;;  %v3816_v23 = vpack.c.bf16 %v992_v20, %v991_v18  ;;  %v1057_v25 = vld [vmem:[#allocation7 + $0x380] sm:$0xff] }
 0x273   : > { %v726_v38 = vadd.f32 %v3026_v37, %v651_v36  ;;  %v1002_v36 = vld [vmem:[#allocation7 + $0x1c8] sm:$0xff]  ;;  %v3770_v37 = vpack.c.bf16 %v970_v30, %v969_v29  ;;  %v3850_v28 = vpack.c.bf16 %v1058_v26, %v1057_v25  ;;  %v1059_v25 = vld [vmem:[#allocation7 + $0x390] sm:$0xff]  ;;  %v1060_v26 = vld [vmem:[#allocation7 + $0x398] sm:$0xff] }
 0x274   : > { %v3568_v39 = vpop.f32.mrb[4].mxu0  ;;  %3769 = vmatpush3.bf16.msra.mxu1 %v3768_v34  ;;  %v1042_v20 = vld [vmem:[#allocation7 + $0x308] sm:$0xff] }
 0x275   : > { %v800_v40 = vpop.f32.mrb[5].mxu0  ;;  %3771 = vmatprep.subr.bf16.mxu1 %v3770_v37 }
 0x276   : > { %v5088_v41 = vadd.f32 %v800_v40, %v726_v38  ;;  %v953_v38 = vld [vmem:[#allocation7 + $0x40] sm:$0xff]  ;;  %v3800_v40 = vpack.c.bf16 %v984_v33, %v983_v32 }
 0x277   : > { %v3027_v42 = vpop.f32.mrb[2].mxu1 }
 0x278   : > { %v809_v43 = vmax.f32 %v5088_v41, 0.0  ;;  %v3028_v44 = vpop.f32.mrb[3].mxu1  ;;  %3801 = vmatpush3.bf16.msra.mxu0 %v3800_v40  ;;  %v2316_v41 = vld [vmem:[#allocation10 + $0x198] sm:$0xff] }
 0x279   : > { %v3029_v46 = vadd.f32 %v3028_v44, %v3027_v42  ;;  %v971_v42 = vld [vmem:[#allocation7 + $0xd0] sm:$0xff]  ;;  %v972_v44 = vld [vmem:[#allocation7 + $0xd8] sm:$0xff] }
 0x27a   : > { %813 = vrot.lane.b32.xlu1 %v809_v43, %s4748_s18  ;;  %v3774_v53 = vpack.c.bf16 %v972_v44, %v971_v42 }
 0x27b   : > { %v731_v47 = vadd.f32 %v3029_v46, %v656_v45  ;;  %v3802_v45 = vpack.c.bf16 %v1002_v36, %v1001_v35  ;;  %v985_v46 = vld [vmem:[#allocation7 + $0x140] sm:$0xff] }
 0x27d   : > { %v5094_v48 = vadd.f32 %v3568_v39, %v731_v47  ;;  %v954_v39 = vld [vmem:[#allocation7 + $0x48] sm:$0xff]  ;;  %3803 = vmatprep.subr.bf16.mxu0 %v3802_v45 }
 0x27e   : > { %v986_v47 = vld [vmem:[#allocation7 + $0x148] sm:$0xff]  ;;  %v3772_v50 = vpack.c.bf16 %v954_v39, %v953_v38 }
 0x27f   : > { %v810_v49 = vmax.f32 %v5094_v48, 0.0  ;;  %v3804_v56 = vpack.c.bf16 %v986_v47, %v985_v46  ;;  %v2315_v48 = vld [vmem:[#allocation10 + $0x190] sm:$0xff] }
 0x280   : > { %3773 = vmatpush3.bf16.msra.mxu1 %v3772_v50 }
 0x281   : > { %815 = vrot.lane.b32.xlu0 %v810_v49, %s4748_s18  ;;  %3775 = vmatprep.subr.bf16.mxu1 %v3774_v53 }
 0x282   : > { %3805 = vmatpush3.bf16.msra.mxu0 %v3804_v56 }
 0x283   : > { %3807 = vmatprep.subr.bf16.mxu0 %v3806_v59 }
 0x284   : > { %3777 = vmatpush3.bf16.msra.mxu1 %v3776_v62 }
 0x285   : > { %3779 = vmatprep.subr.bf16.mxu1 %v3778_v1 }
 0x286   : > { %3809 = vmatpush3.bf16.msra.mxu0 %v3808_v4 }
 0x287   : > { %3811 = vmatprep.subr.bf16.mxu0 %v3810_v7 }
 0x288   : > { %3781 = vmatpush3.bf16.msra.mxu1 %v3780_v10  ;;  %v1009_v10 = vld [vmem:[#allocation7 + $0x200] sm:$0xff] }
 0x289   : > { %3783 = vmatprep.subr.bf16.mxu1 %v3782_v11  ;;  %v1010_v11 = vld [vmem:[#allocation7 + $0x208] sm:$0xff] }
 0x28a   : > { %3813 = vmatpush3.bf16.msra.mxu0 %v3812_v12  ;;  %v3820_v18 = vpack.c.bf16 %v1010_v11, %v1009_v10  ;;  %v1047_v10 = vld [vmem:[#allocation7 + $0x330] sm:$0xff]  ;;  %v1048_v11 = vld [vmem:[#allocation7 + $0x338] sm:$0xff] }
 0x28b   : > { %3815 = vmatprep.subr.bf16.mxu0 %v3814_v19  ;;  %v1041_v19 = vld [vmem:[#allocation7 + $0x300] sm:$0xff] }
 0x28c   : > { %3785 = vmatpush3.bf16.msra.mxu1 %v3784_v15 }
 0x28d   : > { %3819 = vmatprep.subr.bf16.mxu1 %v3818_v24  ;;  %v1012_v24 = vld [vmem:[#allocation7 + $0x218] sm:$0xff] }
 0x28e   : > { %3817 = vmatpush3.bf16.msra.mxu0 %v3816_v23  ;;  %v3822_v23 = vpack.c.bf16 %v1028_v14, %v1027_v13 }
 0x28f   : > { %3851 = vmatprep.subr.bf16.mxu0 %v3850_v28  ;;  %v1029_v28 = vld [vmem:[#allocation7 + $0x2a0] sm:$0xff] }
 0x2ec   : > { %v814_v27 = vpop.permute.xlu1 %813 }
 0x2ed   : > { %v820_v29 = vsel %vm819_vm6, 0.0, %v814_v27  ;;  %v822_v30 = vsel %vm819_vm6, %v814_v27, 0.0 }
 0x2ee   : > { %v5102_v31 = vrot.slane %v820_v29, 7  ;;  %v829_v32 = vrot.slane %v822_v30, 7  ;;  %v1030_v29 = vld [vmem:[#allocation7 + $0x2a8] sm:$0xff] }
 0x2f0   : > { %v839_v33 = vsel %vm427_vm2, 0.0, %v5102_v31  ;;  %v840_v34 = vsel %vm427_vm2, 0.0, %v829_v32 }
 0x2f1   : > { %v4337_v35 = vpack.i.bf16 %v840_v34, %v839_v33  ;;  %v880_v47 = vrot.slane %v840_v34, 1  ;;  %v872_v51 = vrot.slane %v839_v33, 1  ;;  %v909_v63 = vrot.slane %v839_v33, 2 }
 0x2f2   : > { %v916_v0 = vrot.slane %v840_v34, 2  ;;  %v3852_v33 = vpack.c.bf16 %v1042_v20, %v1041_v19  ;;  %v3824_v34 = vpack.c.bf16 %v1012_v24, %v1011_v21  ;;  %v1035_v20 = vld [vmem:[#allocation7 + $0x2d0] sm:$0xff]  ;;  %v1036_v21 = vld [vmem:[#allocation7 + $0x2d8] sm:$0xff] }
 0x2f3   : > { %4338 = vrot.lane.b32.xlu1 %v4337_v35, %s4744_s25  ;;  %v816_v36 = vpop.permute.xlu0 %815 }
 0x2f4   : > { %v821_v37 = vsel %vm819_vm6, 0.0, %v816_v36  ;;  %v823_v38 = vsel %vm819_vm6, %v816_v36, 0.0  ;;  %v1043_v36 = vld [vmem:[#allocation7 + $0x310] sm:$0xff] }
 0x2f5   : > { %v830_v39 = vrot.slane %v821_v37, 7  ;;  %v832_v40 = vrot.slane %v823_v38, 7  ;;  %v1044_v37 = vld [vmem:[#allocation7 + $0x318] sm:$0xff]  ;;  %v1013_v38 = vld [vmem:[#allocation7 + $0x220] sm:$0xff] }
 0x2f7   : > { %v5112_v42 = vsel %vm427_vm2, %v5102_v31, %v830_v39  ;;  %v833_v44 = vsel %vm427_vm2, %v829_v32, %v832_v40  ;;  %v841_v45 = vsel %vm427_vm2, %v830_v39, 0.0  ;;  %v842_v46 = vsel %vm427_vm2, %v832_v40, 0.0  ;;  %4348 = vrot.lane.b32.xlu1 %v4337_v35, %s4749_s16 }
 0x2f8   : > { %v875_v50 = vrot.slane %v841_v45, 1  ;;  %v883_v52 = vrot.slane %v842_v46, 1  ;;  %v4342_v53 = vpack.i.bf16 %v833_v44, %v5112_v42  ;;  %v873_v54 = vrot.slane %v5112_v42, 1 }
 0x2f9   : > { %v881_v55 = vrot.slane %v833_v44, 1  ;;  %v910_v61 = vrot.slane %v5112_v42, 2  ;;  %v917_v62 = vrot.slane %v833_v44, 2  ;;  %v912_v2 = vrot.slane %v841_v45, 2  ;;  %v1014_v44 = vld [vmem:[#allocation7 + $0x228] sm:$0xff]  ;;  %v1061_v45 = vld [vmem:[#allocation7 + $0x3a0] sm:$0xff] }
 0x2fa   : > { %4343 = vrot.lane.b32.xlu0 %v4342_v53, %s4744_s25  ;;  %v874_v56 = vsel %vm450_vm3, %v872_v51, %v873_v54  ;;  %v5124_v59 = vsel %vm450_vm3, %v873_v54, %v875_v50  ;;  %v919_v3 = vrot.slane %v842_v46, 2  ;;  %v3854_v35 = vpack.c.bf16 %v1060_v26, %v1059_v25  ;;  %v1062_v46 = vld [vmem:[#allocation7 + $0x3a8] sm:$0xff]  ;;  %v1031_v50 = vld [vmem:[#allocation7 + $0x2b0] sm:$0xff]  ;;  %v1032_v51 = vld [vmem:[#allocation7 + $0x2b8] sm:$0xff] }
 0x2fb   : > { %v882_v57 = vsel %vm450_vm3, %v880_v47, %v881_v55  ;;  %1235 = vmatprep.mubr.f32.mxu0 %v874_v56  ;;  %v884_v60 = vsel %vm450_vm3, %v881_v55, %v883_v52  ;;  %v5133_v4 = vsel %vm474_vm4, %v909_v63, %v910_v61  ;;  %v918_v5 = vsel %vm474_vm4, %v916_v0, %v917_v62  ;;  %v1063_v63 = vld [vmem:[#allocation7 + $0x3b0] sm:$0xff]  ;;  %v1064_v0 = vld [vmem:[#allocation7 + $0x3b8] sm:$0xff]  ;;  %v1049_v26 = vld [vmem:[#allocation7 + $0x340] sm:$0xff] }
 0x2fc   : > { %v4357_v58 = vpack.i.bf16 %v882_v57, %v874_v56  ;;  %v4367_v1 = vpack.i.bf16 %v884_v60, %v5124_v59  ;;  %v4372_v6 = vpack.i.bf16 %v918_v5, %v5133_v4  ;;  %v5139_v7 = vsel %vm474_vm4, %v910_v61, %v912_v2  ;;  %v1045_v56 = vld [vmem:[#allocation7 + $0x320] sm:$0xff]  ;;  %v1046_v57 = vld [vmem:[#allocation7 + $0x328] sm:$0xff] }
 0x2fd   : > { %v920_v8 = vsel %vm474_vm4, %v917_v62, %v919_v3  ;;  %v3826_v40 = vpack.c.bf16 %v1030_v29, %v1029_v28  ;;  %v3828_v54 = vpack.c.bf16 %v1014_v44, %v1013_v38  ;;  %v3858_v55 = vpack.c.bf16 %v1062_v46, %v1061_v45  ;;  %v1016_v62 = vld [vmem:[#allocation7 + $0x238] sm:$0xff]  ;;  %v1033_v2 = vld [vmem:[#allocation7 + $0x2c0] sm:$0xff]  ;;  %v1034_v3 = vld [vmem:[#allocation7 + $0x2c8] sm:$0xff] }
 0x2fe   : > { %4358 = vrot.lane.b32.xlu1 %v4357_v58, %s4744_s25  ;;  %4353 = vrot.lane.b32.xlu0 %v4357_v58, %s4749_s16  ;;  %v4387_v9 = vpack.i.bf16 %v920_v8, %v5139_v7  ;;  %v1015_v58 = vld [vmem:[#allocation7 + $0x230] sm:$0xff]  ;;  %v3830_v61 = vpack.c.bf16 %v1032_v51, %v1031_v50  ;;  %v3834_v14 = vpack.c.bf16 %v1034_v3, %v1033_v2  ;;  %v1052_v50 = vld [vmem:[#allocation7 + $0x358] sm:$0xff]  ;;  %v1021_v51 = vld [vmem:[#allocation7 + $0x260] sm:$0xff] }
 0x2ff   : > { %v3832_v8 = vpack.c.bf16 %v1016_v62, %v1015_v58  ;;  %v1019_v28 = vld [vmem:[#allocation7 + $0x250] sm:$0xff]  ;;  %v1053_v62 = vld [vmem:[#allocation7 + $0x360] sm:$0xff] }
 0x302   : > { %4368 = vrot.lane.b32.xlu1 %v4367_v1, %s4749_s16  ;;  %4363 = vrot.lane.b32.xlu0 %v4342_v53, %s4749_s16  ;;  %v3856_v53 = vpack.c.bf16 %v1044_v37, %v1043_v36  ;;  %v1037_v36 = vld [vmem:[#allocation7 + $0x2e0] sm:$0xff]  ;;  %v1038_v37 = vld [vmem:[#allocation7 + $0x2e8] sm:$0xff] }
 0x306   : > { %4378 = vrot.lane.b32.xlu1 %v4367_v1, %s4744_s25  ;;  %4373 = vrot.lane.b32.xlu0 %v4372_v6, %s4744_s25 }
 0x30a   : > { %4388 = vrot.lane.b32.xlu1 %v4387_v9, %s4749_s16  ;;  %4383 = vrot.lane.b32.xlu0 %v4372_v6, %s4749_s16  ;;  %v3860_v6 = vpack.c.bf16 %v1046_v57, %v1045_v56  ;;  %v1039_v56 = vld [vmem:[#allocation7 + $0x2f0] sm:$0xff]  ;;  %v1040_v57 = vld [vmem:[#allocation7 + $0x2f8] sm:$0xff] }
 0x30b   : > { %v3846_v3 = vpack.c.bf16 %v1040_v57, %v1039_v56  ;;  %v1087_v56 = vld [vmem:[#allocation7 + $0x470] sm:$0xff]  ;;  %v1088_v57 = vld [vmem:[#allocation7 + $0x478] sm:$0xff] }
 0x30e   : > { %4393 = vrot.lane.b32.xlu0 %v4387_v9, %s4744_s25  ;;  %v3862_v9 = vpack.c.bf16 %v1064_v0, %v1063_v63  ;;  %v1054_v63 = vld [vmem:[#allocation7 + $0x368] sm:$0xff]  ;;  %v1023_v0 = vld [vmem:[#allocation7 + $0x270] sm:$0xff] }
 0x365   : > { %v4339_v12 = vpop.permute.xlu1 %4338 }
 0x366   : > { %v4341_v15 = vunpack.i.h.bf16 %v4339_v12  ;;  %v4340_v16 = vunpack.i.l.bf16 %v4339_v12  ;;  %v1017_v12 = vld [vmem:[#allocation7 + $0x240] sm:$0xff] }
 0x368   : > { %v854_v22 = vsel %vm853_vm7, %v4340_v16, %v4341_v15  ;;  %v1018_v15 = vld [vmem:[#allocation7 + $0x248] sm:$0xff]  ;;  %v1065_v16 = vld [vmem:[#allocation7 + $0x3c0] sm:$0xff] }
 0x369   : > { %v4349_v27 = vpop.permute.xlu1 %4348  ;;  %1160 = vmatprep.mubr.f32.mxu1 %v854_v22  ;;  %v3836_v24 = vpack.c.bf16 %v1018_v15, %v1017_v12 }
 0x36a   : > { %v4351_v30 = vunpack.i.h.bf16 %v4349_v27  ;;  %v4350_v32 = vunpack.i.l.bf16 %v4349_v27  ;;  %2940 = vmatmul.mubr.msk.f32.vlgmr.msra.gmra.mrb[4].mxu1 %vm5149_vm8, %v5102_v31  ;;  %v1050_v27 = vld [vmem:[#allocation7 + $0x348] sm:$0xff] }
 0x36b   : > { %3821 = vmatpush3.bf16.msra.mxu1 %v3820_v18  ;;  %v1066_v18 = vld [vmem:[#allocation7 + $0x3c8] sm:$0xff]  ;;  %v3868_v44 = vpack.c.bf16 %v1050_v27, %v1049_v26 }
 0x36c   : > { %3823 = vmatprep.subr.bf16.mxu1 %v3822_v23  ;;  %v867_v39 = vsel %vm866_vm9, %v4350_v32, %v4351_v30  ;;  %v4344_v47 = vpop.permute.xlu0 %4343  ;;  %v3864_v23 = vpack.c.bf16 %v1048_v11, %v1047_v10  ;;  %v3866_v25 = vpack.c.bf16 %v1066_v18, %v1065_v16  ;;  %v3838_v30 = vpack.c.bf16 %v1036_v21, %v1035_v20  ;;  %v1020_v32 = vld [vmem:[#allocation7 + $0x258] sm:$0xff] }
 0x36d   : > { %1236 = vmatmul.mubr.f32.vlgmr.msra.gmra.mrb[6].mxu0 %v867_v39  ;;  %v4346_v52 = vunpack.i.h.bf16 %v4344_v47  ;;  %v4345_v31 = vunpack.i.l.bf16 %v4344_v47  ;;  %v3840_v45 = vpack.c.bf16 %v1020_v32, %v1019_v28  ;;  %v1051_v47 = vld [vmem:[#allocation7 + $0x350] sm:$0xff]  ;;  %v3876_v10 = vpack.c.bf16 %v1054_v63, %v1053_v62  ;;  %v1076_v20 = vld [vmem:[#allocation7 + $0x418] sm:$0xff]  ;;  %v1077_v32 = vld [vmem:[#allocation7 + $0x420] sm:$0xff] }
 0x36e   : > { %3853 = vmatpush3.bf16.msra.mxu0 %v3852_v33  ;;  %1240 = vmatprep.mubr.f32.mxu0 %v5124_v59  ;;  %v1067_v33 = vld [vmem:[#allocation7 + $0x3d0] sm:$0xff]  ;;  %v3872_v58 = vpack.c.bf16 %v1052_v50, %v1051_v47  ;;  %v1081_v47 = vld [vmem:[#allocation7 + $0x440] sm:$0xff]  ;;  %v1082_v50 = vld [vmem:[#allocation7 + $0x448] sm:$0xff] }
 0x36f   : > { %3825 = vmatpush3.bf16.msra.mxu1 %v3824_v34  ;;  %3855 = vmatprep.subr.bf16.mxu0 %v3854_v35  ;;  %v855_v60 = vsel %vm853_vm7, %v4345_v31, %v4346_v52  ;;  %v1068_v34 = vld [vmem:[#allocation7 + $0x3d8] sm:$0xff]  ;;  %v3842_v31 = vpack.c.bf16 %v1038_v37, %v1037_v36 }
 0x370   : > { %3827 = vmatprep.subr.bf16.mxu1 %v3826_v40  ;;  %1165 = vmatprep.mubr.f32.mxu1 %v855_v60  ;;  %v4354_v1 = vpop.permute.xlu0 %4353  ;;  %v5163_v38 = vpop.permute.xlu1 %4358  ;;  %v3870_v46 = vpack.c.bf16 %v1068_v34, %v1067_v33  ;;  %v1078_v33 = vld [vmem:[#allocation7 + $0x428] sm:$0xff] }
 0x371   : > { %v4356_v59 = vunpack.i.h.bf16 %v4354_v1  ;;  %v4355_v5 = vunpack.i.l.bf16 %v4354_v1  ;;  %1166 = vmatmul.mubr.f32.gmra.mrb[6].mxu1 %v5112_v42  ;;  %v4361_v15 = vunpack.i.h.bf16 %v5163_v38  ;;  %v4360_v16 = vunpack.i.l.bf16 %v5163_v38 }
 0x372   : > { %3857 = vmatpush3.bf16.msra.mxu0 %v3856_v53  ;;  %v1022_v53 = vld [vmem:[#allocation7 + $0x268] sm:$0xff]  ;;  %v3890_v37 = vpack.c.bf16 %v1078_v33, %v1077_v32 }
 0x373   : > { %3829 = vmatpush3.bf16.msra.mxu1 %v3828_v54  ;;  %3859 = vmatprep.subr.bf16.mxu0 %v3858_v55  ;;  %v905_v13 = vsel %vm866_vm9, %v4355_v5, %v4356_v59  ;;  %v1069_v54 = vld [vmem:[#allocation7 + $0x3e0] sm:$0xff]  ;;  %v1070_v55 = vld [vmem:[#allocation7 + $0x3e8] sm:$0xff]  ;;  %v3844_v60 = vpack.c.bf16 %v1022_v53, %v1021_v51  ;;  %v1024_v59 = vld [vmem:[#allocation7 + $0x278] sm:$0xff] }
 0x374   : > { %3831 = vmatprep.subr.bf16.mxu1 %v3830_v61  ;;  %v4364_v19 = vpop.permute.xlu0 %4363  ;;  %1310 = vmatprep.mubr.f32.mxu1 %v905_v13  ;;  %v3874_v61 = vpack.c.bf16 %v1070_v55, %v1069_v54  ;;  %v4369_v1 = vpop.permute.xlu1 %4368  ;;  %v1071_v5 = vld [vmem:[#allocation7 + $0x3f0] sm:$0xff]  ;;  %v3848_v11 = vpack.c.bf16 %v1024_v59, %v1023_v0  ;;  %v1085_v53 = vld [vmem:[#allocation7 + $0x460] sm:$0xff]  ;;  %v1086_v54 = vld [vmem:[#allocation7 + $0x468] sm:$0xff] }
 0x375   : > { %v4366_v42 = vunpack.i.h.bf16 %v4364_v19  ;;  %v4365_v22 = vunpack.i.l.bf16 %v4364_v19  ;;  %v1055_v13 = vld [vmem:[#allocation7 + $0x370] sm:$0xff]  ;;  %v4371_v21 = vunpack.i.h.bf16 %v4369_v1  ;;  %v3906_v55 = vpack.c.bf16 %v1086_v54, %v1085_v53  ;;  %v2938_v0 = vld [vmem:[%s5388_s4] ss:$0 sm:$0xff]  ;;  %v1623_v53 = vld [vmem:[#allocation8 + $0x98] sm:$0xff] }
 0x376   : > { %3861 = vmatpush3.bf16.msra.mxu0 %v3860_v6  ;;  %v1072_v6 = vld [vmem:[#allocation7 + $0x3f8] sm:$0xff]  ;;  %v1075_v19 = vld [vmem:[#allocation7 + $0x410] sm:$0xff]  ;;  %v1636_v54 = vld [vmem:[#allocation8 + $0x100] sm:$0xff] }
 0x377   : > { %3833 = vmatpush3.bf16.msra.mxu1 %v3832_v8  ;;  %3863 = vmatprep.subr.bf16.mxu0 %v3862_v9  ;;  %v868_v29 = vsel %vm866_vm9, %v4365_v22, %v4366_v42  ;;  %v1073_v8 = vld [vmem:[#allocation7 + $0x400] sm:$0xff]  ;;  %v1074_v9 = vld [vmem:[#allocation7 + $0x408] sm:$0xff]  ;;  %v3878_v12 = vpack.c.bf16 %v1072_v6, %v1071_v5  ;;  %v4370_v42 = vunpack.i.l.bf16 %v4369_v1  ;;  %v3886_v26 = vpack.c.bf16 %v1076_v20, %v1075_v19  ;;  %v1083_v51 = vld [vmem:[#allocation7 + $0x450] sm:$0xff] }
 0x378   : > { %3835 = vmatprep.subr.bf16.mxu1 %v3834_v14  ;;  %v4374_v35 = vpop.permute.xlu0 %4373  ;;  %1241 = vmatmul.mubr.f32.gmra.mrb[8].mxu0 %v868_v29  ;;  %v1056_v14 = vld [vmem:[#allocation7 + $0x378] sm:$0xff]  ;;  %v3882_v18 = vpack.c.bf16 %v1074_v9, %v1073_v8  ;;  %v4379_v22 = vpop.permute.xlu1 %4378 }
 0x379   : > { %v4376_v39 = vunpack.i.h.bf16 %v4374_v35  ;;  %v4375_v40 = vunpack.i.l.bf16 %v4374_v35  ;;  %v4381_v27 = vunpack.i.h.bf16 %v4379_v22  ;;  %v4380_v28 = vunpack.i.l.bf16 %v4379_v22 }
 0x37a   : > { %3865 = vmatpush3.bf16.msra.mxu0 %v3864_v23  ;;  %v906_v36 = vsel %vm866_vm9, %v4370_v42, %v4371_v21 }
 0x37b   : > { %3837 = vmatpush3.bf16.msra.mxu1 %v3836_v24  ;;  %3867 = vmatprep.subr.bf16.mxu0 %v3866_v25  ;;  %v929_v52 = vsel %vm853_vm7, %v4375_v40, %v4376_v39  ;;  %v3880_v24 = vpack.c.bf16 %v1056_v14, %v1055_v13  ;;  %v893_v25 = vsel %vm853_vm7, %v4360_v16, %v4361_v15  ;;  %v1079_v40 = vld [vmem:[#allocation7 + $0x430] sm:$0xff] }
 0x37c   : > { %3839 = vmatprep.subr.bf16.mxu1 %v3838_v30  ;;  %1385 = vmatprep.mubr.f32.mxu0 %v929_v52  ;;  %v4384_v2 = vpop.permute.xlu0 %4383  ;;  %v894_v38 = vsel %vm853_vm7, %v4380_v28, %v4381_v27  ;;  %v1084_v52 = vld [vmem:[#allocation7 + $0x458] sm:$0xff] }
 0x37d   : > { %v4386_v34 = vunpack.i.h.bf16 %v4384_v2  ;;  %v4385_v35 = vunpack.i.l.bf16 %v4384_v2 }
 0x37e   : > { %3869 = vmatpush3.bf16.msra.mxu0 %v3868_v44  ;;  %v1080_v44 = vld [vmem:[#allocation7 + $0x438] sm:$0xff] }
 0x37f   : > { %3841 = vmatpush3.bf16.msra.mxu1 %v3840_v45  ;;  %3871 = vmatprep.subr.bf16.mxu0 %v3870_v46  ;;  %v941_v45 = vsel %vm866_vm9, %v4385_v35, %v4386_v34  ;;  %v3894_v46 = vpack.c.bf16 %v1080_v44, %v1079_v40  ;;  %v1620_v40 = vld [vmem:[#allocation8 + $0x80] sm:$0xff]  ;;  %v1621_v44 = vld [vmem:[#allocation8 + $0x88] sm:$0xff] }
 0x380   : > { %3843 = vmatprep.subr.bf16.mxu1 %v3842_v31  ;;  %v4394_v23 = vpop.permute.xlu0 %4393  ;;  %v3902_v31 = vpack.c.bf16 %v1084_v52, %v1083_v51 }
 0x381   : > { %v4396_v29 = vunpack.i.h.bf16 %v4394_v23  ;;  %v4395_v30 = vunpack.i.l.bf16 %v4394_v23 }
 0x382   : > { %3873 = vmatpush3.bf16.msra.mxu0 %v3872_v58  ;;  %v4389_v58 = vpop.permute.xlu1 %4388 }
 0x383   : > { %3845 = vmatpush3.bf16.msra.mxu1 %v3844_v60  ;;  %3875 = vmatprep.subr.bf16.mxu0 %v3874_v61  ;;  %v930_v39 = vsel %vm853_vm7, %v4395_v30, %v4396_v29  ;;  %v4391_v60 = vunpack.i.h.bf16 %v4389_v58  ;;  %v4390_v61 = vunpack.i.l.bf16 %v4389_v58 }
 0x384   : > { %3847 = vmatprep.subr.bf16.mxu1 %v3846_v3 }
 0x385   : > { %v942_v62 = vsel %vm866_vm9, %v4390_v61, %v4391_v60  ;;  %v1654_v61 = vld [vmem:[#allocation8 + $0x190] sm:$0xff] }
 0x386   : > { %3877 = vmatpush3.bf16.msra.mxu0 %v3876_v10 }
 0x387   : > { %3849 = vmatpush3.bf16.msra.mxu1 %v3848_v11  ;;  %3879 = vmatprep.subr.bf16.mxu0 %v3878_v12 }
 0x388   : > { %3883 = vmatprep.subr.bf16.mxu1 %v3882_v18 }
 0x38a   : > { %1311 = vmatmul.mubr.f32.vlgmr.msra.gmra.mrb[8].mxu1 %v893_v25  ;;  %3881 = vmatpush3.bf16.msra.mxu0 %v3880_v24 }
 0x38b   : > { %1315 = vmatprep.mubr.f32.mxu1 %v906_v36  ;;  %3885 = vmatpush3.bf16.msra.mxu1 %v3882_v18 }
 0x38c   : > { %3887 = vmatprep.subr.bf16.mxu1 %v3886_v26 }
 0x38d   : > { %1386 = vmatmul.mubr.f32.vlgmr.msra.gmra.mrb[10].mxu0 %v5133_v4  ;;  %v3898_v4 = vpack.c.bf16 %v1082_v50, %v1081_v47  ;;  %v1605_v47 = vld [vmem:[#allocation8 + $0x8] sm:$0xff]  ;;  %v1652_v50 = vld [vmem:[#allocation8 + $0x180] sm:$0xff] }
 0x38e   : > { %1316 = vmatmul.mubr.f32.gmra.mrb[10].mxu1 %v894_v38  ;;  %1390 = vmatprep.mubr.f32.mxu0 %v930_v39 }
 0x38f   : > { %3889 = vmatpush3.bf16.msra.mxu1 %v3886_v26  ;;  %3601 = vmatprep.mubr.f32.mxu1 %v941_v45  ;;  %v1604_v45 = vld [vmem:[#allocation8] sm:$0xff] }
 0x390   : > { %3891 = vmatprep.subr.bf16.mxu1 %v3890_v37  ;;  %v3916_v51 = vpack.c.bf16 %v1605_v47, %v1604_v45  ;;  %v1662_v45 = vld [vmem:[#allocation8 + $0x1d0] sm:$0xff] }
 0x391   : > { %1391 = vmatmul.mubr.f32.gmra.mrb[12].mxu0 %v5139_v7  ;;  %v3910_v7 = vpack.c.bf16 %v1088_v57, %v1087_v56  ;;  %v1637_v56 = vld [vmem:[#allocation8 + $0x108] sm:$0xff]  ;;  %v1606_v57 = vld [vmem:[#allocation8 + $0x10] sm:$0xff] }
 0x392   : > { %v3948_v58 = vpack.c.bf16 %v1637_v56, %v1636_v54  ;;  %v1646_v54 = vld [vmem:[#allocation8 + $0x150] sm:$0xff] }
 0x393   : > { %3893 = vmatpush3.bf16.msra.mxu1 %v3890_v37 }
 0x394   : > { %3895 = vmatprep.subr.bf16.mxu1 %v3894_v46 }
 0x397   : > { %3897 = vmatpush3.bf16.msra.mxu1 %v3894_v46  ;;  %v3914_v46 = vpack.c.bf16 %v1621_v44, %v1620_v40  ;;  %v1645_v40 = vld [vmem:[#allocation8 + $0x148] sm:$0xff] }
 0x398   : > { %3899 = vmatprep.subr.bf16.mxu1 %v3898_v4 }
 0x399   : > { %3915 = vmatprep.subr.bf16.mxu0 %v3914_v46  ;;  %v1663_v46 = vld [vmem:[#allocation8 + $0x1d8] sm:$0xff] }
 0x39a   : > { %3917 = vmatpush3.bf16.msra.mxu0 %v3916_v51 }
 0x39b   : > { %3901 = vmatpush3.bf16.msra.mxu1 %v3898_v4  ;;  %v1653_v4 = vld [vmem:[#allocation8 + $0x188] sm:$0xff] }
 0x39c   : > { %3903 = vmatprep.subr.bf16.mxu1 %v3902_v31  ;;  %v3946_v52 = vpack.c.bf16 %v1653_v4, %v1652_v50  ;;  %v1614_v50 = vld [vmem:[#allocation8 + $0x50] sm:$0xff]  ;;  %v1615_v4 = vld [vmem:[#allocation8 + $0x58] sm:$0xff] }
 0x39d   : > { %v3936_v56 = vpack.c.bf16 %v1615_v4, %v1614_v50 }
 0x39f   : > { %3905 = vmatpush3.bf16.msra.mxu1 %v3902_v31  ;;  %v1622_v31 = vld [vmem:[#allocation8 + $0x90] sm:$0xff] }
 0x3a0   : > { %3907 = vmatprep.subr.bf16.mxu1 %v3906_v55 }
 0x3a3   : > { %3909 = vmatpush3.bf16.msra.mxu1 %v3906_v55  ;;  %v3918_v55 = vpack.c.bf16 %v1623_v53, %v1622_v31  ;;  %v1633_v31 = vld [vmem:[#allocation8 + $0xe8] sm:$0xff]  ;;  %v3966_v53 = vpack.c.bf16 %v1663_v46, %v1662_v45 }
 0x3a4   : > { %3911 = vmatprep.subr.bf16.mxu1 %v3910_v7 }
 0x3a5   : > { %3919 = vmatprep.subr.bf16.mxu0 %v3918_v55  ;;  %v1647_v55 = vld [vmem:[#allocation8 + $0x158] sm:$0xff] }
 0x3a7   : > { %3913 = vmatpush3.bf16.msra.mxu1 %v3910_v7  ;;  %v1607_v7 = vld [vmem:[#allocation8 + $0x18] sm:$0xff] }
 0x3a8   : > { %3947 = vmatprep.subr.bf16.mxu1 %v3946_v52  ;;  %v3920_v60 = vpack.c.bf16 %v1607_v7, %v1606_v57  ;;  %v1632_v52 = vld [vmem:[#allocation8 + $0xe0] sm:$0xff]  ;;  %v1665_v7 = vld [vmem:[#allocation8 + $0x1e8] sm:$0xff] }
 0x3a9   : > { %v1664_v57 = vld [vmem:[#allocation8 + $0x1e0] sm:$0xff] }
 0x3aa   : > { %3602 = vmatmul.mubr.f32.vlgmr.msra.gmra.mrb[12].mxu1 %v942_v62  ;;  %v1655_v62 = vld [vmem:[#allocation8 + $0x198] sm:$0xff]  ;;  %3921 = vmatpush3.bf16.msra.mxu0 %v3920_v60  ;;  %v1616_v60 = vld [vmem:[#allocation8 + $0x60] sm:$0xff] }
 0x3ab   : > { %3949 = vmatpush3.bf16.msra.mxu1 %v3948_v58  ;;  %v3938_v58 = vpack.c.bf16 %v1633_v31, %v1632_v52 }
 0x43d   : > { %v3072_v63 = vpop.f32.mrb[4].mxu1 }
 0x43e   : > { %v3073_v1 = vpop.f32.mrb[5].mxu1 }
 0x43f   : > { %v3074_v2 = vadd.f32 %v3073_v1, %v3072_v63  ;;  %v1624_v63 = vld [vmem:[#allocation8 + $0xa0] sm:$0xff]  ;;  %v1625_v1 = vld [vmem:[#allocation8 + $0xa8] sm:$0xff] }
 0x440   : > { %v3110_v3 = vpop.f32.mrb[6].mxu0 }
 0x441   : > { %v1163_v59 = vadd.f32 %v3074_v2, %v2938_v0  ;;  %v3111_v5 = vpop.f32.mrb[7].mxu0  ;;  %v1638_v2 = vld [vmem:[#allocation8 + $0x110] sm:$0xff] }
 0x442   : > { %v3112_v6 = vadd.f32 %v3111_v5, %v3110_v3  ;;  %v1639_v3 = vld [vmem:[#allocation8 + $0x118] sm:$0xff] }
 0x443   : > { %v3952_v5 = vpack.c.bf16 %v1639_v3, %v1638_v2  ;;  %v1648_v2 = vld [vmem:[#allocation8 + $0x160] sm:$0xff]  ;;  %v1649_v3 = vld [vmem:[#allocation8 + $0x168] sm:$0xff] }
 0x444   : > { %v1238_v8 = vadd.f32 %v3112_v6, %v1163_v59  ;;  %v3075_v9 = vpop.f32.mrb[6].mxu1  ;;  %v3922_v59 = vpack.c.bf16 %v1625_v1, %v1624_v63  ;;  %v1608_v6 = vld [vmem:[#allocation8 + $0x20] sm:$0xff]  ;;  %v1634_v63 = vld [vmem:[#allocation8 + $0xf0] sm:$0xff]  ;;  %v3970_v1 = vpack.c.bf16 %v1665_v7, %v1664_v57 }
 0x445   : > { %v3076_v10 = vpop.f32.mrb[7].mxu1 }
 0x446   : > { %v3077_v11 = vadd.f32 %v3076_v10, %v3075_v9  ;;  %v1656_v9 = vld [vmem:[#allocation8 + $0x1a0] sm:$0xff]  ;;  %v1657_v10 = vld [vmem:[#allocation8 + $0x1a8] sm:$0xff]  ;;  %3923 = vmatprep.subr.bf16.mxu0 %v3922_v59 }
 0x448   : > { %v1168_v14 = vadd.f32 %v3077_v11, %v2938_v0  ;;  %v3950_v0 = vpack.c.bf16 %v1655_v62, %v1654_v61  ;;  %v1626_v11 = vld [vmem:[#allocation8 + $0xb0] sm:$0xff]  ;;  %v1617_v61 = vld [vmem:[#allocation8 + $0x68] sm:$0xff]  ;;  %v3968_v62 = vpack.c.bf16 %v1647_v55, %v1646_v54 }
 0x449   : > { %v3940_v59 = vpack.c.bf16 %v1617_v61, %v1616_v60 }
 0x44a   : > { %3951 = vmatprep.subr.bf16.mxu1 %v3950_v0  ;;  %v1635_v0 = vld [vmem:[#allocation8 + $0xf8] sm:$0xff] }
 0x44b   : > { %v3113_v12 = vpop.f32.mrb[8].mxu0  ;;  %3953 = vmatpush3.bf16.msra.mxu1 %v3952_v5  ;;  %v3942_v5 = vpack.c.bf16 %v1635_v0, %v1634_v63 }
 0x44c   : > { %v3114_v13 = vpop.f32.mrb[9].mxu0 }
 0x44d   : > { %v3115_v15 = vadd.f32 %v3114_v13, %v3113_v12  ;;  %v1627_v12 = vld [vmem:[#allocation8 + $0xb8] sm:$0xff] }
 0x44f   : > { %v1243_v16 = vadd.f32 %v3115_v15, %v1168_v14  ;;  %v3954_v14 = vpack.c.bf16 %v1657_v10, %v1656_v9  ;;  %v1640_v15 = vld [vmem:[#allocation8 + $0x120] sm:$0xff]  ;;  %v1619_v9 = vld [vmem:[#allocation8 + $0x78] sm:$0xff]  ;;  %v1666_v10 = vld [vmem:[#allocation8 + $0x1f0] sm:$0xff] }
 0x451   : > { %3955 = vmatprep.subr.bf16.mxu1 %v3954_v14  ;;  %v1651_v14 = vld [vmem:[#allocation8 + $0x178] sm:$0xff] }
 0x45d   : > { %v3148_v18 = vpop.f32.mrb[8].mxu1 }
 0x45e   : > { %v3149_v19 = vpop.f32.mrb[9].mxu1 }
 0x45f   : > { %v3150_v20 = vadd.f32 %v3149_v19, %v3148_v18  ;;  %v1610_v18 = vld [vmem:[#allocation8 + $0x30] sm:$0xff]  ;;  %v3926_v19 = vpack.c.bf16 %v1627_v12, %v1626_v11  ;;  %v1667_v12 = vld [vmem:[#allocation8 + $0x1f8] sm:$0xff] }
 0x460   : > { %v3186_v21 = vpop.f32.mrb[10].mxu0 }
 0x461   : > { %v1313_v42 = vadd.f32 %v3150_v20, %v1238_v8  ;;  %v3151_v22 = vpop.f32.mrb[10].mxu1  ;;  %v3187_v23 = vpop.f32.mrb[11].mxu0  ;;  %v1609_v8 = vld [vmem:[#allocation8 + $0x28] sm:$0xff]  ;;  %v1611_v20 = vld [vmem:[#allocation8 + $0x38] sm:$0xff] }
 0x462   : > { %v3188_v24 = vadd.f32 %v3187_v23, %v3186_v21  ;;  %v3152_v25 = vpop.f32.mrb[11].mxu1  ;;  %v3924_v13 = vpack.c.bf16 %v1609_v8, %v1608_v6  ;;  %v1658_v21 = vld [vmem:[#allocation8 + $0x1b0] sm:$0xff]  ;;  %v1628_v23 = vld [vmem:[#allocation8 + $0xc0] sm:$0xff]  ;;  %v3972_v6 = vpack.c.bf16 %v1649_v3, %v1648_v2 }
 0x463   : > { %v3153_v26 = vadd.f32 %v3152_v25, %v3151_v22  ;;  %v1618_v8 = vld [vmem:[#allocation8 + $0x70] sm:$0xff] }
 0x464   : > { %v3189_v27 = vpop.f32.mrb[12].mxu0  ;;  %v1388_v28 = vadd.f32 %v3188_v24, %v1313_v42  ;;  %v1659_v42 = vld [vmem:[#allocation8 + $0x1b8] sm:$0xff]  ;;  %v1629_v24 = vld [vmem:[#allocation8 + $0xc8] sm:$0xff]  ;;  %3925 = vmatpush3.bf16.msra.mxu0 %v3924_v13  ;;  %v3944_v11 = vpack.c.bf16 %v1619_v9, %v1618_v8  ;;  %v1650_v13 = vld [vmem:[#allocation8 + $0x170] sm:$0xff] }
 0x465   : > { %v1318_v29 = vadd.f32 %v3153_v26, %v1243_v16  ;;  %v3190_v30 = vpop.f32.mrb[13].mxu0  ;;  %v1641_v16 = vld [vmem:[#allocation8 + $0x128] sm:$0xff]  ;;  %v3958_v25 = vpack.c.bf16 %v1659_v42, %v1658_v21  ;;  %v1642_v26 = vld [vmem:[#allocation8 + $0x130] sm:$0xff]  ;;  %3927 = vmatprep.subr.bf16.mxu0 %v3926_v19 }
 0x466   : > { %v3191_v32 = vadd.f32 %v3190_v30, %v3189_v27  ;;  %v3956_v22 = vpack.c.bf16 %v1641_v16, %v1640_v15  ;;  %v1643_v27 = vld [vmem:[#allocation8 + $0x138] sm:$0xff]  ;;  %v1661_v30 = vld [vmem:[#allocation8 + $0x1c8] sm:$0xff]  ;;  %v3974_v15 = vpack.c.bf16 %v1667_v12, %v1666_v10  ;;  %v3976_v16 = vpack.c.bf16 %v1651_v14, %v1650_v13  ;;  %v1686_v9 = vld [vmem:[#allocation8 + $0x290] sm:$0xff] }
 0x467   : > { %v1685_v19 = vld [vmem:[#allocation8 + $0x288] sm:$0xff]  ;;  %v1687_v10 = vld [vmem:[#allocation8 + $0x298] sm:$0xff] }
 0x468   : > { %v1393_v33 = vadd.f32 %v3191_v32, %v1318_v29  ;;  %v1660_v29 = vld [vmem:[#allocation8 + $0x1c0] sm:$0xff]  ;;  %v3930_v32 = vpack.c.bf16 %v1629_v24, %v1628_v23  ;;  %3957 = vmatpush3.bf16.msra.mxu1 %v3956_v22 }
 0x469   : > { %3959 = vmatprep.subr.bf16.mxu1 %v3958_v25  ;;  %v1716_v24 = vld [vmem:[#allocation8 + $0x380] sm:$0xff] }
 0x47d   : > { %v3603_v34 = vpop.f32.mrb[12].mxu1 }
 0x47e   : > { %v1468_v35 = vadd.f32 %v3603_v34, %v1393_v33  ;;  %v1462_v36 = vpop.f32.mrb[13].mxu1  ;;  %v1612_v33 = vld [vmem:[#allocation8 + $0x40] sm:$0xff]  ;;  %v1613_v34 = vld [vmem:[#allocation8 + $0x48] sm:$0xff] }
 0x47f   : > { %v1463_v37 = vadd.f32 %v1462_v36, %v1388_v28  ;;  %v3928_v28 = vpack.c.bf16 %v1611_v20, %v1610_v18  ;;  %v1630_v36 = vld [vmem:[#allocation8 + $0xd0] sm:$0xff]  ;;  %v3932_v44 = vpack.c.bf16 %v1613_v34, %v1612_v33  ;;  %v1684_v18 = vld [vmem:[#allocation8 + $0x280] sm:$0xff] }
 0x480   : > { %v1472_v38 = vmax.f32 %v1468_v35, 0.0  ;;  %v3960_v35 = vpack.c.bf16 %v1643_v27, %v1642_v26  ;;  %v3978_v21 = vpack.c.bf16 %v1685_v19, %v1684_v18  ;;  %v1700_v18 = vld [vmem:[#allocation8 + $0x300] sm:$0xff]  ;;  %v1701_v19 = vld [vmem:[#allocation8 + $0x308] sm:$0xff] }
 0x481   : > { %v1471_v39 = vmax.f32 %v1463_v37, 0.0  ;;  %v1631_v37 = vld [vmem:[#allocation8 + $0xd8] sm:$0xff]  ;;  %3929 = vmatpush3.bf16.msra.mxu0 %v3928_v28 }
 0x482   : > { %1477 = vrot.lane.b32.xlu0 %v1472_v38, %s4748_s18  ;;  %v3962_v38 = vpack.c.bf16 %v1661_v30, %v1660_v29  ;;  %3931 = vmatprep.subr.bf16.mxu0 %v3930_v32  ;;  %v3934_v47 = vpack.c.bf16 %v1631_v37, %v1630_v36  ;;  %v1717_v29 = vld [vmem:[#allocation8 + $0x388] sm:$0xff] }
 0x483   : > { %1475 = vrot.lane.b32.xlu1 %v1471_v39, %s4748_s18  ;;  %v1644_v39 = vld [vmem:[#allocation8 + $0x140] sm:$0xff]  ;;  %3961 = vmatpush3.bf16.msra.mxu1 %v3960_v35  ;;  %v4010_v33 = vpack.c.bf16 %v1717_v29, %v1716_v24  ;;  %v1718_v24 = vld [vmem:[#allocation8 + $0x390] sm:$0xff] }
 0x484   : > { %v3964_v51 = vpack.c.bf16 %v1645_v40, %v1644_v39  ;;  %3963 = vmatprep.subr.bf16.mxu1 %v3962_v38 }
 0x485   : > { %3933 = vmatpush3.bf16.msra.mxu0 %v3932_v44 }
 0x486   : > { %3935 = vmatprep.subr.bf16.mxu0 %v3934_v47 }
 0x487   : > { %3965 = vmatpush3.bf16.msra.mxu1 %v3964_v51 }
 0x488   : > { %3967 = vmatprep.subr.bf16.mxu1 %v3966_v53 }
 0x489   : > { %3937 = vmatpush3.bf16.msra.mxu0 %v3936_v56 }
 0x48a   : > { %3939 = vmatprep.subr.bf16.mxu0 %v3938_v58 }
 0x48b   : > { %3969 = vmatpush3.bf16.msra.mxu1 %v3968_v62 }
 0x48c   : > { %3971 = vmatprep.subr.bf16.mxu1 %v3970_v1 }
 0x48d   : > { %3941 = vmatpush3.bf16.msra.mxu0 %v3940_v59 }
 0x48e   : > { %3943 = vmatprep.subr.bf16.mxu0 %v3942_v5  ;;  %v1668_v5 = vld [vmem:[#allocation8 + $0x200] sm:$0xff] }
 0x48f   : > { %3973 = vmatpush3.bf16.msra.mxu1 %v3972_v6  ;;  %v1669_v6 = vld [vmem:[#allocation8 + $0x208] sm:$0xff] }
 0x490   : > { %3975 = vmatprep.subr.bf16.mxu1 %v3974_v15 }
 0x491   : > { %3945 = vmatpush3.bf16.msra.mxu0 %v3944_v11 }
 0x492   : > { %3979 = vmatprep.subr.bf16.mxu0 %v3978_v21  ;;  %v3982_v21 = vpack.c.bf16 %v1687_v10, %v1686_v9 }
 0x493   : > { %3977 = vmatpush3.bf16.msra.mxu1 %v3976_v16  ;;  %v3980_v16 = vpack.c.bf16 %v1669_v6, %v1668_v5  ;;  %v1692_v5 = vld [vmem:[#allocation8 + $0x2c0] sm:$0xff]  ;;  %v1693_v6 = vld [vmem:[#allocation8 + $0x2c8] sm:$0xff] }
 0x494   : > { %4011 = vmatprep.subr.bf16.mxu1 %v4010_v33  ;;  %v1688_v33 = vld [vmem:[#allocation8 + $0x2a0] sm:$0xff] }
 0x4f4   : > { %v1478_v20 = vpop.permute.xlu0 %1477 }
 0x4f5   : > { %v1482_v42 = vsel %vm819_vm6, 0.0, %v1478_v20  ;;  %v1484_v22 = vsel %vm819_vm6, %v1478_v20, 0.0  ;;  %v1476_v23 = vpop.permute.xlu1 %1475 }
 0x4f6   : > { %v1491_v25 = vrot.slane %v1482_v42, 7  ;;  %v1493_v26 = vrot.slane %v1484_v22, 7  ;;  %v1481_v27 = vsel %vm819_vm6, 0.0, %v1476_v23  ;;  %v1483_v28 = vsel %vm819_vm6, %v1476_v23, 0.0  ;;  %v1670_v42 = vld [vmem:[#allocation8 + $0x210] sm:$0xff]  ;;  %v1671_v22 = vld [vmem:[#allocation8 + $0x218] sm:$0xff] }
 0x4f7   : > { %v5185_v30 = vrot.slane %v1481_v27, 7  ;;  %v1490_v32 = vrot.slane %v1483_v28, 7 }
 0x4f8   : > { %v1502_v46 = vsel %vm427_vm2, %v1491_v25, 0.0  ;;  %v1503_v47 = vsel %vm427_vm2, %v1493_v26, 0.0 }
 0x4f9   : > { %v5189_v34 = vsel %vm427_vm2, %v5185_v30, %v1491_v25  ;;  %v1494_v35 = vsel %vm427_vm2, %v1490_v32, %v1493_v26  ;;  %v1500_v36 = vsel %vm427_vm2, 0.0, %v5185_v30  ;;  %v1501_v37 = vsel %vm427_vm2, 0.0, %v1490_v32  ;;  %v1719_v25 = vld [vmem:[#allocation8 + $0x398] sm:$0xff] }
 0x4fa   : > { %v1539_v38 = vrot.slane %v1501_v37, 1  ;;  %v4397_v39 = vpack.i.bf16 %v1501_v37, %v1500_v36  ;;  %v4402_v40 = vpack.i.bf16 %v1494_v35, %v5189_v34  ;;  %v1531_v44 = vrot.slane %v1500_v36, 1 }
 0x4fb   : > { %v1532_v45 = vrot.slane %v5189_v34, 1  ;;  %v1540_v50 = vrot.slane %v1494_v35, 1  ;;  %v1534_v52 = vrot.slane %v1502_v46, 1  ;;  %v1542_v31 = vrot.slane %v1503_v47, 1 }
 0x4fc   : > { %4398 = vrot.lane.b32.xlu1 %v4397_v39, %s4744_s25  ;;  %4403 = vrot.lane.b32.xlu0 %v4402_v40, %s4744_s25  ;;  %v1568_v54 = vrot.slane %v1500_v36, 2  ;;  %v1575_v55 = vrot.slane %v1501_v37, 2  ;;  %v1569_v56 = vrot.slane %v5189_v34, 2  ;;  %v1576_v57 = vrot.slane %v1494_v35, 2  ;;  %v1689_v35 = vld [vmem:[#allocation8 + $0x2a8] sm:$0xff] }
 0x4fd   : > { %v1533_v4 = vsel %vm450_vm3, %v1531_v44, %v1532_v45  ;;  %v1541_v51 = vsel %vm450_vm3, %v1539_v38, %v1540_v50  ;;  %v5207_v7 = vsel %vm450_vm3, %v1532_v45, %v1534_v52  ;;  %v1543_v58 = vsel %vm450_vm3, %v1540_v50, %v1542_v31  ;;  %v1720_v50 = vld [vmem:[#allocation8 + $0x3a0] sm:$0xff]  ;;  %v1691_v52 = vld [vmem:[#allocation8 + $0x2b8] sm:$0xff] }
 0x4fe   : > { %1894 = vmatprep.mubr.f32.mxu1 %v1533_v4  ;;  %v4412_v53 = vpack.i.bf16 %v1541_v51, %v1533_v4  ;;  %v5212_v60 = vsel %vm474_vm4, %v1568_v54, %v1569_v56  ;;  %v1577_v61 = vsel %vm474_vm4, %v1575_v55, %v1576_v57  ;;  %v4427_v62 = vpack.i.bf16 %v1543_v58, %v5207_v7  ;;  %v1721_v4 = vld [vmem:[#allocation8 + $0x3a8] sm:$0xff]  ;;  %v1690_v51 = vld [vmem:[#allocation8 + $0x2b0] sm:$0xff]  ;;  %v1704_v58 = vld [vmem:[#allocation8 + $0x320] sm:$0xff] }
 0x4ff   : > { %v1571_v63 = vrot.slane %v1502_v46, 2  ;;  %v1578_v0 = vrot.slane %v1503_v47, 2  ;;  %v4432_v1 = vpack.i.bf16 %v1577_v61, %v5212_v60  ;;  %v4012_v32 = vpack.c.bf16 %v1701_v19, %v1700_v18  ;;  %v1672_v46 = vld [vmem:[#allocation8 + $0x220] sm:$0xff]  ;;  %v1673_v47 = vld [vmem:[#allocation8 + $0x228] sm:$0xff] }
 0x500   : > { %4408 = vrot.lane.b32.xlu1 %v4397_v39, %s4749_s16  ;;  %4413 = vrot.lane.b32.xlu0 %v4412_v53, %s4749_s16  ;;  %v3984_v38 = vpack.c.bf16 %v1671_v22, %v1670_v42  ;;  %v1702_v39 = vld [vmem:[#allocation8 + $0x310] sm:$0xff]  ;;  %v4014_v45 = vpack.c.bf16 %v1719_v25, %v1718_v24  ;;  %v1705_v61 = vld [vmem:[#allocation8 + $0x328] sm:$0xff]  ;;  %v1724_v19 = vld [vmem:[#allocation8 + $0x3c0] sm:$0xff] }
 0x501   : > { %v5221_v2 = vsel %vm474_vm4, %v1569_v56, %v1571_v63  ;;  %v1579_v3 = vsel %vm474_vm4, %v1576_v57, %v1578_v0  ;;  %v3988_v57 = vpack.c.bf16 %v1673_v47, %v1672_v46  ;;  %v3990_v63 = vpack.c.bf16 %v1691_v52, %v1690_v51  ;;  %v1674_v0 = vld [vmem:[#allocation8 + $0x230] sm:$0xff]  ;;  %v1677_v18 = vld [vmem:[#allocation8 + $0x248] sm:$0xff]  ;;  %v1695_v22 = vld [vmem:[#allocation8 + $0x2d8] sm:$0xff] }
 0x502   : > { %v4447_v59 = vpack.i.bf16 %v1579_v3, %v5221_v2  ;;  %v1722_v3 = vld [vmem:[#allocation8 + $0x3b0] sm:$0xff]  ;;  %v4020_v10 = vpack.c.bf16 %v1705_v61, %v1704_v58  ;;  %v1708_v25 = vld [vmem:[#allocation8 + $0x340] sm:$0xff]  ;;  %v1729_v51 = vld [vmem:[#allocation8 + $0x3e8] sm:$0xff] }
 0x503   : > { %v1694_v42 = vld [vmem:[#allocation8 + $0x2d0] sm:$0xff] }
 0x504   : > { %4418 = vrot.lane.b32.xlu1 %v4412_v53, %s4744_s25  ;;  %4423 = vrot.lane.b32.xlu0 %v4402_v40, %s4749_s16  ;;  %v1703_v40 = vld [vmem:[#allocation8 + $0x318] sm:$0xff]  ;;  %v1698_v52 = vld [vmem:[#allocation8 + $0x2f0] sm:$0xff] }
 0x505   : > { %v4016_v53 = vpack.c.bf16 %v1703_v40, %v1702_v39 }
 0x508   : > { %4428 = vrot.lane.b32.xlu1 %v4427_v62, %s4749_s16  ;;  %4433 = vrot.lane.b32.xlu0 %v4432_v1, %s4744_s25 }
 0x50c   : > { %4438 = vrot.lane.b32.xlu1 %v4427_v62, %s4744_s25  ;;  %4443 = vrot.lane.b32.xlu0 %v4432_v1, %s4749_s16  ;;  %v4018_v62 = vpack.c.bf16 %v1721_v4, %v1720_v50  ;;  %v1675_v1 = vld [vmem:[#allocation8 + $0x238] sm:$0xff]  ;;  %v1680_v50 = vld [vmem:[#allocation8 + $0x260] sm:$0xff] }
 0x50d   : > { %v1728_v4 = vld [vmem:[#allocation8 + $0x3e0] sm:$0xff] }
 0x50e   : > { %v4034_v58 = vpack.c.bf16 %v1729_v51, %v1728_v4  ;;  %v1745_v4 = vld [vmem:[#allocation8 + $0x468] sm:$0xff] }
 0x510   : > { %4448 = vrot.lane.b32.xlu1 %v4447_v59, %s4749_s16  ;;  %4453 = vrot.lane.b32.xlu0 %v4447_v59, %s4744_s25  ;;  %v1723_v59 = vld [vmem:[#allocation8 + $0x3b8] sm:$0xff] }
 0x56e   : > { %v4399_v8 = vpop.permute.xlu1 %4398  ;;  %v4404_v13 = vpop.permute.xlu0 %4403 }
 0x56f   : > { %v4401_v11 = vunpack.i.h.bf16 %v4399_v8  ;;  %v4400_v12 = vunpack.i.l.bf16 %v4399_v8  ;;  %v4406_v14 = vunpack.i.h.bf16 %v4404_v13  ;;  %v4405_v15 = vunpack.i.l.bf16 %v4404_v13  ;;  %v1707_v13 = vld [vmem:[#allocation8 + $0x338] sm:$0xff] }
 0x571   : > { %v1514_v20 = vsel %vm853_vm7, %v4400_v12, %v4401_v11  ;;  %v1515_v29 = vsel %vm853_vm7, %v4405_v15, %v4406_v14  ;;  %v3992_v11 = vpack.c.bf16 %v1675_v1, %v1674_v0  ;;  %v1706_v12 = vld [vmem:[#allocation8 + $0x330] sm:$0xff]  ;;  %v4022_v14 = vpack.c.bf16 %v1723_v59, %v1722_v3  ;;  %v1731_v3 = vld [vmem:[#allocation8 + $0x3f8] sm:$0xff]  ;;  %v1733_v59 = vld [vmem:[#allocation8 + $0x408] sm:$0xff] }
 0x572   : > { %v4409_v23 = vpop.permute.xlu1 %4408  ;;  %1819 = vmatprep.mubr.f32.mxu0 %v1514_v20  ;;  %v4414_v28 = vpop.permute.xlu0 %4413  ;;  %v3994_v15 = vpack.c.bf16 %v1693_v6, %v1692_v5  ;;  %v1730_v0 = vld [vmem:[#allocation8 + $0x3f0] sm:$0xff] }
 0x573   : > { %v4411_v26 = vunpack.i.h.bf16 %v4409_v23  ;;  %v4410_v27 = vunpack.i.l.bf16 %v4409_v23  ;;  %2943 = vmatmul.mubr.msk.f32.vlgmr.msra.gmra.mrb[14].mxu0 %vm5149_vm8, %v5185_v30  ;;  %v4416_v36 = vunpack.i.h.bf16 %v4414_v28  ;;  %v4415_v37 = vunpack.i.l.bf16 %v4414_v28 }
 0x574   : > { %3981 = vmatpush3.bf16.msra.mxu0 %v3980_v16  ;;  %1824 = vmatprep.mubr.f32.mxu0 %v1515_v29  ;;  %v3986_v30 = vpack.c.bf16 %v1689_v35, %v1688_v33  ;;  %v1676_v16 = vld [vmem:[#allocation8 + $0x240] sm:$0xff]  ;;  %v4024_v23 = vpack.c.bf16 %v1707_v13, %v1706_v12  ;;  %v3998_v28 = vpack.c.bf16 %v1695_v22, %v1694_v42  ;;  %v1678_v29 = vld [vmem:[#allocation8 + $0x250] sm:$0xff]  ;;  %v1727_v35 = vld [vmem:[#allocation8 + $0x3d8] sm:$0xff] }
 0x575   : > { %3983 = vmatprep.subr.bf16.mxu0 %v3982_v21  ;;  %v1526_v44 = vsel %vm866_vm9, %v4410_v27, %v4411_v26  ;;  %v1564_v56 = vsel %vm866_vm9, %v4415_v37, %v4416_v36  ;;  %v1725_v21 = vld [vmem:[#allocation8 + $0x3c8] sm:$0xff]  ;;  %v3996_v24 = vpack.c.bf16 %v1677_v18, %v1676_v16  ;;  %v1726_v33 = vld [vmem:[#allocation8 + $0x3d0] sm:$0xff]  ;;  %v1696_v36 = vld [vmem:[#allocation8 + $0x2e0] sm:$0xff] }
 0x576   : > { %1895 = vmatmul.mubr.f32.vlgmr.msra.gmra.mrb[14].mxu1 %v1526_v44  ;;  %v4424_v31 = vpop.permute.xlu0 %4423  ;;  %v1709_v26 = vld [vmem:[#allocation8 + $0x348] sm:$0xff]  ;;  %v4026_v27 = vpack.c.bf16 %v1725_v21, %v1724_v19  ;;  %v1710_v44 = vld [vmem:[#allocation8 + $0x350] sm:$0xff]  ;;  %v4030_v46 = vpack.c.bf16 %v1727_v35, %v1726_v33  ;;  %v1735_v16 = vld [vmem:[#allocation8 + $0x418] sm:$0xff] }
 0x577   : > { %4013 = vmatpush3.bf16.msra.mxu1 %v4012_v32  ;;  %1825 = vmatmul.mubr.f32.gmra.mrb[16].mxu0 %v5189_v34  ;;  %v4426_v54 = vunpack.i.h.bf16 %v4424_v31  ;;  %v4425_v55 = vunpack.i.l.bf16 %v4424_v31  ;;  %v1679_v32 = vld [vmem:[#allocation8 + $0x258] sm:$0xff]  ;;  %v1697_v37 = vld [vmem:[#allocation8 + $0x2e8] sm:$0xff]  ;;  %v4028_v39 = vpack.c.bf16 %v1709_v26, %v1708_v25 }
 0x578   : > { %1899 = vmatprep.mubr.f32.mxu1 %v5207_v7  ;;  %3985 = vmatpush3.bf16.msra.mxu0 %v3984_v38  ;;  %v5240_v38 = vpop.permute.xlu1 %4418  ;;  %v4000_v40 = vpack.c.bf16 %v1679_v32, %v1678_v29  ;;  %v4002_v47 = vpack.c.bf16 %v1697_v37, %v1696_v36  ;;  %v1699_v31 = vld [vmem:[#allocation8 + $0x2f8] sm:$0xff]  ;;  %v1736_v29 = vld [vmem:[#allocation8 + $0x420] sm:$0xff]  ;;  %v1737_v32 = vld [vmem:[#allocation8 + $0x428] sm:$0xff] }
 0x579   : > { %1969 = vmatprep.mubr.f32.mxu0 %v1564_v56  ;;  %4015 = vmatprep.subr.bf16.mxu1 %v4014_v45  ;;  %v1527_v34 = vsel %vm866_vm9, %v4425_v55, %v4426_v54  ;;  %v1711_v45 = vld [vmem:[#allocation8 + $0x358] sm:$0xff]  ;;  %v1712_v55 = vld [vmem:[#allocation8 + $0x360] sm:$0xff]  ;;  %v1713_v56 = vld [vmem:[#allocation8 + $0x368] sm:$0xff]  ;;  %v4006_v61 = vpack.c.bf16 %v1699_v31, %v1698_v52  ;;  %v4420_v12 = vunpack.i.l.bf16 %v5240_v38  ;;  %v4050_v35 = vpack.c.bf16 %v1737_v32, %v1736_v29 }
 0x57a   : > { %3987 = vmatprep.subr.bf16.mxu0 %v3986_v30  ;;  %v4434_v7 = vpop.permute.xlu0 %4433  ;;  %1900 = vmatmul.mubr.f32.gmra.mrb[16].mxu1 %v1527_v34  ;;  %v1681_v30 = vld [vmem:[#allocation8 + $0x268] sm:$0xff]  ;;  %v1732_v34 = vld [vmem:[#allocation8 + $0x400] sm:$0xff]  ;;  %v4036_v5 = vpack.c.bf16 %v1713_v56, %v1712_v55  ;;  %v1746_v52 = vld [vmem:[#allocation8 + $0x470] sm:$0xff] }
 0x57b   : > { %v4436_v8 = vunpack.i.h.bf16 %v4434_v7  ;;  %v4435_v9 = vunpack.i.l.bf16 %v4434_v7  ;;  %4017 = vmatpush3.bf16.msra.mxu1 %v4016_v53  ;;  %v4032_v53 = vpack.c.bf16 %v1711_v45, %v1710_v44  ;;  %v4004_v54 = vpack.c.bf16 %v1681_v30, %v1680_v50  ;;  %v1740_v44 = vld [vmem:[#allocation8 + $0x440] sm:$0xff]  ;;  %v1741_v45 = vld [vmem:[#allocation8 + $0x448] sm:$0xff]  ;;  %v1747_v31 = vld [vmem:[#allocation8 + $0x478] sm:$0xff] }
 0x57c   : > { %3989 = vmatpush3.bf16.msra.mxu0 %v3988_v57  ;;  %4019 = vmatprep.subr.bf16.mxu1 %v4018_v62  ;;  %v4429_v57 = vpop.permute.xlu1 %4428  ;;  %v1682_v62 = vld [vmem:[#allocation8 + $0x270] sm:$0xff]  ;;  %v4038_v7 = vpack.c.bf16 %v1731_v3, %v1730_v0  ;;  %v1744_v30 = vld [vmem:[#allocation8 + $0x460] sm:$0xff] }
 0x57d   : > { %3991 = vmatprep.subr.bf16.mxu0 %v3990_v63  ;;  %v1588_v20 = vsel %vm853_vm7, %v4435_v9, %v4436_v8  ;;  %v1683_v63 = vld [vmem:[#allocation8 + $0x278] sm:$0xff]  ;;  %v1714_v8 = vld [vmem:[#allocation8 + $0x370] sm:$0xff]  ;;  %v4431_v13 = vunpack.i.h.bf16 %v4429_v57  ;;  %v4066_v51 = vpack.c.bf16 %v1745_v4, %v1744_v30  ;;  %v2265_v4 = vld [vmem:[#allocation10] sm:$0xff] }
 0x57e   : > { %2044 = vmatprep.mubr.f32.mxu1 %v1588_v20  ;;  %v4444_v1 = vpop.permute.xlu0 %4443  ;;  %v4008_v6 = vpack.c.bf16 %v1683_v63, %v1682_v62  ;;  %v1715_v9 = vld [vmem:[#allocation8 + $0x378] sm:$0xff] }
 0x57f   : > { %4021 = vmatpush3.bf16.msra.mxu1 %v4020_v10  ;;  %v4042_v10 = vpack.c.bf16 %v1733_v59, %v1732_v34  ;;  %v4040_v20 = vpack.c.bf16 %v1715_v9, %v1714_v8  ;;  %v4446_v25 = vunpack.i.h.bf16 %v4444_v1  ;;  %v4445_v26 = vunpack.i.l.bf16 %v4444_v1 }
 0x580   : > { %3993 = vmatpush3.bf16.msra.mxu0 %v3992_v11  ;;  %4023 = vmatprep.subr.bf16.mxu1 %v4022_v14  ;;  %v4421_v11 = vunpack.i.h.bf16 %v5240_v38  ;;  %v4430_v14 = vunpack.i.l.bf16 %v4429_v57  ;;  %v4439_v18 = vpop.permute.xlu1 %4438  ;;  %v1738_v38 = vld [vmem:[#allocation8 + $0x430] sm:$0xff] }
 0x581   : > { %3995 = vmatprep.subr.bf16.mxu0 %v3994_v15  ;;  %v1734_v15 = vld [vmem:[#allocation8 + $0x410] sm:$0xff]  ;;  %v4441_v42 = vunpack.i.h.bf16 %v4439_v18  ;;  %v4440_v22 = vunpack.i.l.bf16 %v4439_v18  ;;  %v1600_v37 = vsel %vm866_vm9, %v4445_v26, %v4446_v25 }
 0x582   : > { %v4454_v19 = vpop.permute.xlu0 %4453  ;;  %v4046_v21 = vpack.c.bf16 %v1735_v16, %v1734_v15 }
 0x583   : > { %4025 = vmatpush3.bf16.msra.mxu1 %v4024_v23  ;;  %v1552_v23 = vsel %vm853_vm7, %v4420_v12, %v4421_v11  ;;  %v1553_v33 = vsel %vm853_vm7, %v4440_v22, %v4441_v42 }
 0x584   : > { %3997 = vmatpush3.bf16.msra.mxu0 %v3996_v24  ;;  %4027 = vmatprep.subr.bf16.mxu1 %v4026_v27  ;;  %v1565_v24 = vsel %vm866_vm9, %v4430_v14, %v4431_v13  ;;  %v4456_v27 = vunpack.i.h.bf16 %v4454_v19 }
 0x585   : > { %3999 = vmatprep.subr.bf16.mxu0 %v3998_v28  ;;  %v4455_v28 = vunpack.i.l.bf16 %v4454_v19 }
 0x587   : > { %4029 = vmatpush3.bf16.msra.mxu1 %v4028_v39  ;;  %v1589_v36 = vsel %vm853_vm7, %v4455_v28, %v4456_v27  ;;  %v1739_v39 = vld [vmem:[#allocation8 + $0x438] sm:$0xff] }
 0x588   : > { %4001 = vmatpush3.bf16.msra.mxu0 %v4000_v40  ;;  %4031 = vmatprep.subr.bf16.mxu1 %v4030_v46  ;;  %v4054_v40 = vpack.c.bf16 %v1739_v39, %v1738_v38  ;;  %v4058_v46 = vpack.c.bf16 %v1741_v45, %v1740_v44  ;;  %v2313_v39 = vld [vmem:[#allocation10 + $0x180] sm:$0xff] }
 0x589   : > { %4003 = vmatprep.subr.bf16.mxu0 %v4002_v47  ;;  %v1743_v47 = vld [vmem:[#allocation8 + $0x458] sm:$0xff]  ;;  %v2281_v44 = vld [vmem:[#allocation10 + $0x80] sm:$0xff] }
 0x58b   : > { %4033 = vmatpush3.bf16.msra.mxu1 %v4032_v53  ;;  %v4449_v53 = vpop.permute.xlu1 %4448 }
 0x58c   : > { %4005 = vmatpush3.bf16.msra.mxu0 %v4004_v54  ;;  %4035 = vmatprep.subr.bf16.mxu1 %v4034_v58  ;;  %v4451_v54 = vunpack.i.h.bf16 %v4449_v53  ;;  %v4450_v55 = vunpack.i.l.bf16 %v4449_v53  ;;  %v2941_v58 = vld [vmem:[%s5390_s6] ss:$0 sm:$0xff]  ;;  %v2299_v53 = vld [vmem:[#allocation10 + $0x110] sm:$0xff] }
 0x58d   : > { %4007 = vmatprep.subr.bf16.mxu0 %v4006_v61 }
 0x58e   : > { %v1601_v56 = vsel %vm866_vm9, %v4450_v55, %v4451_v54  ;;  %v2300_v54 = vld [vmem:[#allocation10 + $0x118] sm:$0xff]  ;;  %v2267_v55 = vld [vmem:[#allocation10 + $0x10] sm:$0xff] }
 0x58f   : > { %4037 = vmatpush3.bf16.msra.mxu1 %v4036_v5 }
 0x590   : > { %4009 = vmatpush3.bf16.msra.mxu0 %v4008_v6  ;;  %4039 = vmatprep.subr.bf16.mxu1 %v4038_v7 }
 0x591   : > { %4043 = vmatprep.subr.bf16.mxu0 %v4042_v10 }
 0x593   : > { %1970 = vmatmul.mubr.f32.vlgmr.msra.gmra.mrb[18].mxu0 %v1552_v23  ;;  %4041 = vmatpush3.bf16.msra.mxu1 %v4040_v20 }
 0x594   : > { %1974 = vmatprep.mubr.f32.mxu0 %v1565_v24  ;;  %4045 = vmatpush3.bf16.msra.mxu0 %v4042_v10 }
 0x595   : > { %4047 = vmatprep.subr.bf16.mxu0 %v4046_v21 }
 0x596   : > { %2045 = vmatmul.mubr.f32.vlgmr.msra.gmra.mrb[18].mxu1 %v5212_v60  ;;  %v1742_v60 = vld [vmem:[#allocation8 + $0x450] sm:$0xff] }
 0x597   : > { %1975 = vmatmul.mubr.f32.gmra.mrb[20].mxu0 %v1553_v33  ;;  %2049 = vmatprep.mubr.f32.mxu1 %v1589_v36  ;;  %v4062_v50 = vpack.c.bf16 %v1743_v47, %v1742_v60  ;;  %v2297_v60 = vld [vmem:[#allocation10 + $0x100] sm:$0xff]  ;;  %v2298_v47 = vld [vmem:[#allocation10 + $0x108] sm:$0xff] }
 0x598   : > { %3636 = vmatprep.mubr.f32.mxu0 %v1600_v37  ;;  %4049 = vmatpush3.bf16.msra.mxu0 %v4046_v21  ;;  %v4108_v30 = vpack.c.bf16 %v2298_v47, %v2297_v60  ;;  %v2276_v47 = vld [vmem:[#allocation10 + $0x58] sm:$0xff] }
 0x599   : > { %4051 = vmatprep.subr.bf16.mxu0 %v4050_v35 }
 0x59a   : > { %2050 = vmatmul.mubr.f32.gmra.mrb[20].mxu1 %v5221_v2  ;;  %v4070_v2 = vpack.c.bf16 %v1747_v31, %v1746_v52  ;;  %v2284_v52 = vld [vmem:[#allocation10 + $0x98] sm:$0xff]  ;;  %v4110_v31 = vpack.c.bf16 %v2316_v41, %v2315_v48 }
 0x59c   : > { %4053 = vmatpush3.bf16.msra.mxu0 %v4050_v35 }
 0x59d   : > { %4055 = vmatprep.subr.bf16.mxu0 %v4054_v40 }
 0x5a0   : > { %4057 = vmatpush3.bf16.msra.mxu0 %v4054_v40  ;;  %v2314_v40 = vld [vmem:[#allocation10 + $0x188] sm:$0xff] }
 0x5a1   : > { %4059 = vmatprep.subr.bf16.mxu0 %v4058_v46  ;;  %v4106_v45 = vpack.c.bf16 %v2314_v40, %v2313_v39 }
 0x5a4   : > { %4061 = vmatpush3.bf16.msra.mxu0 %v4058_v46  ;;  %v2282_v46 = vld [vmem:[#allocation10 + $0x88] sm:$0xff] }
 0x5a5   : > { %4063 = vmatprep.subr.bf16.mxu0 %v4062_v50 }
 0x5a8   : > { %4065 = vmatpush3.bf16.msra.mxu0 %v4062_v50  ;;  %v4074_v50 = vpack.c.bf16 %v2282_v46, %v2281_v44  ;;  %v2307_v44 = vld [vmem:[#allocation10 + $0x150] sm:$0xff] }
 0x5a9   : > { %4067 = vmatprep.subr.bf16.mxu0 %v4066_v51  ;;  %v2275_v46 = vld [vmem:[#allocation10 + $0x50] sm:$0xff] }
 0x5aa   : > { %4075 = vmatprep.subr.bf16.mxu1 %v4074_v50  ;;  %v2325_v50 = vld [vmem:[#allocation10 + $0x1e0] sm:$0xff] }
 0x5ac   : > { %4069 = vmatpush3.bf16.msra.mxu0 %v4066_v51  ;;  %v2266_v51 = vld [vmem:[#allocation10 + $0x8] sm:$0xff] }
 0x5ad   : > { %4071 = vmatprep.subr.bf16.mxu0 %v4070_v2 }
 0x5b0   : > { %4073 = vmatpush3.bf16.msra.mxu0 %v4070_v2 }
 0x5b1   : > { %4107 = vmatprep.subr.bf16.mxu0 %v4106_v45  ;;  %v2308_v45 = vld [vmem:[#allocation10 + $0x158] sm:$0xff] }
 0x5b2   : > { %v4128_v48 = vpack.c.bf16 %v2308_v45, %v2307_v44 }
 0x5b3   : > { %3637 = vmatmul.mubr.f32.vlgmr.msra.gmra.mrb[22].mxu0 %v1601_v56  ;;  %v4112_v56 = vpack.c.bf16 %v2300_v54, %v2299_v53  ;;  %v2278_v53 = vld [vmem:[#allocation10 + $0x68] sm:$0xff]  ;;  %v2327_v54 = vld [vmem:[#allocation10 + $0x1f0] sm:$0xff] }
 0x5b4   : > { %4109 = vmatpush3.bf16.msra.mxu0 %v4108_v30  ;;  %v2326_v30 = vld [vmem:[#allocation10 + $0x1e8] sm:$0xff] }
 0x5b5   : > { %4111 = vmatprep.subr.bf16.mxu0 %v4110_v31  ;;  %v4130_v41 = vpack.c.bf16 %v2326_v30, %v2325_v50  ;;  %v2277_v31 = vld [vmem:[#allocation10 + $0x60] sm:$0xff] }
 0x5b8   : > { %4113 = vmatpush3.bf16.msra.mxu0 %v4112_v56  ;;  %v2295_v56 = vld [vmem:[#allocation10 + $0xf0] sm:$0xff] }
 0x646   : > { %v3242_v57 = vpop.f32.mrb[14].mxu0 }
 0x647   : > { %v3243_v61 = vpop.f32.mrb[15].mxu0 }
 0x648   : > { %v3244_v62 = vadd.f32 %v3243_v61, %v3242_v57  ;;  %v2268_v57 = vld [vmem:[#allocation10 + $0x18] sm:$0xff]  ;;  %v2318_v61 = vld [vmem:[#allocation10 + $0x1a8] sm:$0xff] }
 0x649   : > { %v3280_v63 = vpop.f32.mrb[14].mxu1 }
 0x64a   : > { %v1822_v0 = vadd.f32 %v3244_v62, %v2941_v58  ;;  %v3245_v1 = vpop.f32.mrb[16].mxu0  ;;  %v3281_v3 = vpop.f32.mrb[15].mxu1  ;;  %v4080_v62 = vpack.c.bf16 %v2268_v57, %v2267_v55  ;;  %v2328_v55 = vld [vmem:[#allocation10 + $0x1f8] sm:$0xff] }
 0x64b   : > { %v3282_v34 = vadd.f32 %v3281_v3, %v3280_v63  ;;  %v3246_v59 = vpop.f32.mrb[17].mxu0  ;;  %v2301_v3 = vld [vmem:[#allocation10 + $0x120] sm:$0xff]  ;;  %v2296_v57 = vld [vmem:[#allocation10 + $0xf8] sm:$0xff] }
 0x64c   : > { %v3247_v5 = vadd.f32 %v3246_v59, %v3245_v1  ;;  %v2286_v1 = vld [vmem:[#allocation10 + $0xa8] sm:$0xff] }
 0x64d   : > { %v1897_v6 = vadd.f32 %v3282_v34, %v1822_v0  ;;  %v3283_v8 = vpop.f32.mrb[16].mxu1  ;;  %v2285_v0 = vld [vmem:[#allocation10 + $0xa0] sm:$0xff]  ;;  %v2302_v59 = vld [vmem:[#allocation10 + $0x128] sm:$0xff] }
 0x64e   : > { %v1827_v7 = vadd.f32 %v3247_v5, %v2941_v58  ;;  %v3284_v9 = vpop.f32.mrb[17].mxu1  ;;  %v2317_v58 = vld [vmem:[#allocation10 + $0x1a0] sm:$0xff]  ;;  %v4082_v34 = vpack.c.bf16 %v2286_v1, %v2285_v0  ;;  %v2312_v0 = vld [vmem:[#allocation10 + $0x178] sm:$0xff]  ;;  %v4102_v1 = vpack.c.bf16 %v2296_v57, %v2295_v56  ;;  %v2330_v57 = vld [vmem:[#allocation10 + $0x208] sm:$0xff] }
 0x64f   : > { %v3285_v10 = vadd.f32 %v3284_v9, %v3283_v8  ;;  %v4114_v63 = vpack.c.bf16 %v2318_v61, %v2317_v58  ;;  %v2269_v5 = vld [vmem:[#allocation10 + $0x20] sm:$0xff]  ;;  %v2319_v8 = vld [vmem:[#allocation10 + $0x1b0] sm:$0xff]  ;;  %v2320_v9 = vld [vmem:[#allocation10 + $0x1b8] sm:$0xff]  ;;  %v4100_v61 = vpack.c.bf16 %v2278_v53, %v2277_v31 }
 0x650   : > { %v2361_v53 = vld [vmem:[#allocation10 + $0x300] sm:$0xff] }
 0x651   : > { %v1902_v11 = vadd.f32 %v3285_v10, %v1827_v7  ;;  %v4116_v7 = vpack.c.bf16 %v2302_v59, %v2301_v3  ;;  %v2287_v10 = vld [vmem:[#allocation10 + $0xb0] sm:$0xff]  ;;  %4115 = vmatprep.subr.bf16.mxu0 %v4114_v63  ;;  %v2280_v59 = vld [vmem:[#allocation10 + $0x78] sm:$0xff] }
 0x652   : > { %v2311_v63 = vld [vmem:[#allocation10 + $0x170] sm:$0xff] }
 0x653   : > { %4117 = vmatpush3.bf16.msra.mxu0 %v4116_v7  ;;  %v4136_v3 = vpack.c.bf16 %v2312_v0, %v2311_v63  ;;  %v2378_v7 = vld [vmem:[#allocation10 + $0x388] sm:$0xff] }
 0x666   : > { %v3318_v12 = vpop.f32.mrb[18].mxu0 }
 0x667   : > { %v3319_v13 = vpop.f32.mrb[19].mxu0 }
 0x668   : > { %v3320_v14 = vadd.f32 %v3319_v13, %v3318_v12  ;;  %v4118_v12 = vpack.c.bf16 %v2320_v9, %v2319_v8  ;;  %v2288_v13 = vld [vmem:[#allocation10 + $0xb8] sm:$0xff] }
 0x669   : > { %v3356_v16 = vpop.f32.mrb[18].mxu1 }
 0x66a   : > { %v1972_v15 = vadd.f32 %v3320_v14, %v1897_v6  ;;  %v3321_v18 = vpop.f32.mrb[20].mxu0  ;;  %v3357_v19 = vpop.f32.mrb[19].mxu1  ;;  %v2270_v6 = vld [vmem:[#allocation10 + $0x28] sm:$0xff]  ;;  %v2303_v14 = vld [vmem:[#allocation10 + $0x130] sm:$0xff]  ;;  %4119 = vmatprep.subr.bf16.mxu0 %v4118_v12 }
 0x66b   : > { %v3322_v20 = vpop.f32.mrb[21].mxu0  ;;  %v3358_v21 = vadd.f32 %v3357_v19, %v3356_v16  ;;  %v4086_v16 = vpack.c.bf16 %v2288_v13, %v2287_v10  ;;  %v2272_v19 = vld [vmem:[#allocation10 + $0x38] sm:$0xff]  ;;  %v2345_v10 = vld [vmem:[#allocation10 + $0x280] sm:$0xff] }
 0x66c   : > { %v3323_v42 = vadd.f32 %v3322_v20, %v3321_v18  ;;  %v2271_v18 = vld [vmem:[#allocation10 + $0x30] sm:$0xff]  ;;  %v2321_v20 = vld [vmem:[#allocation10 + $0x1c0] sm:$0xff] }
 0x66d   : > { %v3359_v23 = vpop.f32.mrb[20].mxu1  ;;  %v2047_v24 = vadd.f32 %v3358_v21, %v1972_v15  ;;  %v2304_v15 = vld [vmem:[#allocation10 + $0x138] sm:$0xff]  ;;  %v2322_v21 = vld [vmem:[#allocation10 + $0x1c8] sm:$0xff] }
 0x66e   : > { %v1977_v22 = vadd.f32 %v3323_v42, %v1902_v11  ;;  %v3360_v25 = vpop.f32.mrb[21].mxu1  ;;  %v4084_v11 = vpack.c.bf16 %v2270_v6, %v2269_v5  ;;  %v2289_v42 = vld [vmem:[#allocation10 + $0xc0] sm:$0xff] }
 0x66f   : > { %v3361_v26 = vadd.f32 %v3360_v25, %v3359_v23  ;;  %v4120_v23 = vpack.c.bf16 %v2304_v15, %v2303_v14  ;;  %v4122_v25 = vpack.c.bf16 %v2322_v21, %v2321_v20  ;;  %v2377_v5 = vld [vmem:[#allocation10 + $0x380] sm:$0xff] }
 0x670   : > { %v4170_v8 = vpack.c.bf16 %v2378_v7, %v2377_v5  ;;  %v2364_v7 = vld [vmem:[#allocation10 + $0x318] sm:$0xff] }
 0x671   : > { %v2052_v27 = vadd.f32 %v3361_v26, %v1977_v22  ;;  %v2290_v22 = vld [vmem:[#allocation10 + $0xc8] sm:$0xff]  ;;  %v2305_v26 = vld [vmem:[#allocation10 + $0x140] sm:$0xff]  ;;  %4121 = vmatpush3.bf16.msra.mxu0 %v4120_v23 }
 0x672   : > { %4123 = vmatprep.subr.bf16.mxu0 %v4122_v25 }
 0x686   : > { %v3638_v28 = vpop.f32.mrb[22].mxu0 }
 0x687   : > { %v2127_v29 = vadd.f32 %v3638_v28, %v2052_v27  ;;  %v2121_v32 = vpop.f32.mrb[23].mxu0  ;;  %v2306_v27 = vld [vmem:[#allocation10 + $0x148] sm:$0xff]  ;;  %v2273_v28 = vld [vmem:[#allocation10 + $0x40] sm:$0xff] }
 0x688   : > { %v2122_v33 = vadd.f32 %v2121_v32, %v2047_v24  ;;  %v4088_v24 = vpack.c.bf16 %v2272_v19, %v2271_v18  ;;  %v2274_v32 = vld [vmem:[#allocation10 + $0x48] sm:$0xff] }
 0x689   : > { %v2131_v35 = vmax.f32 %v2127_v29, 0.0  ;;  %v4090_v29 = vpack.c.bf16 %v2290_v22, %v2289_v42  ;;  %v4092_v39 = vpack.c.bf16 %v2274_v32, %v2273_v28 }
 0x68a   : > { %v2130_v36 = vmax.f32 %v2122_v33, 0.0  ;;  %v2323_v33 = vld [vmem:[#allocation10 + $0x1d0] sm:$0xff] }
 0x68b   : > { %v2133_v37 = vadd.f32 %v2131_v35, %v810_v49  ;;  %v4076_v49 = vpack.c.bf16 %v2266_v51, %v2265_v4  ;;  %v2324_v35 = vld [vmem:[#allocation10 + $0x1d8] sm:$0xff]  ;;  %v2293_v4 = vld [vmem:[#allocation10 + $0xe0] sm:$0xff]  ;;  %v2294_v51 = vld [vmem:[#allocation10 + $0xe8] sm:$0xff] }
 0x68c   : > { %v2132_v38 = vadd.f32 %v2130_v36, %v809_v43  ;;  %v2283_v43 = vld [vmem:[#allocation10 + $0x90] sm:$0xff]  ;;  %v4126_v40 = vpack.c.bf16 %v2324_v35, %v2323_v33 }
 0x68d   : > { %2138 = vrot.lane.b32.xlu0 %v2133_v37, %s4748_s18  ;;  %v4078_v2 = vpack.c.bf16 %v2284_v52, %v2283_v43  ;;  %4077 = vmatpush3.bf16.msra.mxu1 %v4076_v49  ;;  %v2291_v36 = vld [vmem:[#allocation10 + $0xd0] sm:$0xff]  ;;  %v2292_v37 = vld [vmem:[#allocation10 + $0xd8] sm:$0xff]  ;;  %v4096_v49 = vpack.c.bf16 %v2276_v47, %v2275_v46  ;;  %v2309_v43 = vld [vmem:[#allocation10 + $0x160] sm:$0xff] }
 0x68e   : > { %2136 = vrot.lane.b32.xlu1 %v2132_v38, %s4748_s18  ;;  %v4124_v38 = vpack.c.bf16 %v2306_v27, %v2305_v26  ;;  %v4094_v60 = vpack.c.bf16 %v2292_v37, %v2291_v36  ;;  %v2310_v52 = vld [vmem:[#allocation10 + $0x168] sm:$0xff] }
 0x68f   : > { %4079 = vmatprep.subr.bf16.mxu1 %v4078_v2  ;;  %v4098_v2 = vpack.c.bf16 %v2294_v51, %v2293_v4  ;;  %v4132_v58 = vpack.c.bf16 %v2310_v52, %v2309_v43 }
 0x690   : > { %4125 = vmatpush3.bf16.msra.mxu0 %v4124_v38 }
 0x691   : > { %4081 = vmatpush3.bf16.msra.mxu1 %v4080_v62  ;;  %4127 = vmatprep.subr.bf16.mxu0 %v4126_v40  ;;  %v4134_v62 = vpack.c.bf16 %v2328_v55, %v2327_v54  ;;  %v2362_v54 = vld [vmem:[#allocation10 + $0x308] sm:$0xff]  ;;  %v2329_v55 = vld [vmem:[#allocation10 + $0x200] sm:$0xff] }
 0x692   : > { %4083 = vmatprep.subr.bf16.mxu1 %v4082_v34  ;;  %v2279_v34 = vld [vmem:[#allocation10 + $0x70] sm:$0xff] }
 0x693   : > { %v4104_v6 = vpack.c.bf16 %v2280_v59, %v2279_v34  ;;  %v2348_v34 = vld [vmem:[#allocation10 + $0x298] sm:$0xff]  ;;  %v2363_v59 = vld [vmem:[#allocation10 + $0x310] sm:$0xff] }
 0x694   : > { %4129 = vmatpush3.bf16.msra.mxu0 %v4128_v48 }
 0x695   : > { %4085 = vmatpush3.bf16.msra.mxu1 %v4084_v11  ;;  %4131 = vmatprep.subr.bf16.mxu0 %v4130_v41  ;;  %v2346_v11 = vld [vmem:[#allocation10 + $0x288] sm:$0xff] }
 0x696   : > { %4087 = vmatprep.subr.bf16.mxu1 %v4086_v16  ;;  %v4138_v15 = vpack.c.bf16 %v2346_v11, %v2345_v10  ;;  %v4140_v11 = vpack.c.bf16 %v2330_v57, %v2329_v55 }
 0x698   : > { %4133 = vmatpush3.bf16.msra.mxu0 %v4132_v58  ;;  %v2379_v58 = vld [vmem:[#allocation10 + $0x390] sm:$0xff] }
 0x699   : > { %4089 = vmatpush3.bf16.msra.mxu1 %v4088_v24  ;;  %4135 = vmatprep.subr.bf16.mxu0 %v4134_v62 }
 0x69a   : > { %4091 = vmatprep.subr.bf16.mxu1 %v4090_v29 }
 0x69c   : > { %4137 = vmatpush3.bf16.msra.mxu0 %v4136_v3  ;;  %v2347_v3 = vld [vmem:[#allocation10 + $0x290] sm:$0xff] }
 0x69d   : > { %4093 = vmatpush3.bf16.msra.mxu1 %v4092_v39  ;;  %4171 = vmatprep.subr.bf16.mxu0 %v4170_v8  ;;  %v2381_v8 = vld [vmem:[#allocation10 + $0x3a0] sm:$0xff] }
 0x69e   : > { %4095 = vmatprep.subr.bf16.mxu1 %v4094_v60 }
 0x6a1   : > { %4097 = vmatpush3.bf16.msra.mxu1 %v4096_v49 }
 0x6a2   : > { %4099 = vmatprep.subr.bf16.mxu1 %v4098_v2 }
 0x6a5   : > { %4101 = vmatpush3.bf16.msra.mxu1 %v4100_v61  ;;  %v2380_v61 = vld [vmem:[#allocation10 + $0x398] sm:$0xff] }
 0x6a6   : > { %4103 = vmatprep.subr.bf16.mxu1 %v4102_v1  ;;  %v4172_v1 = vpack.c.bf16 %v2362_v54, %v2361_v53  ;;  %v2385_v53 = vld [vmem:[#allocation10 + $0x3c0] sm:$0xff]  ;;  %v2386_v54 = vld [vmem:[#allocation10 + $0x3c8] sm:$0xff] }
 0x6a9   : > { %4105 = vmatpush3.bf16.msra.mxu1 %v4104_v6 }
 0x6aa   : > { %4139 = vmatprep.subr.bf16.mxu1 %v4138_v15  ;;  %v2331_v15 = vld [vmem:[#allocation10 + $0x210] sm:$0xff] }
 0x6ff   : > { %v2139_v9 = vpop.permute.xlu0 %2138 }
 0x700   : > { %v2143_v12 = vsel %vm819_vm6, 0.0, %v2139_v9  ;;  %v2145_v13 = vsel %vm819_vm6, %v2139_v9, 0.0  ;;  %v2137_v14 = vpop.permute.xlu1 %2136  ;;  %v2382_v9 = vld [vmem:[#allocation10 + $0x3a8] sm:$0xff] }
 0x701   : > { %v2152_v16 = vrot.slane %v2143_v12, 7  ;;  %v2154_v18 = vrot.slane %v2145_v13, 7  ;;  %v2142_v19 = vsel %vm819_vm6, 0.0, %v2137_v14  ;;  %v2144_v20 = vsel %vm819_vm6, %v2137_v14, 0.0 }
 0x702   : > { %v5265_v21 = vrot.slane %v2142_v19, 7  ;;  %v2151_v42 = vrot.slane %v2144_v20, 7  ;;  %v4174_v12 = vpack.c.bf16 %v2380_v61, %v2379_v58  ;;  %v4142_v14 = vpack.c.bf16 %v2348_v34, %v2347_v3  ;;  %v2337_v3 = vld [vmem:[#allocation10 + $0x240] sm:$0xff] }
 0x703   : > { %v2163_v32 = vsel %vm427_vm2, %v2152_v16, 0.0  ;;  %v2164_v33 = vsel %vm427_vm2, %v2154_v18, 0.0  ;;  %v4176_v20 = vpack.c.bf16 %v2364_v7, %v2363_v59  ;;  %v2388_v7 = vld [vmem:[#allocation10 + $0x3d8] sm:$0xff] }
 0x704   : > { %v5269_v22 = vsel %vm427_vm2, %v5265_v21, %v2152_v16  ;;  %v2155_v23 = vsel %vm427_vm2, %v2151_v42, %v2154_v18  ;;  %v2161_v24 = vsel %vm427_vm2, 0.0, %v5265_v21  ;;  %v2162_v25 = vsel %vm427_vm2, 0.0, %v2151_v42  ;;  %v2332_v16 = vld [vmem:[#allocation10 + $0x218] sm:$0xff] }
 0x705   : > { %v2200_v26 = vrot.slane %v2162_v25, 1  ;;  %v4462_v27 = vpack.i.bf16 %v2162_v25, %v2161_v24  ;;  %v2192_v28 = vrot.slane %v2161_v24, 1  ;;  %v2193_v29 = vrot.slane %v5269_v22, 1 }
 0x706   : > { %v2201_v35 = vrot.slane %v2155_v23, 1  ;;  %v2195_v38 = vrot.slane %v2163_v32, 1  ;;  %v2203_v39 = vrot.slane %v2164_v33, 1  ;;  %v4467_v40 = vpack.i.bf16 %v2155_v23, %v5269_v22 }
 0x707   : > { %4463 = vrot.lane.b32.xlu0 %v4462_v27, %s4749_s16  ;;  %4458 = vrot.lane.b32.xlu1 %v4462_v27, %s4744_s25  ;;  %v2194_v36 = vsel %vm450_vm3, %v2192_v28, %v2193_v29  ;;  %v2229_v45 = vrot.slane %v2161_v24, 2  ;;  %v2236_v46 = vrot.slane %v2162_v25, 2  ;;  %v2230_v60 = vrot.slane %v5269_v22, 2  ;;  %v2350_v24 = vld [vmem:[#allocation10 + $0x2a8] sm:$0xff] }
 0x708   : > { %2555 = vmatprep.mubr.f32.mxu0 %v2194_v36  ;;  %v2202_v37 = vsel %vm450_vm3, %v2200_v26, %v2201_v35  ;;  %v2237_v47 = vrot.slane %v2155_v23, 2  ;;  %v2232_v50 = vrot.slane %v2163_v32, 2  ;;  %v2239_v30 = vrot.slane %v2164_v33, 2  ;;  %v2349_v23 = vld [vmem:[#allocation10 + $0x2a0] sm:$0xff]  ;;  %v2366_v33 = vld [vmem:[#allocation10 + $0x328] sm:$0xff] }
 0x709   : > { %v4472_v44 = vpack.i.bf16 %v2202_v37, %v2194_v36  ;;  %v5287_v4 = vsel %vm474_vm4, %v2229_v45, %v2230_v60  ;;  %v2196_v48 = vsel %vm450_vm3, %v2193_v29, %v2195_v38  ;;  %v2204_v49 = vsel %vm450_vm3, %v2201_v35, %v2203_v39  ;;  %v2365_v32 = vld [vmem:[#allocation10 + $0x320] sm:$0xff]  ;;  %v2334_v38 = vld [vmem:[#allocation10 + $0x228] sm:$0xff]  ;;  %v2383_v39 = vld [vmem:[#allocation10 + $0x3b0] sm:$0xff] }
 0x70a   : > { %v2238_v51 = vsel %vm474_vm4, %v2236_v46, %v2237_v47  ;;  %v4492_v43 = vpack.i.bf16 %v2204_v49, %v2196_v48  ;;  %v5296_v52 = vsel %vm474_vm4, %v2230_v60, %v2232_v50  ;;  %v2240_v31 = vsel %vm474_vm4, %v2237_v47, %v2239_v30  ;;  %v2333_v35 = vld [vmem:[#allocation10 + $0x220] sm:$0xff]  ;;  %v2368_v49 = vld [vmem:[#allocation10 + $0x338] sm:$0xff] }
 0x70b   : > { %4468 = vrot.lane.b32.xlu1 %v4467_v40, %s4744_s25  ;;  %4473 = vrot.lane.b32.xlu0 %v4472_v44, %s4749_s16  ;;  %v4487_v41 = vpack.i.bf16 %v2238_v51, %v5287_v4  ;;  %v4502_v2 = vpack.i.bf16 %v2240_v31, %v5296_v52  ;;  %v4178_v42 = vpack.c.bf16 %v2382_v9, %v2381_v8  ;;  %v2355_v8 = vld [vmem:[#allocation10 + $0x2d0] sm:$0xff]  ;;  %v2356_v9 = vld [vmem:[#allocation10 + $0x2d8] sm:$0xff] }
 0x70c   : > { %v4144_v29 = vpack.c.bf16 %v2332_v16, %v2331_v15  ;;  %v4146_v37 = vpack.c.bf16 %v2350_v24, %v2349_v23  ;;  %v4180_v50 = vpack.c.bf16 %v2366_v33, %v2365_v32  ;;  %v4148_v30 = vpack.c.bf16 %v2334_v38, %v2333_v35  ;;  %v2339_v15 = vld [vmem:[#allocation10 + $0x250] sm:$0xff]  ;;  %v2358_v23 = vld [vmem:[#allocation10 + $0x2e8] sm:$0xff] }
 0x70d   : > { %v4158_v16 = vpack.c.bf16 %v2356_v9, %v2355_v8  ;;  %v2342_v35 = vld [vmem:[#allocation10 + $0x268] sm:$0xff]  ;;  %v2359_v38 = vld [vmem:[#allocation10 + $0x2f0] sm:$0xff]  ;;  %v2400_v9 = vld [vmem:[#allocation10 + $0x438] sm:$0xff] }
 0x70e   : > { %v2399_v8 = vld [vmem:[#allocation10 + $0x430] sm:$0xff] }
 0x70f   : > { %4478 = vrot.lane.b32.xlu1 %v4472_v44, %s4744_s25  ;;  %4483 = vrot.lane.b32.xlu0 %v4467_v40, %s4749_s16  ;;  %v2384_v40 = vld [vmem:[#allocation10 + $0x3b8] sm:$0xff] }
 0x710   : > { %v4182_v51 = vpack.c.bf16 %v2384_v40, %v2383_v39  ;;  %v2360_v39 = vld [vmem:[#allocation10 + $0x2f8] sm:$0xff] }
 0x713   : > { %4488 = vrot.lane.b32.xlu1 %v4487_v41, %s4744_s25  ;;  %4493 = vrot.lane.b32.xlu0 %v4492_v43, %s4749_s16 }
 0x717   : > { %4498 = vrot.lane.b32.xlu1 %v4492_v43, %s4744_s25  ;;  %4503 = vrot.lane.b32.xlu0 %v4502_v2, %s4744_s25 }
 0x71b   : > { %4508 = vrot.lane.b32.xlu1 %v4487_v41, %s4749_s16  ;;  %4513 = vrot.lane.b32.xlu0 %v4502_v2, %s4749_s16  ;;  %v2335_v41 = vld [vmem:[#allocation10 + $0x230] sm:$0xff]  ;;  %v2336_v2 = vld [vmem:[#allocation10 + $0x238] sm:$0xff]  ;;  %s5419_s16 = sld [smem:[#allocation18_spill]] }
 0x721   : > { %s5339_s23 = scalar_lea.hbm %s5419_s16, %s2953_s22 }
 0x779   : > { %v4464_v56 = vpop.permute.xlu0 %4463  ;;  %v4459_v0 = vpop.permute.xlu1 %4458 }
 0x77a   : > { %v4466_v62 = vunpack.i.h.bf16 %v4464_v56  ;;  %v4465_v63 = vunpack.i.l.bf16 %v4464_v56  ;;  %v4461_v5 = vunpack.i.h.bf16 %v4459_v0  ;;  %v4460_v6 = vunpack.i.l.bf16 %v4459_v0  ;;  %v2354_v56 = vld [vmem:[#allocation10 + $0x2c8] sm:$0xff]  ;;  %v2369_v0 = vld [vmem:[#allocation10 + $0x340] sm:$0xff] }
 0x77c   : > { %v2187_v10 = vsel %vm866_vm9, %v4465_v63, %v4466_v62  ;;  %v2175_v13 = vsel %vm853_vm7, %v4460_v6, %v4461_v5  ;;  %v4152_v62 = vpack.c.bf16 %v2336_v2, %v2335_v41  ;;  %v4186_v63 = vpack.c.bf16 %v2386_v54, %v2385_v53  ;;  %v2338_v5 = vld [vmem:[#allocation10 + $0x248] sm:$0xff]  ;;  %v2387_v6 = vld [vmem:[#allocation10 + $0x3d0] sm:$0xff] }
 0x77d   : > { %2556 = vmatmul.mubr.f32.vlgmr.msra.gmra.mrb[24].mxu0 %v2187_v10  ;;  %2480 = vmatprep.mubr.f32.mxu1 %v2175_v13  ;;  %v4469_v18 = vpop.permute.xlu1 %4468  ;;  %v4474_v19 = vpop.permute.xlu0 %4473  ;;  %v2371_v13 = vld [vmem:[#allocation10 + $0x350] sm:$0xff] }
 0x77e   : > { %4173 = vmatpush3.bf16.msra.mxu0 %v4172_v1  ;;  %v4471_v25 = vunpack.i.h.bf16 %v4469_v18  ;;  %v4470_v26 = vunpack.i.l.bf16 %v4469_v18  ;;  %v4476_v27 = vunpack.i.h.bf16 %v4474_v19  ;;  %v4475_v28 = vunpack.i.l.bf16 %v4474_v19  ;;  %2946 = vmatmul.mubr.msk.f32.vlgmr.msra.gmra.mrb[22].mxu1 %vm5149_vm8, %v5265_v21  ;;  %v2352_v21 = vld [vmem:[#allocation10 + $0x2b8] sm:$0xff]  ;;  %v2370_v1 = vld [vmem:[#allocation10 + $0x348] sm:$0xff]  ;;  %v2389_v19 = vld [vmem:[#allocation10 + $0x3e0] sm:$0xff] }
 0x77f   : > { %2560 = vmatprep.mubr.f32.mxu0 %v2196_v48  ;;  %4141 = vmatpush3.bf16.msra.mxu1 %v4140_v11  ;;  %v2367_v48 = vld [vmem:[#allocation10 + $0x330] sm:$0xff]  ;;  %v4150_v31 = vpack.c.bf16 %v2352_v21, %v2351_v17  ;;  %v4188_v10 = vpack.c.bf16 %v2370_v1, %v2369_v0  ;;  %v4156_v11 = vpack.c.bf16 %v2338_v5, %v2337_v3  ;;  %v2340_v18 = vld [vmem:[#allocation10 + $0x258] sm:$0xff] }
 0x780   : > { %4175 = vmatprep.subr.bf16.mxu0 %v4174_v12  ;;  %v2176_v36 = vsel %vm853_vm7, %v4470_v26, %v4471_v25  ;;  %4143 = vmatprep.subr.bf16.mxu1 %v4142_v14  ;;  %v2225_v47 = vsel %vm866_vm9, %v4475_v28, %v4476_v27  ;;  %v4184_v61 = vpack.c.bf16 %v2368_v49, %v2367_v48  ;;  %v2372_v14 = vld [vmem:[#allocation10 + $0x358] sm:$0xff]  ;;  %v2373_v27 = vld [vmem:[#allocation10 + $0x360] sm:$0xff]  ;;  %v2374_v28 = vld [vmem:[#allocation10 + $0x368] sm:$0xff] }
 0x781   : > { %2485 = vmatprep.mubr.f32.mxu1 %v2176_v36  ;;  %v5312_v44 = vpop.permute.xlu1 %4478  ;;  %v4484_v45 = vpop.permute.xlu0 %4483  ;;  %v4190_v12 = vpack.c.bf16 %v2388_v7, %v2387_v6  ;;  %v4192_v24 = vpack.c.bf16 %v2372_v14, %v2371_v13  ;;  %v4160_v25 = vpack.c.bf16 %v2340_v18, %v2339_v15  ;;  %v2391_v36 = vld [vmem:[#allocation10 + $0x3f0] sm:$0xff]  ;;  %v4196_v40 = vpack.c.bf16 %v2374_v28, %v2373_v27  ;;  %v2394_v48 = vld [vmem:[#allocation10 + $0x408] sm:$0xff]  ;;  %v2405_v18 = vld [vmem:[#allocation10 + $0x460] sm:$0xff] }
 0x782   : > { %4177 = vmatpush3.bf16.msra.mxu0 %v4176_v20  ;;  %v4486_v46 = vunpack.i.h.bf16 %v4484_v45  ;;  %v4485_v60 = vunpack.i.l.bf16 %v4484_v45  ;;  %2486 = vmatmul.mubr.f32.gmra.mrb[24].mxu1 %v5269_v22  ;;  %v2353_v22 = vld [vmem:[#allocation10 + $0x2c0] sm:$0xff]  ;;  %v2390_v20 = vld [vmem:[#allocation10 + $0x3e8] sm:$0xff]  ;;  %v2375_v21 = vld [vmem:[#allocation10 + $0x370] sm:$0xff]  ;;  %v4481_v2 = vunpack.i.h.bf16 %v5312_v44  ;;  %v4480_v53 = vunpack.i.l.bf16 %v5312_v44 }
 0x783   : > { %4179 = vmatprep.subr.bf16.mxu0 %v4178_v42  ;;  %4145 = vmatpush3.bf16.msra.mxu1 %v4144_v29  ;;  %v4154_v59 = vpack.c.bf16 %v2354_v56, %v2353_v22  ;;  %v2357_v42 = vld [vmem:[#allocation10 + $0x2e0] sm:$0xff]  ;;  %v4194_v26 = vpack.c.bf16 %v2390_v20, %v2389_v19  ;;  %v2395_v22 = vld [vmem:[#allocation10 + $0x410] sm:$0xff]  ;;  %v2396_v56 = vld [vmem:[#allocation10 + $0x418] sm:$0xff] }
 0x784   : > { %2630 = vmatprep.mubr.f32.mxu1 %v2225_v47  ;;  %4147 = vmatprep.subr.bf16.mxu1 %v4146_v37  ;;  %v2188_v43 = vsel %vm866_vm9, %v4485_v60, %v4486_v46  ;;  %v2341_v29 = vld [vmem:[#allocation10 + $0x260] sm:$0xff]  ;;  %v4162_v33 = vpack.c.bf16 %v2358_v23, %v2357_v42  ;;  %v2392_v37 = vld [vmem:[#allocation10 + $0x3f8] sm:$0xff]  ;;  %v4166_v60 = vpack.c.bf16 %v2360_v39, %v2359_v38  ;;  %v2343_v47 = vld [vmem:[#allocation10 + $0x270] sm:$0xff] }
 0x785   : > { %v4489_v55 = vpop.permute.xlu1 %4488  ;;  %2561 = vmatmul.mubr.f32.gmra.mrb[26].mxu0 %v2188_v43  ;;  %v4494_v32 = vpop.permute.xlu0 %4493  ;;  %v4164_v45 = vpack.c.bf16 %v2342_v35, %v2341_v29  ;;  %v4198_v17 = vpack.c.bf16 %v2392_v37, %v2391_v36  ;;  %v2376_v46 = vld [vmem:[#allocation10 + $0x378] sm:$0xff]  ;;  %v2213_v1 = vsel %vm853_vm7, %v4480_v53, %v4481_v2  ;;  %v2397_v44 = vld [vmem:[#allocation10 + $0x420] sm:$0xff]  ;;  %v2402_v13 = vld [vmem:[#allocation10 + $0x448] sm:$0xff] }
 0x786   : > { %v4491_v57 = vunpack.i.h.bf16 %v4489_v55  ;;  %v4490_v58 = vunpack.i.l.bf16 %v4489_v55  ;;  %4181 = vmatpush3.bf16.msra.mxu0 %v4180_v50  ;;  %v2344_v50 = vld [vmem:[#allocation10 + $0x278] sm:$0xff]  ;;  %v4200_v41 = vpack.c.bf16 %v2376_v46, %v2375_v21  ;;  %v2403_v15 = vld [vmem:[#allocation10 + $0x450] sm:$0xff]  ;;  %v2406_v19 = vld [vmem:[#allocation10 + $0x468] sm:$0xff] }
 0x787   : > { %4149 = vmatpush3.bf16.msra.mxu1 %v4148_v30  ;;  %4183 = vmatprep.subr.bf16.mxu0 %v4182_v51  ;;  %v2393_v51 = vld [vmem:[#allocation10 + $0x400] sm:$0xff]  ;;  %v4168_v43 = vpack.c.bf16 %v2344_v50, %v2343_v47  ;;  %v4226_v20 = vpack.c.bf16 %v2406_v19, %v2405_v18  ;;  %v2407_v42 = vld [vmem:[#allocation10 + $0x470] sm:$0xff]  ;;  %v2408_v23 = vld [vmem:[#allocation10 + $0x478] sm:$0xff] }
 0x788   : > { %4151 = vmatprep.subr.bf16.mxu1 %v4150_v31  ;;  %v2249_v34 = vsel %vm853_vm7, %v4490_v58, %v4491_v57  ;;  %v4202_v31 = vpack.c.bf16 %v2394_v48, %v2393_v51  ;;  %v4496_v57 = vunpack.i.h.bf16 %v4494_v32  ;;  %v4495_v58 = vunpack.i.l.bf16 %v4494_v32  ;;  %v2944_v36 = vld [vmem:[%s5392_s8] ss:$0 sm:$0xff] }
 0x789   : > { %2705 = vmatprep.mubr.f32.mxu0 %v2249_v34  ;;  %v4499_v30 = vpop.permute.xlu1 %4498  ;;  %v4504_v49 = vpop.permute.xlu0 %4503  ;;  %v2398_v34 = vld [vmem:[#allocation10 + $0x428] sm:$0xff] }
 0x78a   : > { %4185 = vmatpush3.bf16.msra.mxu0 %v4184_v61  ;;  %v4506_v54 = vunpack.i.h.bf16 %v4504_v49  ;;  %v4505_v55 = vunpack.i.l.bf16 %v4504_v49  ;;  %v4500_v0 = vunpack.i.l.bf16 %v4499_v30  ;;  %v2226_v6 = vsel %vm866_vm9, %v4495_v58, %v4496_v57 }
 0x78b   : > { %4153 = vmatpush3.bf16.msra.mxu1 %v4152_v62  ;;  %4187 = vmatprep.subr.bf16.mxu0 %v4186_v63  ;;  %v4206_v62 = vpack.c.bf16 %v2396_v56, %v2395_v22  ;;  %v4501_v63 = vunpack.i.h.bf16 %v4499_v30  ;;  %v4210_v7 = vpack.c.bf16 %v2398_v34, %v2397_v44 }
 0x78c   : > { %4155 = vmatprep.subr.bf16.mxu1 %v4154_v59  ;;  %v2250_v3 = vsel %vm853_vm7, %v4505_v55, %v4506_v54 }
 0x78d   : > { %v4509_v61 = vpop.permute.xlu1 %4508 }
 0x78e   : > { %4189 = vmatpush3.bf16.msra.mxu0 %v4188_v10  ;;  %v4511_v59 = vunpack.i.h.bf16 %v4509_v61  ;;  %v4510_v5 = vunpack.i.l.bf16 %v4509_v61 }
 0x78f   : > { %4157 = vmatpush3.bf16.msra.mxu1 %v4156_v11  ;;  %4191 = vmatprep.subr.bf16.mxu0 %v4190_v12  ;;  %v4214_v11 = vpack.c.bf16 %v2400_v9, %v2399_v8  ;;  %v2401_v12 = vld [vmem:[#allocation10 + $0x440] sm:$0xff] }
 0x790   : > { %4159 = vmatprep.subr.bf16.mxu1 %v4158_v16  ;;  %v2261_v10 = vsel %vm866_vm9, %v4510_v5, %v4511_v59  ;;  %v4218_v14 = vpack.c.bf16 %v2402_v13, %v2401_v12  ;;  %v2404_v16 = vld [vmem:[#allocation10 + $0x458] sm:$0xff] }
 0x792   : > { %4193 = vmatpush3.bf16.msra.mxu0 %v4192_v24  ;;  %v4230_v24 = vpack.c.bf16 %v2408_v23, %v2407_v42 }
 0x793   : > { %4161 = vmatpush3.bf16.msra.mxu1 %v4160_v25  ;;  %4195 = vmatprep.subr.bf16.mxu0 %v4194_v26  ;;  %v4514_v25 = vpop.permute.xlu0 %4513 }
 0x794   : > { %4163 = vmatprep.subr.bf16.mxu1 %v4162_v33  ;;  %v4516_v26 = vunpack.i.h.bf16 %v4514_v25  ;;  %v4515_v27 = vunpack.i.l.bf16 %v4514_v25 }
 0x796   : > { %4197 = vmatpush3.bf16.msra.mxu0 %v4196_v40  ;;  %v2262_v28 = vsel %vm866_vm9, %v4515_v27, %v4516_v26 }
 0x797   : > { %4165 = vmatpush3.bf16.msra.mxu1 %v4164_v45  ;;  %4199 = vmatprep.subr.bf16.mxu0 %v4198_v17 }
 0x798   : > { %4167 = vmatprep.subr.bf16.mxu1 %v4166_v60 }
 0x79a   : > { %4201 = vmatpush3.bf16.msra.mxu0 %v4200_v41 }
 0x79b   : > { %4169 = vmatpush3.bf16.msra.mxu1 %v4168_v43 }
 0x79c   : > { %4203 = vmatprep.subr.bf16.mxu1 %v4202_v31 }
 0x79d   : > { %2706 = vmatmul.mubr.f32.vlgmr.msra.gmra.mrb[28].mxu0 %v5287_v4  ;;  %v2214_v4 = vsel %vm853_vm7, %v4500_v0, %v4501_v63 }
 0x79e   : > { %2631 = vmatmul.mubr.f32.vlgmr.msra.gmra.mrb[26].mxu1 %v2213_v1  ;;  %2710 = vmatprep.mubr.f32.mxu0 %v2250_v3 }
 0x79f   : > { %2635 = vmatprep.mubr.f32.mxu1 %v2226_v6  ;;  %4205 = vmatpush3.bf16.msra.mxu1 %v4202_v31 }
 0x7a0   : > { %4207 = vmatprep.subr.bf16.mxu1 %v4206_v62 }
 0x7a1   : > { %2711 = vmatmul.mubr.f32.gmra.mrb[30].mxu0 %v5296_v52  ;;  %v4222_v52 = vpack.c.bf16 %v2404_v16, %v2403_v15 }
 0x7a2   : > { %2636 = vmatmul.mubr.f32.gmra.mrb[28].mxu1 %v2214_v4 }
 0x7a3   : > { %4209 = vmatpush3.bf16.msra.mxu1 %v4206_v62  ;;  %3671 = vmatprep.mubr.f32.mxu1 %v2261_v10 }
 0x7a4   : > { %4211 = vmatprep.subr.bf16.mxu1 %v4210_v7 }
 0x7a7   : > { %4213 = vmatpush3.bf16.msra.mxu1 %v4210_v7 }
 0x7a8   : > { %4215 = vmatprep.subr.bf16.mxu1 %v4214_v11 }
 0x7ab   : > { %4217 = vmatpush3.bf16.msra.mxu1 %v4214_v11 }
 0x7ac   : > { %4219 = vmatprep.subr.bf16.mxu1 %v4218_v14 }
 0x7af   : > { %4221 = vmatpush3.bf16.msra.mxu1 %v4218_v14 }
 0x7b0   : > { %4223 = vmatprep.subr.bf16.mxu1 %v4222_v52 }
 0x7b3   : > { %4225 = vmatpush3.bf16.msra.mxu1 %v4222_v52 }
 0x7b4   : > { %4227 = vmatprep.subr.bf16.mxu1 %v4226_v20 }
 0x7b7   : > { %4229 = vmatpush3.bf16.msra.mxu1 %v4226_v20 }
 0x7b8   : > { %4231 = vmatprep.subr.bf16.mxu1 %v4230_v24 }
 0x7bb   : > { %4233 = vmatpush3.bf16.msra.mxu1 %v4230_v24 }
 0x7be   : > { %3672 = vmatmul.mubr.f32.vlgmr.msra.gmra.mrb[30].mxu1 %v2262_v28 }
 0x850   : > { %v3450_v29 = vpop.f32.mrb[24].mxu0 }
 0x851   : > { %v3451_v32 = vpop.f32.mrb[25].mxu0  ;;  %v3412_v33 = vpop.f32.mrb[22].mxu1 }
 0x852   : > { %v3452_v35 = vadd.f32 %v3451_v32, %v3450_v29  ;;  %v3413_v37 = vpop.f32.mrb[23].mxu1 }
 0x853   : > { %v3414_v38 = vadd.f32 %v3413_v37, %v3412_v33 }
 0x855   : > { %v2483_v39 = vadd.f32 %v3414_v38, %v2944_v36  ;;  %v3415_v40 = vpop.f32.mrb[24].mxu1 }
 0x856   : > { %v3416_v45 = vpop.f32.mrb[25].mxu1 }
 0x857   : > { %v3417_v17 = vadd.f32 %v3416_v45, %v3415_v40  ;;  %v2558_v21 = vadd.f32 %v3452_v35, %v2483_v39 }
 0x858   : > { %v3453_v46 = vpop.f32.mrb[26].mxu0 }
 0x859   : > { %v2488_v60 = vadd.f32 %v3417_v17, %v2944_v36  ;;  %v3454_v47 = vpop.f32.mrb[27].mxu0 }
 0x85a   : > { %v3455_v50 = vadd.f32 %v3454_v47, %v3453_v46 }
 0x85c   : > { %v2563_v30 = vadd.f32 %v3455_v50, %v2488_v60 }
 0x870   : > { %v3526_v51 = vpop.f32.mrb[28].mxu0 }
 0x871   : > { %v3488_v48 = vpop.f32.mrb[26].mxu1  ;;  %v3527_v49 = vpop.f32.mrb[29].mxu0 }
 0x872   : > { %v3528_v41 = vadd.f32 %v3527_v49, %v3526_v51  ;;  %v3489_v43 = vpop.f32.mrb[27].mxu1 }
 0x873   : > { %v3490_v31 = vadd.f32 %v3489_v43, %v3488_v48 }
 0x874   : > { %v3529_v2 = vpop.f32.mrb[30].mxu0 }
 0x875   : > { %v2633_v53 = vadd.f32 %v3490_v31, %v2558_v21  ;;  %v3491_v54 = vpop.f32.mrb[28].mxu1  ;;  %v3530_v55 = vpop.f32.mrb[31].mxu0 }
 0x876   : > { %v3531_v22 = vadd.f32 %v3530_v55, %v3529_v2  ;;  %v3492_v56 = vpop.f32.mrb[29].mxu1 }
 0x877   : > { %v3493_v57 = vadd.f32 %v3492_v56, %v3491_v54  ;;  %v2708_v58 = vadd.f32 %v3528_v41, %v2633_v53 }
 0x879   : > { %v2638_v61 = vadd.f32 %v3493_v57, %v2563_v30 }
 0x87b   : > { %v2713_v62 = vadd.f32 %v3531_v22, %v2638_v61 }
 0x891   : > { %v3673_v63 = vpop.f32.mrb[30].mxu1 }
 0x892   : > { %v2788_v0 = vadd.f32 %v3673_v63, %v2713_v62  ;;  %v2782_v1 = vpop.f32.mrb[31].mxu1 }
 0x893   : > { %v2783_v3 = vadd.f32 %v2782_v1, %v2708_v58 }
 0x894   : > { %2792 = vst [vmem:[%s408_s26 + $0x8] sm:$0xff] %v2788_v0 }
 0x895   : > { %2791 = vst [vmem:[%s408_s26] sm:$0xff] %v2783_v3 }
 0x896   : > { %4672 = shalt.err (!%p4669_p13)
}
 0x897   : > { %s4673_s15 = scalar_lea.hbm %s5339_s23, 256  ;;  %s4677_s22 = scalar_lea.hbm %s5419_s16, 512 }
 0x898   : > { %p4674_p9 = scmp.ne.s32.totalorder %s5339_s23, %s4673_s15  ;;  %p4678_p4 = scmp.lt.u32.totalorder %s5339_s23, %s5419_s16 }
 0x899   : > { %p4679_p8 = scmp.lt.u32.totalorder %s4677_s22, %s4673_s15  ;;  %p4681_p3 = scmp.lt.u32.totalorder %s4673_s15, %s5339_s23 }
 0x89a   : > { %p4675_p0 = pnand %p4674_p9, %p4973_p10 }
 0x89b   : > { %p4680_p6 = por %p4679_p8, %p4678_p4 }
 0x89c   : > { %p4676_p11 = pneg %p4675_p0 }
 0x89d   : > { %p4682_p5 = por %p4681_p3, %p4680_p6 }
 0x89f   : > { %p4683_p7 = pnand %p4682_p5, %p4676_p11 }
 0x8a1   : > { %4686 = shalt.err (!%p4683_p7)
}
 0x8a2   : > { %s4751_s21 = smov 128  }
 0x8a3   : > { %4252 = dma.vmem_to_hbm [thread:$0]  (%p4973_p10), %s5334_s19, 256, %s5339_s23, %s2794_s24, %s4751_s21, %s4751_s21, %s4748_s18  }
 0x8a4 PF: > { %s5420_s13 = sld [smem:[#allocation16_spill]]  ;;  %s5421_s9 = sld [smem:[#allocation17_spill]] }
 0x8a5   : > { %p5423_p1 = scmp.ge.s32.totalorder %s4733_s12, 2 }
 0x8aa   : > { %s2822_s17 = sand.u32 1, %s5420_s13   ;;  %p5422_p12 = scmp.ne.s32.totalorder %s5421_s9, 0 }
 0x8ab   : > { %s2823_s15 = scalar_lea.sflag [#allocation4], %s2822_s17 }
 0x8ac   : > { %p4272_p2 = pnand %p5423_p1, %p5422_p12 }
 0x8ae   : > { %4716 = dma.done.wait (!%p4272_p2), %s2823_s15, 256  }
 0x8af   : > { %4718 = vsyncadd (!%p4272_p2), %s2823_s15, 4294967040  ;;  %p24_p13 = scmp.ge.s32.totalorder %s4963_s14, 4   ;;  %s5424_s30 = smov %s4725_s10 }
 0x8b0   : > { %s5425_s10 = smov %s4729_s11  ;;  %s5426_s11 = smov %s4979_s28 }
 0x8b1   : > { %s5427_s12 = smov %s4963_s14  ;;  %26 = sbr.rel (!%p24_p13) target bundleno = 9 (0x9), region = 117 }
 0x8b8   :  { %2828 = vsyncpa [#allocation3], 1 }
 0x8b9   :  { %2830 = vsyncpa [#allocation3 + $0x1], 1 }
 0x8ba   :  { %2831 = vsyncpa [#allocation6], 1 }
 0x8bb   :  { %2832 = vsyncpa [#allocation9], 1 }
 0x8bc   :  { %2833 = vsyncpa [#allocation4], 1 }
 0x8bd   :  { %2835 = vsyncpa [#allocation4 + $0x1], 1 }

</bundles_post_ra>
